<compile_context>
chip_gen: v6e
topology: v6e:2x2x1
jax: 0.10.0
libtpu: 0.0.40
codegen_flags: <defaults>
</compile_context>

<pallas_src>
import math

import jax
import jax.numpy as jnp
from jax import lax
from jax.experimental import pallas as pl
from jax.experimental.pallas import tpu as pltpu

# ----------------------------- config ---------------------------------------
IMG = 16
PATCH = 4
IN_CHANS = 3
EMBED = 64
DEPTH = 2
HEADS = 4
HEAD_DIM = EMBED // HEADS
MLP_RATIO = 4
HIDDEN = EMBED * MLP_RATIO
EMB_SIZE = 32        # args.sz_embedding
BATCH = 2
LN_EPS = 1e-5        # nn.LayerNorm default

NUM_PATCHES = (IMG // PATCH) ** 2          # 16
N_REAL = NUM_PATCHES + 1                   # 17 (CLS + patches)
N_PAD = 32                                 # padded sequence (sublane friendly)
PATCH_K = IN_CHANS * PATCH * PATCH         # 48
NEG_BIG = -1e30


# ----------------------------- kernel helpers --------------------------------
def _ln(x, w, b):
    mu = jnp.mean(x, axis=-1, keepdims=True)
    var = jnp.mean((x - mu) ** 2, axis=-1, keepdims=True)
    return (x - mu) * lax.rsqrt(var + LN_EPS) * w + b


def _gelu_exact(x):
    # exact GELU (nn.GELU default): 0.5*x*(1+erf(x/sqrt(2)))
    return 0.5 * x * (1.0 + lax.erf(x * (1.0 / math.sqrt(2.0))))


# ----------------------------- fused Pallas kernel ---------------------------
def _vit_kernel(patches_ref, pw_ref, pb_ref, clspos_ref, pospatch_ref,
                ln1w, ln1b, qkvw, qkvb, projw, projb,
                ln2w, ln2b, fc1w, fc1b, fc2w, fc2b,
                nw_ref, nb_ref, ew_ref, eb_ref, o_ref):
    # ---- prepare_tokens: patch-embed GEMM + CLS + pos_embed + pad to N_PAD ---
    pe = (jnp.dot(patches_ref[0], pw_ref[...],
                  preferred_element_type=jnp.float32) + pb_ref[...])
    body = pe + pospatch_ref[...]                         # (NUM_PATCHES, EMBED)
    pad = jnp.zeros((N_PAD - N_REAL, EMBED), jnp.float32)
    x = jnp.concatenate([clspos_ref[...], body, pad], axis=0)   # (N_PAD, C)

    # key mask hoisted out of the depth loop (padded keys never attended to)
    col = lax.broadcasted_iota(jnp.int32, (N_PAD, N_PAD), 1)
    key_mask = col < N_REAL
    scale = HEAD_DIM ** (-0.5)

    # ---- transformer blocks (DEPTH small -> fully unrolled, weights by static
    #      index into the stacked DEPTH axis) -------------------------------
    for d in range(DEPTH):
        # attention branch
        xn = _ln(x, ln1w[d], ln1b[d])
        qkv = (jnp.dot(xn, qkvw[d], preferred_element_type=jnp.float32)
               + qkvb[d])                                 # (N_PAD, 3C)

        heads_out = []
        for h in range(HEADS):                            # static per-head slices
            lo = h * HEAD_DIM
            qh = qkv[:, lo:lo + HEAD_DIM]
            kh = qkv[:, EMBED + lo:EMBED + lo + HEAD_DIM]
            vh = qkv[:, 2 * EMBED + lo:2 * EMBED + lo + HEAD_DIM]
            s = lax.dot_general(qh, kh, (((1,), (1,)), ((), ())),
                                preferred_element_type=jnp.float32) * scale
            s = jnp.where(key_mask, s, NEG_BIG)
            s = s - jnp.max(s, axis=-1, keepdims=True)
            p = jnp.exp(s)
            p = p * pl.reciprocal(jnp.sum(p, axis=-1, keepdims=True), approx=True)
            heads_out.append(jnp.dot(p, vh, preferred_element_type=jnp.float32))
        attn = jnp.concatenate(heads_out, axis=-1)        # (N_PAD, C)

        attn = (jnp.dot(attn, projw[d], preferred_element_type=jnp.float32)
                + projb[d])
        x = x + attn                                      # drop_path == identity

        # MLP branch
        xn2 = _ln(x, ln2w[d], ln2b[d])
        h1 = _gelu_exact(jnp.dot(xn2, fc1w[d],
                                 preferred_element_type=jnp.float32) + fc1b[d])
        x = x + (jnp.dot(h1, fc2w[d], preferred_element_type=jnp.float32)
                 + fc2b[d])

    # ---- final norm + embedding projection, CLS row only ---------------------
    cls = _ln(x[0:1, :], nw_ref[...], nb_ref[...])        # (1, EMBED)
    o_ref[0] = (jnp.dot(cls, ew_ref[...], preferred_element_type=jnp.float32)
                + eb_ref[...])


# ----------------------------- wrapper ---------------------------------------
def vit_dino_forward(x_nchw, params):
    b, c, h, w = x_nchw.shape
    ph = h // PATCH
    pw = w // PATCH
    # Patchify (glue): conv(kernel=stride=patch) == matmul on flattened patches.
    patches = (
        x_nchw.reshape(b, c, ph, PATCH, pw, PATCH)
        .transpose(0, 2, 4, 1, 3, 5)                      # (B, ph, pw, C, p, p)
        .reshape(b, ph * pw, c * PATCH * PATCH)
    )
    # interpolate_pos_encoding is a no-op here; cls_token + pos_embed[0] is a
    # constant under jit and gets folded.
    cls_pos = params["cls_token"] + params["pos_cls"]     # (1, EMBED)
    bp = params["blocks"]

    def const2(shape):
        return pl.BlockSpec(shape, lambda i: (0, 0))

    def const3(shape):
        return pl.BlockSpec(shape, lambda i: (0, 0, 0))

    out = pl.pallas_call(
        _vit_kernel,
        out_shape=jax.ShapeDtypeStruct((b, 1, EMB_SIZE), jnp.float32),
        grid=(b,),
        in_specs=[
            pl.BlockSpec((1, NUM_PATCHES, PATCH_K), lambda i: (i, 0, 0)),
            const2((PATCH_K, EMBED)), const2((1, EMBED)),            # patch proj
            const2((1, EMBED)), const2((NUM_PATCHES, EMBED)),        # cls+pos
            const3((DEPTH, 1, EMBED)), const3((DEPTH, 1, EMBED)),    # ln1
            const3((DEPTH, EMBED, 3 * EMBED)),                       # qkv w
            const3((DEPTH, 1, 3 * EMBED)),                           # qkv b
            const3((DEPTH, EMBED, EMBED)), const3((DEPTH, 1, EMBED)),  # proj
            const3((DEPTH, 1, EMBED)), const3((DEPTH, 1, EMBED)),    # ln2
            const3((DEPTH, EMBED, HIDDEN)), const3((DEPTH, 1, HIDDEN)),  # fc1
            const3((DEPTH, HIDDEN, EMBED)), const3((DEPTH, 1, EMBED)),  # fc2
            const2((1, EMBED)), const2((1, EMBED)),                  # final norm
            const2((EMBED, EMB_SIZE)), const2((1, EMB_SIZE)),        # embedding
        ],
        out_specs=pl.BlockSpec((1, 1, EMB_SIZE), lambda i: (i, 0, 0)),
        compiler_params=pltpu.CompilerParams(dimension_semantics=("parallel",)),
    )(patches, params["patch_wT"], params["patch_b"], cls_pos, params["pos_patch"],
      bp["ln1_w"], bp["ln1_b"], bp["qkv_wT"], bp["qkv_b"],
      bp["proj_wT"], bp["proj_b"], bp["ln2_w"], bp["ln2_b"],
      bp["fc1_wT"], bp["fc1_b"], bp["fc2_wT"], bp["fc2_b"],
      params["norm_w"], params["norm_b"], params["embed_wT"], params["embed_b"])
    # return_all_patches=False path: only the CLS token embedding is returned.
    return out.reshape(b, EMB_SIZE)


# ----------------------------- params ----------------------------------------
def init_params(key):
    std = 0.02
    ks = jax.random.split(key, 4 + DEPTH)
    p = {}
    patch_w = std * jax.random.normal(
        ks[0], (EMBED, IN_CHANS, PATCH, PATCH), jnp.float32)
    p["patch_wT"] = patch_w.reshape(EMBED, -1).T          # (C*p*p, EMBED)
    p["patch_b"] = jnp.zeros((1, EMBED), jnp.float32)

    p["cls_token"] = std * jax.random.normal(ks[1], (1, EMBED), jnp.float32)
    pos = std * jax.random.normal(ks[2], (N_REAL, EMBED), jnp.float32)
    p["pos_cls"] = pos[:1]                                # (1, EMBED)
    p["pos_patch"] = pos[1:]                              # (NUM_PATCHES, EMBED)

    p["norm_w"] = jnp.ones((1, EMBED), jnp.float32)
    p["norm_b"] = jnp.zeros((1, EMBED), jnp.float32)
    # TODO(synk): `self.embedding` is referenced in VisionTransformer.forward but
    # never defined in __init__; assumed to be nn.Linear(embed_dim, embedding_size).
    p["embed_wT"] = std * jax.random.normal(ks[3], (EMBED, EMB_SIZE), jnp.float32)
    p["embed_b"] = jnp.zeros((1, EMB_SIZE), jnp.float32)

    blk_list = []
    for i in range(DEPTH):
        bk = jax.random.split(ks[4 + i], 4)
        blk_list.append({
            "ln1_w": jnp.ones((1, EMBED), jnp.float32),
            "ln1_b": jnp.zeros((1, EMBED), jnp.float32),
            "qkv_wT": std * jax.random.normal(bk[0], (EMBED, 3 * EMBED), jnp.float32),
            "qkv_b": jnp.zeros((1, 3 * EMBED), jnp.float32),   # qkv_bias=True
            "proj_wT": std * jax.random.normal(bk[1], (EMBED, EMBED), jnp.float32),
            "proj_b": jnp.zeros((1, EMBED), jnp.float32),
            "ln2_w": jnp.ones((1, EMBED), jnp.float32),
            "ln2_b": jnp.zeros((1, EMBED), jnp.float32),
            "fc1_wT": std * jax.random.normal(bk[2], (EMBED, HIDDEN), jnp.float32),
            "fc1_b": jnp.zeros((1, HIDDEN), jnp.float32),
            "fc2_wT": std * jax.random.normal(bk[3], (HIDDEN, EMBED), jnp.float32),
            "fc2_b": jnp.zeros((1, EMBED), jnp.float32),
        })
    # stack per-block params along a leading DEPTH axis for the fused kernel
    p["blocks"] = {k: jnp.stack([blk[k] for blk in blk_list], axis=0)
                   for k in blk_list[0]}
    return p


# ----------------------------- main ------------------------------------------
if __name__ == "__main__":
    key = jax.random.PRNGKey(0)
    k_param, k_x = jax.random.split(key)
    params = init_params(k_param)
    x = jax.random.normal(k_x, (BATCH, IN_CHANS, IMG, IMG), jnp.float32)

    fwd = jax.jit(lambda xx: vit_dino_forward(xx, params))
    out = fwd(x)
    jax.block_until_ready(out)
    assert out.shape == (BATCH, EMB_SIZE), out.shape
    assert bool(jnp.all(jnp.isfinite(out)))
    print("KERNEL_OK")
</pallas_src>

<mosaic_0001>
module attributes {stable_mosaic.version = 11 : i64} {
  func.func @_vit_kernel(%arg0: i32, %arg1: memref<1x16x48xf32, #tpu.memory_space<vmem>>, %arg2: memref<48x64xf32, #tpu.memory_space<vmem>>, %arg3: memref<1x64xf32, #tpu.memory_space<vmem>>, %arg4: memref<1x64xf32, #tpu.memory_space<vmem>>, %arg5: memref<16x64xf32, #tpu.memory_space<vmem>>, %arg6: memref<2x1x64xf32, #tpu.memory_space<vmem>>, %arg7: memref<2x1x64xf32, #tpu.memory_space<vmem>>, %arg8: memref<2x64x192xf32, #tpu.memory_space<vmem>>, %arg9: memref<2x1x192xf32, #tpu.memory_space<vmem>>, %arg10: memref<2x64x64xf32, #tpu.memory_space<vmem>>, %arg11: memref<2x1x64xf32, #tpu.memory_space<vmem>>, %arg12: memref<2x1x64xf32, #tpu.memory_space<vmem>>, %arg13: memref<2x1x64xf32, #tpu.memory_space<vmem>>, %arg14: memref<2x64x256xf32, #tpu.memory_space<vmem>>, %arg15: memref<2x1x256xf32, #tpu.memory_space<vmem>>, %arg16: memref<2x256x64xf32, #tpu.memory_space<vmem>>, %arg17: memref<2x1x64xf32, #tpu.memory_space<vmem>>, %arg18: memref<1x64xf32, #tpu.memory_space<vmem>>, %arg19: memref<1x64xf32, #tpu.memory_space<vmem>>, %arg20: memref<64x32xf32, #tpu.memory_space<vmem>>, %arg21: memref<1x32xf32, #tpu.memory_space<vmem>>, %arg22: memref<1x1x32xf32, #tpu.memory_space<vmem>>) attributes {dimension_semantics = [#tpu.dimension_semantics<parallel>], iteration_bounds = array<i64: 2>, scalar_prefetch = 0 : i64, scratch_operands = 0 : i64, tpu.core_type = #tpu.core_type<tc>, window_params = [{transform_indices = @transform_0, window_bounds = array<i64: 1, 16, 48>}, {pipeline_mode = #tpu.pipeline_mode<synchronous>, transform_indices = @transform_1, window_bounds = array<i64: 48, 64>}, {pipeline_mode = #tpu.pipeline_mode<synchronous>, transform_indices = @transform_2, window_bounds = array<i64: 1, 64>}, {pipeline_mode = #tpu.pipeline_mode<synchronous>, transform_indices = @transform_3, window_bounds = array<i64: 1, 64>}, {pipeline_mode = #tpu.pipeline_mode<synchronous>, transform_indices = @transform_4, window_bounds = array<i64: 16, 64>}, {pipeline_mode = #tpu.pipeline_mode<synchronous>, transform_indices = @transform_5, window_bounds = array<i64: 2, 1, 64>}, {pipeline_mode = #tpu.pipeline_mode<synchronous>, transform_indices = @transform_6, window_bounds = array<i64: 2, 1, 64>}, {pipeline_mode = #tpu.pipeline_mode<synchronous>, transform_indices = @transform_7, window_bounds = array<i64: 2, 64, 192>}, {pipeline_mode = #tpu.pipeline_mode<synchronous>, transform_indices = @transform_8, window_bounds = array<i64: 2, 1, 192>}, {pipeline_mode = #tpu.pipeline_mode<synchronous>, transform_indices = @transform_9, window_bounds = array<i64: 2, 64, 64>}, {pipeline_mode = #tpu.pipeline_mode<synchronous>, transform_indices = @transform_10, window_bounds = array<i64: 2, 1, 64>}, {pipeline_mode = #tpu.pipeline_mode<synchronous>, transform_indices = @transform_11, window_bounds = array<i64: 2, 1, 64>}, {pipeline_mode = #tpu.pipeline_mode<synchronous>, transform_indices = @transform_12, window_bounds = array<i64: 2, 1, 64>}, {pipeline_mode = #tpu.pipeline_mode<synchronous>, transform_indices = @transform_13, window_bounds = array<i64: 2, 64, 256>}, {pipeline_mode = #tpu.pipeline_mode<synchronous>, transform_indices = @transform_14, window_bounds = array<i64: 2, 1, 256>}, {pipeline_mode = #tpu.pipeline_mode<synchronous>, transform_indices = @transform_15, window_bounds = array<i64: 2, 256, 64>}, {pipeline_mode = #tpu.pipeline_mode<synchronous>, transform_indices = @transform_16, window_bounds = array<i64: 2, 1, 64>}, {pipeline_mode = #tpu.pipeline_mode<synchronous>, transform_indices = @transform_17, window_bounds = array<i64: 1, 64>}, {pipeline_mode = #tpu.pipeline_mode<synchronous>, transform_indices = @transform_18, window_bounds = array<i64: 1, 64>}, {pipeline_mode = #tpu.pipeline_mode<synchronous>, transform_indices = @transform_19, window_bounds = array<i64: 64, 32>}, {pipeline_mode = #tpu.pipeline_mode<synchronous>, transform_indices = @transform_20, window_bounds = array<i64: 1, 32>}, {transform_indices = @transform_21, window_bounds = array<i64: 1, 1, 32>}]} {
    %c0 = arith.constant 0 : index
    %c0_0 = arith.constant 0 : index
    %c0_1 = arith.constant 0 : index
    %0 = vector.load %arg1[%c0, %c0_0, %c0_1] : memref<1x16x48xf32, #tpu.memory_space<vmem>>, vector<1x16x48xf32>
    %1 = vector.shape_cast %0 : vector<1x16x48xf32> to vector<16x48xf32>
    %c0_2 = arith.constant 0 : index
    %c0_3 = arith.constant 0 : index
    %2 = vector.load %arg2[%c0_2, %c0_3] : memref<48x64xf32, #tpu.memory_space<vmem>>, vector<48x64xf32>
    %cst = arith.constant dense<0.000000e+00> : vector<16x64xf32>
    %3 = tpu.matmul %1, %2, %cst {dimension_numbers = #tpu.dot_dimension_numbers<[1], [0], [0], [1], [0, 0, 1, 1], [], []>} : vector<16x48xf32>, vector<48x64xf32>, vector<16x64xf32> -> vector<16x64xf32>
    %c0_4 = arith.constant 0 : index
    %c0_5 = arith.constant 0 : index
    %4 = vector.load %arg3[%c0_4, %c0_5] : memref<1x64xf32, #tpu.memory_space<vmem>>, vector<1x64xf32>
    %5 = vector.broadcast %4 : vector<1x64xf32> to vector<16x64xf32>
    %6 = arith.addf %3, %5 : vector<16x64xf32>
    %c0_6 = arith.constant 0 : index
    %c0_7 = arith.constant 0 : index
    %7 = vector.load %arg5[%c0_6, %c0_7] : memref<16x64xf32, #tpu.memory_space<vmem>>, vector<16x64xf32>
    %8 = arith.addf %6, %7 : vector<16x64xf32>
    %cst_8 = arith.constant 0.000000e+00 : f32
    %9 = vector.broadcast %cst_8 : f32 to vector<15x64xf32>
    %c0_9 = arith.constant 0 : index
    %c0_10 = arith.constant 0 : index
    %10 = vector.load %arg4[%c0_9, %c0_10] : memref<1x64xf32, #tpu.memory_space<vmem>>, vector<1x64xf32>
    %11 = tpu.concatenate %10, %8, %9 in 0 : vector<1x64xf32>, vector<16x64xf32>, vector<15x64xf32> -> vector<32x64xf32>
    %12 = tpu.iota {dimensions = array<i32: 1>} : vector<32x32xi32>
    %c17_i32 = arith.constant 17 : i32
    %13 = vector.broadcast %c17_i32 : i32 to vector<32x32xi32>
    %14 = arith.cmpi slt, %12, %13 : vector<32x32xi32>
    %c0_11 = arith.constant 0 : index
    %c0_12 = arith.constant 0 : index
    %c0_13 = arith.constant 0 : index
    %15 = vector.load %arg6[%c0_11, %c0_12, %c0_13] : memref<2x1x64xf32, #tpu.memory_space<vmem>>, vector<1x1x64xf32>
    %16 = vector.shape_cast %15 : vector<1x1x64xf32> to vector<1x64xf32>
    %c0_14 = arith.constant 0 : index
    %c0_15 = arith.constant 0 : index
    %c0_16 = arith.constant 0 : index
    %17 = vector.load %arg7[%c0_14, %c0_15, %c0_16] : memref<2x1x64xf32, #tpu.memory_space<vmem>>, vector<1x1x64xf32>
    %18 = vector.shape_cast %17 : vector<1x1x64xf32> to vector<1x64xf32>
    %cst_17 = arith.constant dense<0.000000e+00> : vector<32xf32>
    %19 = vector.multi_reduction <add>, %11, %cst_17 [1] : vector<32x64xf32> to vector<32xf32>
    %20 = vector.shape_cast %19 : vector<32xf32> to vector<32x1xf32>
    %cst_18 = arith.constant 6.400000e+01 : f32
    %21 = vector.broadcast %cst_18 : f32 to vector<32x1xf32>
    %22 = arith.divf %20, %21 : vector<32x1xf32>
    %23 = vector.broadcast %22 : vector<32x1xf32> to vector<32x64xf32>
    %24 = arith.subf %11, %23 : vector<32x64xf32>
    %25 = arith.mulf %24, %24 : vector<32x64xf32>
    %cst_19 = arith.constant dense<0.000000e+00> : vector<32xf32>
    %26 = vector.multi_reduction <add>, %25, %cst_19 [1] : vector<32x64xf32> to vector<32xf32>
    %27 = vector.shape_cast %26 : vector<32xf32> to vector<32x1xf32>
    %cst_20 = arith.constant 6.400000e+01 : f32
    %28 = vector.broadcast %cst_20 : f32 to vector<32x1xf32>
    %29 = arith.divf %27, %28 : vector<32x1xf32>
    %30 = vector.broadcast %22 : vector<32x1xf32> to vector<32x64xf32>
    %31 = arith.subf %11, %30 : vector<32x64xf32>
    %cst_21 = arith.constant 9.99999974E-6 : f32
    %32 = vector.broadcast %cst_21 : f32 to vector<32x1xf32>
    %33 = arith.addf %29, %32 : vector<32x1xf32>
    %34 = math.rsqrt %33 : vector<32x1xf32>
    %35 = vector.broadcast %34 : vector<32x1xf32> to vector<32x64xf32>
    %36 = arith.mulf %31, %35 : vector<32x64xf32>
    %37 = vector.broadcast %16 : vector<1x64xf32> to vector<32x64xf32>
    %38 = arith.mulf %36, %37 : vector<32x64xf32>
    %39 = vector.broadcast %18 : vector<1x64xf32> to vector<32x64xf32>
    %40 = arith.addf %38, %39 : vector<32x64xf32>
    %c0_22 = arith.constant 0 : index
    %c0_23 = arith.constant 0 : index
    %c0_24 = arith.constant 0 : index
    %41 = vector.load %arg8[%c0_22, %c0_23, %c0_24] : memref<2x64x192xf32, #tpu.memory_space<vmem>>, vector<1x64x192xf32>
    %42 = vector.shape_cast %41 : vector<1x64x192xf32> to vector<64x192xf32>
    %cst_25 = arith.constant dense<0.000000e+00> : vector<32x192xf32>
    %43 = tpu.matmul %40, %42, %cst_25 {dimension_numbers = #tpu.dot_dimension_numbers<[1], [0], [0], [1], [0, 0, 1, 1], [], []>} : vector<32x64xf32>, vector<64x192xf32>, vector<32x192xf32> -> vector<32x192xf32>
    %c0_26 = arith.constant 0 : index
    %c0_27 = arith.constant 0 : index
    %c0_28 = arith.constant 0 : index
    %44 = vector.load %arg9[%c0_26, %c0_27, %c0_28] : memref<2x1x192xf32, #tpu.memory_space<vmem>>, vector<1x1x192xf32>
    %45 = vector.shape_cast %44 : vector<1x1x192xf32> to vector<1x192xf32>
    %46 = vector.broadcast %45 : vector<1x192xf32> to vector<32x192xf32>
    %47 = arith.addf %43, %46 : vector<32x192xf32>
    %48 = vector.extract_strided_slice %47 {offsets = [0, 0], sizes = [32, 16], strides = [1, 1]} : vector<32x192xf32> to vector<32x16xf32>
    %49 = vector.extract_strided_slice %47 {offsets = [0, 64], sizes = [32, 16], strides = [1, 1]} : vector<32x192xf32> to vector<32x16xf32>
    %50 = vector.extract_strided_slice %47 {offsets = [0, 128], sizes = [32, 16], strides = [1, 1]} : vector<32x192xf32> to vector<32x16xf32>
    %cst_29 = arith.constant dense<0.000000e+00> : vector<32x32xf32>
    %51 = tpu.matmul %48, %49, %cst_29 {dimension_numbers = #tpu.dot_dimension_numbers<[1], [1], [0], [0], [0, 0, 1, 0], [], []>} : vector<32x16xf32>, vector<32x16xf32>, vector<32x32xf32> -> vector<32x32xf32>
    %cst_30 = arith.constant 2.500000e-01 : f32
    %52 = vector.broadcast %cst_30 : f32 to vector<32x32xf32>
    %53 = arith.mulf %51, %52 : vector<32x32xf32>
    %cst_31 = arith.constant -1.000000e+30 : f32
    %54 = vector.broadcast %cst_31 : f32 to vector<32x32xf32>
    %55 = arith.select %14, %53, %54 : vector<32x32xi1>, vector<32x32xf32>
    %cst_32 = arith.constant dense<0xFF800000> : vector<32xf32>
    %56 = vector.multi_reduction <maximumf>, %55, %cst_32 [1] : vector<32x32xf32> to vector<32xf32>
    %57 = vector.shape_cast %56 : vector<32xf32> to vector<32x1xf32>
    %58 = vector.broadcast %57 : vector<32x1xf32> to vector<32x32xf32>
    %59 = arith.subf %55, %58 : vector<32x32xf32>
    %60 = math.exp %59 : vector<32x32xf32>
    %cst_33 = arith.constant dense<0.000000e+00> : vector<32xf32>
    %61 = vector.multi_reduction <add>, %60, %cst_33 [1] : vector<32x32xf32> to vector<32xf32>
    %62 = vector.shape_cast %61 : vector<32xf32> to vector<32x1xf32>
    %63 = tpu.reciprocal %62 {approx = true} : vector<32x1xf32> -> vector<32x1xf32>
    %64 = vector.broadcast %63 : vector<32x1xf32> to vector<32x32xf32>
    %65 = arith.mulf %60, %64 : vector<32x32xf32>
    %cst_34 = arith.constant dense<0.000000e+00> : vector<32x16xf32>
    %66 = tpu.matmul %65, %50, %cst_34 {dimension_numbers = #tpu.dot_dimension_numbers<[1], [0], [0], [1], [0, 0, 1, 1], [], []>} : vector<32x32xf32>, vector<32x16xf32>, vector<32x16xf32> -> vector<32x16xf32>
    %67 = vector.extract_strided_slice %47 {offsets = [0, 16], sizes = [32, 16], strides = [1, 1]} : vector<32x192xf32> to vector<32x16xf32>
    %68 = vector.extract_strided_slice %47 {offsets = [0, 80], sizes = [32, 16], strides = [1, 1]} : vector<32x192xf32> to vector<32x16xf32>
    %69 = vector.extract_strided_slice %47 {offsets = [0, 144], sizes = [32, 16], strides = [1, 1]} : vector<32x192xf32> to vector<32x16xf32>
    %cst_35 = arith.constant dense<0.000000e+00> : vector<32x32xf32>
    %70 = tpu.matmul %67, %68, %cst_35 {dimension_numbers = #tpu.dot_dimension_numbers<[1], [1], [0], [0], [0, 0, 1, 0], [], []>} : vector<32x16xf32>, vector<32x16xf32>, vector<32x32xf32> -> vector<32x32xf32>
    %cst_36 = arith.constant 2.500000e-01 : f32
    %71 = vector.broadcast %cst_36 : f32 to vector<32x32xf32>
    %72 = arith.mulf %70, %71 : vector<32x32xf32>
    %cst_37 = arith.constant -1.000000e+30 : f32
    %73 = vector.broadcast %cst_37 : f32 to vector<32x32xf32>
    %74 = arith.select %14, %72, %73 : vector<32x32xi1>, vector<32x32xf32>
    %cst_38 = arith.constant dense<0xFF800000> : vector<32xf32>
    %75 = vector.multi_reduction <maximumf>, %74, %cst_38 [1] : vector<32x32xf32> to vector<32xf32>
    %76 = vector.shape_cast %75 : vector<32xf32> to vector<32x1xf32>
    %77 = vector.broadcast %76 : vector<32x1xf32> to vector<32x32xf32>
    %78 = arith.subf %74, %77 : vector<32x32xf32>
    %79 = math.exp %78 : vector<32x32xf32>
    %cst_39 = arith.constant dense<0.000000e+00> : vector<32xf32>
    %80 = vector.multi_reduction <add>, %79, %cst_39 [1] : vector<32x32xf32> to vector<32xf32>
    %81 = vector.shape_cast %80 : vector<32xf32> to vector<32x1xf32>
    %82 = tpu.reciprocal %81 {approx = true} : vector<32x1xf32> -> vector<32x1xf32>
    %83 = vector.broadcast %82 : vector<32x1xf32> to vector<32x32xf32>
    %84 = arith.mulf %79, %83 : vector<32x32xf32>
    %cst_40 = arith.constant dense<0.000000e+00> : vector<32x16xf32>
    %85 = tpu.matmul %84, %69, %cst_40 {dimension_numbers = #tpu.dot_dimension_numbers<[1], [0], [0], [1], [0, 0, 1, 1], [], []>} : vector<32x32xf32>, vector<32x16xf32>, vector<32x16xf32> -> vector<32x16xf32>
    %86 = vector.extract_strided_slice %47 {offsets = [0, 32], sizes = [32, 16], strides = [1, 1]} : vector<32x192xf32> to vector<32x16xf32>
    %87 = vector.extract_strided_slice %47 {offsets = [0, 96], sizes = [32, 16], strides = [1, 1]} : vector<32x192xf32> to vector<32x16xf32>
    %88 = vector.extract_strided_slice %47 {offsets = [0, 160], sizes = [32, 16], strides = [1, 1]} : vector<32x192xf32> to vector<32x16xf32>
    %cst_41 = arith.constant dense<0.000000e+00> : vector<32x32xf32>
    %89 = tpu.matmul %86, %87, %cst_41 {dimension_numbers = #tpu.dot_dimension_numbers<[1], [1], [0], [0], [0, 0, 1, 0], [], []>} : vector<32x16xf32>, vector<32x16xf32>, vector<32x32xf32> -> vector<32x32xf32>
    %cst_42 = arith.constant 2.500000e-01 : f32
    %90 = vector.broadcast %cst_42 : f32 to vector<32x32xf32>
    %91 = arith.mulf %89, %90 : vector<32x32xf32>
    %cst_43 = arith.constant -1.000000e+30 : f32
    %92 = vector.broadcast %cst_43 : f32 to vector<32x32xf32>
    %93 = arith.select %14, %91, %92 : vector<32x32xi1>, vector<32x32xf32>
    %cst_44 = arith.constant dense<0xFF800000> : vector<32xf32>
    %94 = vector.multi_reduction <maximumf>, %93, %cst_44 [1] : vector<32x32xf32> to vector<32xf32>
    %95 = vector.shape_cast %94 : vector<32xf32> to vector<32x1xf32>
    %96 = vector.broadcast %95 : vector<32x1xf32> to vector<32x32xf32>
    %97 = arith.subf %93, %96 : vector<32x32xf32>
    %98 = math.exp %97 : vector<32x32xf32>
    %cst_45 = arith.constant dense<0.000000e+00> : vector<32xf32>
    %99 = vector.multi_reduction <add>, %98, %cst_45 [1] : vector<32x32xf32> to vector<32xf32>
    %100 = vector.shape_cast %99 : vector<32xf32> to vector<32x1xf32>
    %101 = tpu.reciprocal %100 {approx = true} : vector<32x1xf32> -> vector<32x1xf32>
    %102 = vector.broadcast %101 : vector<32x1xf32> to vector<32x32xf32>
    %103 = arith.mulf %98, %102 : vector<32x32xf32>
    %cst_46 = arith.constant dense<0.000000e+00> : vector<32x16xf32>
    %104 = tpu.matmul %103, %88, %cst_46 {dimension_numbers = #tpu.dot_dimension_numbers<[1], [0], [0], [1], [0, 0, 1, 1], [], []>} : vector<32x32xf32>, vector<32x16xf32>, vector<32x16xf32> -> vector<32x16xf32>
    %105 = vector.extract_strided_slice %47 {offsets = [0, 48], sizes = [32, 16], strides = [1, 1]} : vector<32x192xf32> to vector<32x16xf32>
    %106 = vector.extract_strided_slice %47 {offsets = [0, 112], sizes = [32, 16], strides = [1, 1]} : vector<32x192xf32> to vector<32x16xf32>
    %107 = vector.extract_strided_slice %47 {offsets = [0, 176], sizes = [32, 16], strides = [1, 1]} : vector<32x192xf32> to vector<32x16xf32>
    %cst_47 = arith.constant dense<0.000000e+00> : vector<32x32xf32>
    %108 = tpu.matmul %105, %106, %cst_47 {dimension_numbers = #tpu.dot_dimension_numbers<[1], [1], [0], [0], [0, 0, 1, 0], [], []>} : vector<32x16xf32>, vector<32x16xf32>, vector<32x32xf32> -> vector<32x32xf32>
    %cst_48 = arith.constant 2.500000e-01 : f32
    %109 = vector.broadcast %cst_48 : f32 to vector<32x32xf32>
    %110 = arith.mulf %108, %109 : vector<32x32xf32>
    %cst_49 = arith.constant -1.000000e+30 : f32
    %111 = vector.broadcast %cst_49 : f32 to vector<32x32xf32>
    %112 = arith.select %14, %110, %111 : vector<32x32xi1>, vector<32x32xf32>
    %cst_50 = arith.constant dense<0xFF800000> : vector<32xf32>
    %113 = vector.multi_reduction <maximumf>, %112, %cst_50 [1] : vector<32x32xf32> to vector<32xf32>
    %114 = vector.shape_cast %113 : vector<32xf32> to vector<32x1xf32>
    %115 = vector.broadcast %114 : vector<32x1xf32> to vector<32x32xf32>
    %116 = arith.subf %112, %115 : vector<32x32xf32>
    %117 = math.exp %116 : vector<32x32xf32>
    %cst_51 = arith.constant dense<0.000000e+00> : vector<32xf32>
    %118 = vector.multi_reduction <add>, %117, %cst_51 [1] : vector<32x32xf32> to vector<32xf32>
    %119 = vector.shape_cast %118 : vector<32xf32> to vector<32x1xf32>
    %120 = tpu.reciprocal %119 {approx = true} : vector<32x1xf32> -> vector<32x1xf32>
    %121 = vector.broadcast %120 : vector<32x1xf32> to vector<32x32xf32>
    %122 = arith.mulf %117, %121 : vector<32x32xf32>
    %cst_52 = arith.constant dense<0.000000e+00> : vector<32x16xf32>
    %123 = tpu.matmul %122, %107, %cst_52 {dimension_numbers = #tpu.dot_dimension_numbers<[1], [0], [0], [1], [0, 0, 1, 1], [], []>} : vector<32x32xf32>, vector<32x16xf32>, vector<32x16xf32> -> vector<32x16xf32>
    %124 = tpu.concatenate %66, %85, %104, %123 in 1 : vector<32x16xf32>, vector<32x16xf32>, vector<32x16xf32>, vector<32x16xf32> -> vector<32x64xf32>
    %c0_53 = arith.constant 0 : index
    %c0_54 = arith.constant 0 : index
    %c0_55 = arith.constant 0 : index
    %125 = vector.load %arg10[%c0_53, %c0_54, %c0_55] : memref<2x64x64xf32, #tpu.memory_space<vmem>>, vector<1x64x64xf32>
    %126 = vector.shape_cast %125 : vector<1x64x64xf32> to vector<64x64xf32>
    %cst_56 = arith.constant dense<0.000000e+00> : vector<32x64xf32>
    %127 = tpu.matmul %124, %126, %cst_56 {dimension_numbers = #tpu.dot_dimension_numbers<[1], [0], [0], [1], [0, 0, 1, 1], [], []>} : vector<32x64xf32>, vector<64x64xf32>, vector<32x64xf32> -> vector<32x64xf32>
    %c0_57 = arith.constant 0 : index
    %c0_58 = arith.constant 0 : index
    %c0_59 = arith.constant 0 : index
    %128 = vector.load %arg11[%c0_57, %c0_58, %c0_59] : memref<2x1x64xf32, #tpu.memory_space<vmem>>, vector<1x1x64xf32>
    %129 = vector.shape_cast %128 : vector<1x1x64xf32> to vector<1x64xf32>
    %130 = vector.broadcast %129 : vector<1x64xf32> to vector<32x64xf32>
    %131 = arith.addf %127, %130 : vector<32x64xf32>
    %132 = arith.addf %11, %131 : vector<32x64xf32>
    %c0_60 = arith.constant 0 : index
    %c0_61 = arith.constant 0 : index
    %c0_62 = arith.constant 0 : index
    %133 = vector.load %arg12[%c0_60, %c0_61, %c0_62] : memref<2x1x64xf32, #tpu.memory_space<vmem>>, vector<1x1x64xf32>
    %134 = vector.shape_cast %133 : vector<1x1x64xf32> to vector<1x64xf32>
    %c0_63 = arith.constant 0 : index
    %c0_64 = arith.constant 0 : index
    %c0_65 = arith.constant 0 : index
    %135 = vector.load %arg13[%c0_63, %c0_64, %c0_65] : memref<2x1x64xf32, #tpu.memory_space<vmem>>, vector<1x1x64xf32>
    %136 = vector.shape_cast %135 : vector<1x1x64xf32> to vector<1x64xf32>
    %cst_66 = arith.constant dense<0.000000e+00> : vector<32xf32>
    %137 = vector.multi_reduction <add>, %132, %cst_66 [1] : vector<32x64xf32> to vector<32xf32>
    %138 = vector.shape_cast %137 : vector<32xf32> to vector<32x1xf32>
    %cst_67 = arith.constant 6.400000e+01 : f32
    %139 = vector.broadcast %cst_67 : f32 to vector<32x1xf32>
    %140 = arith.divf %138, %139 : vector<32x1xf32>
    %141 = vector.broadcast %140 : vector<32x1xf32> to vector<32x64xf32>
    %142 = arith.subf %132, %141 : vector<32x64xf32>
    %143 = arith.mulf %142, %142 : vector<32x64xf32>
    %cst_68 = arith.constant dense<0.000000e+00> : vector<32xf32>
    %144 = vector.multi_reduction <add>, %143, %cst_68 [1] : vector<32x64xf32> to vector<32xf32>
    %145 = vector.shape_cast %144 : vector<32xf32> to vector<32x1xf32>
    %cst_69 = arith.constant 6.400000e+01 : f32
    %146 = vector.broadcast %cst_69 : f32 to vector<32x1xf32>
    %147 = arith.divf %145, %146 : vector<32x1xf32>
    %148 = vector.broadcast %140 : vector<32x1xf32> to vector<32x64xf32>
    %149 = arith.subf %132, %148 : vector<32x64xf32>
    %cst_70 = arith.constant 9.99999974E-6 : f32
    %150 = vector.broadcast %cst_70 : f32 to vector<32x1xf32>
    %151 = arith.addf %147, %150 : vector<32x1xf32>
    %152 = math.rsqrt %151 : vector<32x1xf32>
    %153 = vector.broadcast %152 : vector<32x1xf32> to vector<32x64xf32>
    %154 = arith.mulf %149, %153 : vector<32x64xf32>
    %155 = vector.broadcast %134 : vector<1x64xf32> to vector<32x64xf32>
    %156 = arith.mulf %154, %155 : vector<32x64xf32>
    %157 = vector.broadcast %136 : vector<1x64xf32> to vector<32x64xf32>
    %158 = arith.addf %156, %157 : vector<32x64xf32>
    %c0_71 = arith.constant 0 : index
    %c0_72 = arith.constant 0 : index
    %c0_73 = arith.constant 0 : index
    %159 = vector.load %arg14[%c0_71, %c0_72, %c0_73] : memref<2x64x256xf32, #tpu.memory_space<vmem>>, vector<1x64x256xf32>
    %160 = vector.shape_cast %159 : vector<1x64x256xf32> to vector<64x256xf32>
    %cst_74 = arith.constant dense<0.000000e+00> : vector<32x256xf32>
    %161 = tpu.matmul %158, %160, %cst_74 {dimension_numbers = #tpu.dot_dimension_numbers<[1], [0], [0], [1], [0, 0, 1, 1], [], []>} : vector<32x64xf32>, vector<64x256xf32>, vector<32x256xf32> -> vector<32x256xf32>
    %c0_75 = arith.constant 0 : index
    %c0_76 = arith.constant 0 : index
    %c0_77 = arith.constant 0 : index
    %162 = vector.load %arg15[%c0_75, %c0_76, %c0_77] : memref<2x1x256xf32, #tpu.memory_space<vmem>>, vector<1x1x256xf32>
    %163 = vector.shape_cast %162 : vector<1x1x256xf32> to vector<1x256xf32>
    %164 = vector.broadcast %163 : vector<1x256xf32> to vector<32x256xf32>
    %165 = arith.addf %161, %164 : vector<32x256xf32>
    %cst_78 = arith.constant 5.000000e-01 : f32
    %166 = vector.broadcast %cst_78 : f32 to vector<32x256xf32>
    %167 = arith.mulf %166, %165 : vector<32x256xf32>
    %cst_79 = arith.constant 0.707106769 : f32
    %168 = vector.broadcast %cst_79 : f32 to vector<32x256xf32>
    %169 = arith.mulf %165, %168 : vector<32x256xf32>
    %170 = math.erf %169 : vector<32x256xf32>
    %cst_80 = arith.constant 1.000000e+00 : f32
    %171 = vector.broadcast %cst_80 : f32 to vector<32x256xf32>
    %172 = arith.addf %171, %170 : vector<32x256xf32>
    %173 = arith.mulf %167, %172 : vector<32x256xf32>
    %c0_81 = arith.constant 0 : index
    %c0_82 = arith.constant 0 : index
    %c0_83 = arith.constant 0 : index
    %174 = vector.load %arg16[%c0_81, %c0_82, %c0_83] : memref<2x256x64xf32, #tpu.memory_space<vmem>>, vector<1x256x64xf32>
    %175 = vector.shape_cast %174 : vector<1x256x64xf32> to vector<256x64xf32>
    %cst_84 = arith.constant dense<0.000000e+00> : vector<32x64xf32>
    %176 = tpu.matmul %173, %175, %cst_84 {dimension_numbers = #tpu.dot_dimension_numbers<[1], [0], [0], [1], [0, 0, 1, 1], [], []>} : vector<32x256xf32>, vector<256x64xf32>, vector<32x64xf32> -> vector<32x64xf32>
    %c0_85 = arith.constant 0 : index
    %c0_86 = arith.constant 0 : index
    %c0_87 = arith.constant 0 : index
    %177 = vector.load %arg17[%c0_85, %c0_86, %c0_87] : memref<2x1x64xf32, #tpu.memory_space<vmem>>, vector<1x1x64xf32>
    %178 = vector.shape_cast %177 : vector<1x1x64xf32> to vector<1x64xf32>
    %179 = vector.broadcast %178 : vector<1x64xf32> to vector<32x64xf32>
    %180 = arith.addf %176, %179 : vector<32x64xf32>
    %181 = arith.addf %132, %180 : vector<32x64xf32>
    %c1 = arith.constant 1 : index
    %c0_88 = arith.constant 0 : index
    %c0_89 = arith.constant 0 : index
    %182 = vector.load %arg6[%c1, %c0_88, %c0_89] : memref<2x1x64xf32, #tpu.memory_space<vmem>>, vector<1x1x64xf32>
    %183 = vector.shape_cast %182 : vector<1x1x64xf32> to vector<1x64xf32>
    %c1_90 = arith.constant 1 : index
    %c0_91 = arith.constant 0 : index
    %c0_92 = arith.constant 0 : index
    %184 = vector.load %arg7[%c1_90, %c0_91, %c0_92] : memref<2x1x64xf32, #tpu.memory_space<vmem>>, vector<1x1x64xf32>
    %185 = vector.shape_cast %184 : vector<1x1x64xf32> to vector<1x64xf32>
    %cst_93 = arith.constant dense<0.000000e+00> : vector<32xf32>
    %186 = vector.multi_reduction <add>, %181, %cst_93 [1] : vector<32x64xf32> to vector<32xf32>
    %187 = vector.shape_cast %186 : vector<32xf32> to vector<32x1xf32>
    %cst_94 = arith.constant 6.400000e+01 : f32
    %188 = vector.broadcast %cst_94 : f32 to vector<32x1xf32>
    %189 = arith.divf %187, %188 : vector<32x1xf32>
    %190 = vector.broadcast %189 : vector<32x1xf32> to vector<32x64xf32>
    %191 = arith.subf %181, %190 : vector<32x64xf32>
    %192 = arith.mulf %191, %191 : vector<32x64xf32>
    %cst_95 = arith.constant dense<0.000000e+00> : vector<32xf32>
    %193 = vector.multi_reduction <add>, %192, %cst_95 [1] : vector<32x64xf32> to vector<32xf32>
    %194 = vector.shape_cast %193 : vector<32xf32> to vector<32x1xf32>
    %cst_96 = arith.constant 6.400000e+01 : f32
    %195 = vector.broadcast %cst_96 : f32 to vector<32x1xf32>
    %196 = arith.divf %194, %195 : vector<32x1xf32>
    %197 = vector.broadcast %189 : vector<32x1xf32> to vector<32x64xf32>
    %198 = arith.subf %181, %197 : vector<32x64xf32>
    %cst_97 = arith.constant 9.99999974E-6 : f32
    %199 = vector.broadcast %cst_97 : f32 to vector<32x1xf32>
    %200 = arith.addf %196, %199 : vector<32x1xf32>
    %201 = math.rsqrt %200 : vector<32x1xf32>
    %202 = vector.broadcast %201 : vector<32x1xf32> to vector<32x64xf32>
    %203 = arith.mulf %198, %202 : vector<32x64xf32>
    %204 = vector.broadcast %183 : vector<1x64xf32> to vector<32x64xf32>
    %205 = arith.mulf %203, %204 : vector<32x64xf32>
    %206 = vector.broadcast %185 : vector<1x64xf32> to vector<32x64xf32>
    %207 = arith.addf %205, %206 : vector<32x64xf32>
    %c1_98 = arith.constant 1 : index
    %c0_99 = arith.constant 0 : index
    %c0_100 = arith.constant 0 : index
    %208 = vector.load %arg8[%c1_98, %c0_99, %c0_100] : memref<2x64x192xf32, #tpu.memory_space<vmem>>, vector<1x64x192xf32>
    %209 = vector.shape_cast %208 : vector<1x64x192xf32> to vector<64x192xf32>
    %cst_101 = arith.constant dense<0.000000e+00> : vector<32x192xf32>
    %210 = tpu.matmul %207, %209, %cst_101 {dimension_numbers = #tpu.dot_dimension_numbers<[1], [0], [0], [1], [0, 0, 1, 1], [], []>} : vector<32x64xf32>, vector<64x192xf32>, vector<32x192xf32> -> vector<32x192xf32>
    %c1_102 = arith.constant 1 : index
    %c0_103 = arith.constant 0 : index
    %c0_104 = arith.constant 0 : index
    %211 = vector.load %arg9[%c1_102, %c0_103, %c0_104] : memref<2x1x192xf32, #tpu.memory_space<vmem>>, vector<1x1x192xf32>
    %212 = vector.shape_cast %211 : vector<1x1x192xf32> to vector<1x192xf32>
    %213 = vector.broadcast %212 : vector<1x192xf32> to vector<32x192xf32>
    %214 = arith.addf %210, %213 : vector<32x192xf32>
    %215 = vector.extract_strided_slice %214 {offsets = [0, 0], sizes = [32, 16], strides = [1, 1]} : vector<32x192xf32> to vector<32x16xf32>
    %216 = vector.extract_strided_slice %214 {offsets = [0, 64], sizes = [32, 16], strides = [1, 1]} : vector<32x192xf32> to vector<32x16xf32>
    %217 = vector.extract_strided_slice %214 {offsets = [0, 128], sizes = [32, 16], strides = [1, 1]} : vector<32x192xf32> to vector<32x16xf32>
    %cst_105 = arith.constant dense<0.000000e+00> : vector<32x32xf32>
    %218 = tpu.matmul %215, %216, %cst_105 {dimension_numbers = #tpu.dot_dimension_numbers<[1], [1], [0], [0], [0, 0, 1, 0], [], []>} : vector<32x16xf32>, vector<32x16xf32>, vector<32x32xf32> -> vector<32x32xf32>
    %cst_106 = arith.constant 2.500000e-01 : f32
    %219 = vector.broadcast %cst_106 : f32 to vector<32x32xf32>
    %220 = arith.mulf %218, %219 : vector<32x32xf32>
    %cst_107 = arith.constant -1.000000e+30 : f32
    %221 = vector.broadcast %cst_107 : f32 to vector<32x32xf32>
    %222 = arith.select %14, %220, %221 : vector<32x32xi1>, vector<32x32xf32>
    %cst_108 = arith.constant dense<0xFF800000> : vector<32xf32>
    %223 = vector.multi_reduction <maximumf>, %222, %cst_108 [1] : vector<32x32xf32> to vector<32xf32>
    %224 = vector.shape_cast %223 : vector<32xf32> to vector<32x1xf32>
    %225 = vector.broadcast %224 : vector<32x1xf32> to vector<32x32xf32>
    %226 = arith.subf %222, %225 : vector<32x32xf32>
    %227 = math.exp %226 : vector<32x32xf32>
    %cst_109 = arith.constant dense<0.000000e+00> : vector<32xf32>
    %228 = vector.multi_reduction <add>, %227, %cst_109 [1] : vector<32x32xf32> to vector<32xf32>
    %229 = vector.shape_cast %228 : vector<32xf32> to vector<32x1xf32>
    %230 = tpu.reciprocal %229 {approx = true} : vector<32x1xf32> -> vector<32x1xf32>
    %231 = vector.broadcast %230 : vector<32x1xf32> to vector<32x32xf32>
    %232 = arith.mulf %227, %231 : vector<32x32xf32>
    %cst_110 = arith.constant dense<0.000000e+00> : vector<32x16xf32>
    %233 = tpu.matmul %232, %217, %cst_110 {dimension_numbers = #tpu.dot_dimension_numbers<[1], [0], [0], [1], [0, 0, 1, 1], [], []>} : vector<32x32xf32>, vector<32x16xf32>, vector<32x16xf32> -> vector<32x16xf32>
    %234 = vector.extract_strided_slice %214 {offsets = [0, 16], sizes = [32, 16], strides = [1, 1]} : vector<32x192xf32> to vector<32x16xf32>
    %235 = vector.extract_strided_slice %214 {offsets = [0, 80], sizes = [32, 16], strides = [1, 1]} : vector<32x192xf32> to vector<32x16xf32>
    %236 = vector.extract_strided_slice %214 {offsets = [0, 144], sizes = [32, 16], strides = [1, 1]} : vector<32x192xf32> to vector<32x16xf32>
    %cst_111 = arith.constant dense<0.000000e+00> : vector<32x32xf32>
    %237 = tpu.matmul %234, %235, %cst_111 {dimension_numbers = #tpu.dot_dimension_numbers<[1], [1], [0], [0], [0, 0, 1, 0], [], []>} : vector<32x16xf32>, vector<32x16xf32>, vector<32x32xf32> -> vector<32x32xf32>
    %cst_112 = arith.constant 2.500000e-01 : f32
    %238 = vector.broadcast %cst_112 : f32 to vector<32x32xf32>
    %239 = arith.mulf %237, %238 : vector<32x32xf32>
    %cst_113 = arith.constant -1.000000e+30 : f32
    %240 = vector.broadcast %cst_113 : f32 to vector<32x32xf32>
    %241 = arith.select %14, %239, %240 : vector<32x32xi1>, vector<32x32xf32>
    %cst_114 = arith.constant dense<0xFF800000> : vector<32xf32>
    %242 = vector.multi_reduction <maximumf>, %241, %cst_114 [1] : vector<32x32xf32> to vector<32xf32>
    %243 = vector.shape_cast %242 : vector<32xf32> to vector<32x1xf32>
    %244 = vector.broadcast %243 : vector<32x1xf32> to vector<32x32xf32>
    %245 = arith.subf %241, %244 : vector<32x32xf32>
    %246 = math.exp %245 : vector<32x32xf32>
    %cst_115 = arith.constant dense<0.000000e+00> : vector<32xf32>
    %247 = vector.multi_reduction <add>, %246, %cst_115 [1] : vector<32x32xf32> to vector<32xf32>
    %248 = vector.shape_cast %247 : vector<32xf32> to vector<32x1xf32>
    %249 = tpu.reciprocal %248 {approx = true} : vector<32x1xf32> -> vector<32x1xf32>
    %250 = vector.broadcast %249 : vector<32x1xf32> to vector<32x32xf32>
    %251 = arith.mulf %246, %250 : vector<32x32xf32>
    %cst_116 = arith.constant dense<0.000000e+00> : vector<32x16xf32>
    %252 = tpu.matmul %251, %236, %cst_116 {dimension_numbers = #tpu.dot_dimension_numbers<[1], [0], [0], [1], [0, 0, 1, 1], [], []>} : vector<32x32xf32>, vector<32x16xf32>, vector<32x16xf32> -> vector<32x16xf32>
    %253 = vector.extract_strided_slice %214 {offsets = [0, 32], sizes = [32, 16], strides = [1, 1]} : vector<32x192xf32> to vector<32x16xf32>
    %254 = vector.extract_strided_slice %214 {offsets = [0, 96], sizes = [32, 16], strides = [1, 1]} : vector<32x192xf32> to vector<32x16xf32>
    %255 = vector.extract_strided_slice %214 {offsets = [0, 160], sizes = [32, 16], strides = [1, 1]} : vector<32x192xf32> to vector<32x16xf32>
    %cst_117 = arith.constant dense<0.000000e+00> : vector<32x32xf32>
    %256 = tpu.matmul %253, %254, %cst_117 {dimension_numbers = #tpu.dot_dimension_numbers<[1], [1], [0], [0], [0, 0, 1, 0], [], []>} : vector<32x16xf32>, vector<32x16xf32>, vector<32x32xf32> -> vector<32x32xf32>
    %cst_118 = arith.constant 2.500000e-01 : f32
    %257 = vector.broadcast %cst_118 : f32 to vector<32x32xf32>
    %258 = arith.mulf %256, %257 : vector<32x32xf32>
    %cst_119 = arith.constant -1.000000e+30 : f32
    %259 = vector.broadcast %cst_119 : f32 to vector<32x32xf32>
    %260 = arith.select %14, %258, %259 : vector<32x32xi1>, vector<32x32xf32>
    %cst_120 = arith.constant dense<0xFF800000> : vector<32xf32>
    %261 = vector.multi_reduction <maximumf>, %260, %cst_120 [1] : vector<32x32xf32> to vector<32xf32>
    %262 = vector.shape_cast %261 : vector<32xf32> to vector<32x1xf32>
    %263 = vector.broadcast %262 : vector<32x1xf32> to vector<32x32xf32>
    %264 = arith.subf %260, %263 : vector<32x32xf32>
    %265 = math.exp %264 : vector<32x32xf32>
    %cst_121 = arith.constant dense<0.000000e+00> : vector<32xf32>
    %266 = vector.multi_reduction <add>, %265, %cst_121 [1] : vector<32x32xf32> to vector<32xf32>
    %267 = vector.shape_cast %266 : vector<32xf32> to vector<32x1xf32>
    %268 = tpu.reciprocal %267 {approx = true} : vector<32x1xf32> -> vector<32x1xf32>
    %269 = vector.broadcast %268 : vector<32x1xf32> to vector<32x32xf32>
    %270 = arith.mulf %265, %269 : vector<32x32xf32>
    %cst_122 = arith.constant dense<0.000000e+00> : vector<32x16xf32>
    %271 = tpu.matmul %270, %255, %cst_122 {dimension_numbers = #tpu.dot_dimension_numbers<[1], [0], [0], [1], [0, 0, 1, 1], [], []>} : vector<32x32xf32>, vector<32x16xf32>, vector<32x16xf32> -> vector<32x16xf32>
    %272 = vector.extract_strided_slice %214 {offsets = [0, 48], sizes = [32, 16], strides = [1, 1]} : vector<32x192xf32> to vector<32x16xf32>
    %273 = vector.extract_strided_slice %214 {offsets = [0, 112], sizes = [32, 16], strides = [1, 1]} : vector<32x192xf32> to vector<32x16xf32>
    %274 = vector.extract_strided_slice %214 {offsets = [0, 176], sizes = [32, 16], strides = [1, 1]} : vector<32x192xf32> to vector<32x16xf32>
    %cst_123 = arith.constant dense<0.000000e+00> : vector<32x32xf32>
    %275 = tpu.matmul %272, %273, %cst_123 {dimension_numbers = #tpu.dot_dimension_numbers<[1], [1], [0], [0], [0, 0, 1, 0], [], []>} : vector<32x16xf32>, vector<32x16xf32>, vector<32x32xf32> -> vector<32x32xf32>
    %cst_124 = arith.constant 2.500000e-01 : f32
    %276 = vector.broadcast %cst_124 : f32 to vector<32x32xf32>
    %277 = arith.mulf %275, %276 : vector<32x32xf32>
    %cst_125 = arith.constant -1.000000e+30 : f32
    %278 = vector.broadcast %cst_125 : f32 to vector<32x32xf32>
    %279 = arith.select %14, %277, %278 : vector<32x32xi1>, vector<32x32xf32>
    %cst_126 = arith.constant dense<0xFF800000> : vector<32xf32>
    %280 = vector.multi_reduction <maximumf>, %279, %cst_126 [1] : vector<32x32xf32> to vector<32xf32>
    %281 = vector.shape_cast %280 : vector<32xf32> to vector<32x1xf32>
    %282 = vector.broadcast %281 : vector<32x1xf32> to vector<32x32xf32>
    %283 = arith.subf %279, %282 : vector<32x32xf32>
    %284 = math.exp %283 : vector<32x32xf32>
    %cst_127 = arith.constant dense<0.000000e+00> : vector<32xf32>
    %285 = vector.multi_reduction <add>, %284, %cst_127 [1] : vector<32x32xf32> to vector<32xf32>
    %286 = vector.shape_cast %285 : vector<32xf32> to vector<32x1xf32>
    %287 = tpu.reciprocal %286 {approx = true} : vector<32x1xf32> -> vector<32x1xf32>
    %288 = vector.broadcast %287 : vector<32x1xf32> to vector<32x32xf32>
    %289 = arith.mulf %284, %288 : vector<32x32xf32>
    %cst_128 = arith.constant dense<0.000000e+00> : vector<32x16xf32>
    %290 = tpu.matmul %289, %274, %cst_128 {dimension_numbers = #tpu.dot_dimension_numbers<[1], [0], [0], [1], [0, 0, 1, 1], [], []>} : vector<32x32xf32>, vector<32x16xf32>, vector<32x16xf32> -> vector<32x16xf32>
    %291 = tpu.concatenate %233, %252, %271, %290 in 1 : vector<32x16xf32>, vector<32x16xf32>, vector<32x16xf32>, vector<32x16xf32> -> vector<32x64xf32>
    %c1_129 = arith.constant 1 : index
    %c0_130 = arith.constant 0 : index
    %c0_131 = arith.constant 0 : index
    %292 = vector.load %arg10[%c1_129, %c0_130, %c0_131] : memref<2x64x64xf32, #tpu.memory_space<vmem>>, vector<1x64x64xf32>
    %293 = vector.shape_cast %292 : vector<1x64x64xf32> to vector<64x64xf32>
    %cst_132 = arith.constant dense<0.000000e+00> : vector<32x64xf32>
    %294 = tpu.matmul %291, %293, %cst_132 {dimension_numbers = #tpu.dot_dimension_numbers<[1], [0], [0], [1], [0, 0, 1, 1], [], []>} : vector<32x64xf32>, vector<64x64xf32>, vector<32x64xf32> -> vector<32x64xf32>
    %c1_133 = arith.constant 1 : index
    %c0_134 = arith.constant 0 : index
    %c0_135 = arith.constant 0 : index
    %295 = vector.load %arg11[%c1_133, %c0_134, %c0_135] : memref<2x1x64xf32, #tpu.memory_space<vmem>>, vector<1x1x64xf32>
    %296 = vector.shape_cast %295 : vector<1x1x64xf32> to vector<1x64xf32>
    %297 = vector.broadcast %296 : vector<1x64xf32> to vector<32x64xf32>
    %298 = arith.addf %294, %297 : vector<32x64xf32>
    %299 = arith.addf %181, %298 : vector<32x64xf32>
    %c1_136 = arith.constant 1 : index
    %c0_137 = arith.constant 0 : index
    %c0_138 = arith.constant 0 : index
    %300 = vector.load %arg12[%c1_136, %c0_137, %c0_138] : memref<2x1x64xf32, #tpu.memory_space<vmem>>, vector<1x1x64xf32>
    %301 = vector.shape_cast %300 : vector<1x1x64xf32> to vector<1x64xf32>
    %c1_139 = arith.constant 1 : index
    %c0_140 = arith.constant 0 : index
    %c0_141 = arith.constant 0 : index
    %302 = vector.load %arg13[%c1_139, %c0_140, %c0_141] : memref<2x1x64xf32, #tpu.memory_space<vmem>>, vector<1x1x64xf32>
    %303 = vector.shape_cast %302 : vector<1x1x64xf32> to vector<1x64xf32>
    %cst_142 = arith.constant dense<0.000000e+00> : vector<32xf32>
    %304 = vector.multi_reduction <add>, %299, %cst_142 [1] : vector<32x64xf32> to vector<32xf32>
    %305 = vector.shape_cast %304 : vector<32xf32> to vector<32x1xf32>
    %cst_143 = arith.constant 6.400000e+01 : f32
    %306 = vector.broadcast %cst_143 : f32 to vector<32x1xf32>
    %307 = arith.divf %305, %306 : vector<32x1xf32>
    %308 = vector.broadcast %307 : vector<32x1xf32> to vector<32x64xf32>
    %309 = arith.subf %299, %308 : vector<32x64xf32>
    %310 = arith.mulf %309, %309 : vector<32x64xf32>
    %cst_144 = arith.constant dense<0.000000e+00> : vector<32xf32>
    %311 = vector.multi_reduction <add>, %310, %cst_144 [1] : vector<32x64xf32> to vector<32xf32>
    %312 = vector.shape_cast %311 : vector<32xf32> to vector<32x1xf32>
    %cst_145 = arith.constant 6.400000e+01 : f32
    %313 = vector.broadcast %cst_145 : f32 to vector<32x1xf32>
    %314 = arith.divf %312, %313 : vector<32x1xf32>
    %315 = vector.broadcast %307 : vector<32x1xf32> to vector<32x64xf32>
    %316 = arith.subf %299, %315 : vector<32x64xf32>
    %cst_146 = arith.constant 9.99999974E-6 : f32
    %317 = vector.broadcast %cst_146 : f32 to vector<32x1xf32>
    %318 = arith.addf %314, %317 : vector<32x1xf32>
    %319 = math.rsqrt %318 : vector<32x1xf32>
    %320 = vector.broadcast %319 : vector<32x1xf32> to vector<32x64xf32>
    %321 = arith.mulf %316, %320 : vector<32x64xf32>
    %322 = vector.broadcast %301 : vector<1x64xf32> to vector<32x64xf32>
    %323 = arith.mulf %321, %322 : vector<32x64xf32>
    %324 = vector.broadcast %303 : vector<1x64xf32> to vector<32x64xf32>
    %325 = arith.addf %323, %324 : vector<32x64xf32>
    %c1_147 = arith.constant 1 : index
    %c0_148 = arith.constant 0 : index
    %c0_149 = arith.constant 0 : index
    %326 = vector.load %arg14[%c1_147, %c0_148, %c0_149] : memref<2x64x256xf32, #tpu.memory_space<vmem>>, vector<1x64x256xf32>
    %327 = vector.shape_cast %326 : vector<1x64x256xf32> to vector<64x256xf32>
    %cst_150 = arith.constant dense<0.000000e+00> : vector<32x256xf32>
    %328 = tpu.matmul %325, %327, %cst_150 {dimension_numbers = #tpu.dot_dimension_numbers<[1], [0], [0], [1], [0, 0, 1, 1], [], []>} : vector<32x64xf32>, vector<64x256xf32>, vector<32x256xf32> -> vector<32x256xf32>
    %c1_151 = arith.constant 1 : index
    %c0_152 = arith.constant 0 : index
    %c0_153 = arith.constant 0 : index
    %329 = vector.load %arg15[%c1_151, %c0_152, %c0_153] : memref<2x1x256xf32, #tpu.memory_space<vmem>>, vector<1x1x256xf32>
    %330 = vector.shape_cast %329 : vector<1x1x256xf32> to vector<1x256xf32>
    %331 = vector.broadcast %330 : vector<1x256xf32> to vector<32x256xf32>
    %332 = arith.addf %328, %331 : vector<32x256xf32>
    %cst_154 = arith.constant 5.000000e-01 : f32
    %333 = vector.broadcast %cst_154 : f32 to vector<32x256xf32>
    %334 = arith.mulf %333, %332 : vector<32x256xf32>
    %cst_155 = arith.constant 0.707106769 : f32
    %335 = vector.broadcast %cst_155 : f32 to vector<32x256xf32>
    %336 = arith.mulf %332, %335 : vector<32x256xf32>
    %337 = math.erf %336 : vector<32x256xf32>
    %cst_156 = arith.constant 1.000000e+00 : f32
    %338 = vector.broadcast %cst_156 : f32 to vector<32x256xf32>
    %339 = arith.addf %338, %337 : vector<32x256xf32>
    %340 = arith.mulf %334, %339 : vector<32x256xf32>
    %c1_157 = arith.constant 1 : index
    %c0_158 = arith.constant 0 : index
    %c0_159 = arith.constant 0 : index
    %341 = vector.load %arg16[%c1_157, %c0_158, %c0_159] : memref<2x256x64xf32, #tpu.memory_space<vmem>>, vector<1x256x64xf32>
    %342 = vector.shape_cast %341 : vector<1x256x64xf32> to vector<256x64xf32>
    %cst_160 = arith.constant dense<0.000000e+00> : vector<32x64xf32>
    %343 = tpu.matmul %340, %342, %cst_160 {dimension_numbers = #tpu.dot_dimension_numbers<[1], [0], [0], [1], [0, 0, 1, 1], [], []>} : vector<32x256xf32>, vector<256x64xf32>, vector<32x64xf32> -> vector<32x64xf32>
    %c1_161 = arith.constant 1 : index
    %c0_162 = arith.constant 0 : index
    %c0_163 = arith.constant 0 : index
    %344 = vector.load %arg17[%c1_161, %c0_162, %c0_163] : memref<2x1x64xf32, #tpu.memory_space<vmem>>, vector<1x1x64xf32>
    %345 = vector.shape_cast %344 : vector<1x1x64xf32> to vector<1x64xf32>
    %346 = vector.broadcast %345 : vector<1x64xf32> to vector<32x64xf32>
    %347 = arith.addf %343, %346 : vector<32x64xf32>
    %348 = arith.addf %299, %347 : vector<32x64xf32>
    %349 = vector.extract_strided_slice %348 {offsets = [0, 0], sizes = [1, 64], strides = [1, 1]} : vector<32x64xf32> to vector<1x64xf32>
    %c0_164 = arith.constant 0 : index
    %c0_165 = arith.constant 0 : index
    %350 = vector.load %arg18[%c0_164, %c0_165] : memref<1x64xf32, #tpu.memory_space<vmem>>, vector<1x64xf32>
    %c0_166 = arith.constant 0 : index
    %c0_167 = arith.constant 0 : index
    %351 = vector.load %arg19[%c0_166, %c0_167] : memref<1x64xf32, #tpu.memory_space<vmem>>, vector<1x64xf32>
    %cst_168 = arith.constant dense<0.000000e+00> : vector<1xf32>
    %352 = vector.multi_reduction <add>, %349, %cst_168 [1] : vector<1x64xf32> to vector<1xf32>
    %353 = vector.shape_cast %352 : vector<1xf32> to vector<1x1xf32>
    %cst_169 = arith.constant 6.400000e+01 : f32
    %354 = vector.broadcast %cst_169 : f32 to vector<1x1xf32>
    %355 = arith.divf %353, %354 : vector<1x1xf32>
    %356 = vector.broadcast %355 : vector<1x1xf32> to vector<1x64xf32>
    %357 = arith.subf %349, %356 : vector<1x64xf32>
    %358 = arith.mulf %357, %357 : vector<1x64xf32>
    %cst_170 = arith.constant dense<0.000000e+00> : vector<1xf32>
    %359 = vector.multi_reduction <add>, %358, %cst_170 [1] : vector<1x64xf32> to vector<1xf32>
    %360 = vector.shape_cast %359 : vector<1xf32> to vector<1x1xf32>
    %cst_171 = arith.constant 6.400000e+01 : f32
    %361 = vector.broadcast %cst_171 : f32 to vector<1x1xf32>
    %362 = arith.divf %360, %361 : vector<1x1xf32>
    %363 = vector.broadcast %355 : vector<1x1xf32> to vector<1x64xf32>
    %364 = arith.subf %349, %363 : vector<1x64xf32>
    %cst_172 = arith.constant 9.99999974E-6 : f32
    %365 = vector.broadcast %cst_172 : f32 to vector<1x1xf32>
    %366 = arith.addf %362, %365 : vector<1x1xf32>
    %367 = math.rsqrt %366 : vector<1x1xf32>
    %368 = vector.broadcast %367 : vector<1x1xf32> to vector<1x64xf32>
    %369 = arith.mulf %364, %368 : vector<1x64xf32>
    %370 = arith.mulf %369, %350 : vector<1x64xf32>
    %371 = arith.addf %370, %351 : vector<1x64xf32>
    %c0_173 = arith.constant 0 : index
    %c0_174 = arith.constant 0 : index
    %372 = vector.load %arg20[%c0_173, %c0_174] : memref<64x32xf32, #tpu.memory_space<vmem>>, vector<64x32xf32>
    %cst_175 = arith.constant dense<0.000000e+00> : vector<1x32xf32>
    %373 = tpu.matmul %371, %372, %cst_175 {dimension_numbers = #tpu.dot_dimension_numbers<[1], [0], [0], [1], [0, 0, 1, 1], [], []>} : vector<1x64xf32>, vector<64x32xf32>, vector<1x32xf32> -> vector<1x32xf32>
    %c0_176 = arith.constant 0 : index
    %c0_177 = arith.constant 0 : index
    %374 = vector.load %arg21[%c0_176, %c0_177] : memref<1x32xf32, #tpu.memory_space<vmem>>, vector<1x32xf32>
    %375 = arith.addf %373, %374 : vector<1x32xf32>
    %c0_178 = arith.constant 0 : index
    %c0_179 = arith.constant 0 : index
    %c0_180 = arith.constant 0 : index
    %376 = vector.load %arg22[%c0_178, %c0_179, %c0_180] : memref<1x1x32xf32, #tpu.memory_space<vmem>>, vector<1x1x32xf32>
    %377 = vector.shape_cast %376 : vector<1x1x32xf32> to vector<1x32xf32>
    %378 = vector.shape_cast %375 : vector<1x32xf32> to vector<1x1x32xf32>
    tpu.vector_store %arg22[%c0_178, %c0_179, %c0_180], %378 {strides = array<i32>} : memref<1x1x32xf32, #tpu.memory_space<vmem>>, vector<1x1x32xf32>,
    return
  }
  func.func @transform_0(%arg0: i32) -> (i32, i32, i32) {
    %c0_i32 = arith.constant 0 : i32
    %c0_i32_0 = arith.constant 0 : i32
    %c0_i32_1 = arith.constant 0 : i32
    return %arg0, %c0_i32, %c0_i32_0 : i32, i32, i32
  }
  func.func @transform_1(%arg0: i32) -> (i32, i32) {
    %c0_i32 = arith.constant 0 : i32
    %c0_i32_0 = arith.constant 0 : i32
    %c0_i32_1 = arith.constant 0 : i32
    return %c0_i32, %c0_i32_0 : i32, i32
  }
  func.func @transform_2(%arg0: i32) -> (i32, i32) {
    %c0_i32 = arith.constant 0 : i32
    %c0_i32_0 = arith.constant 0 : i32
    %c0_i32_1 = arith.constant 0 : i32
    return %c0_i32, %c0_i32_0 : i32, i32
  }
  func.func @transform_3(%arg0: i32) -> (i32, i32) {
    %c0_i32 = arith.constant 0 : i32
    %c0_i32_0 = arith.constant 0 : i32
    %c0_i32_1 = arith.constant 0 : i32
    return %c0_i32, %c0_i32_0 : i32, i32
  }
  func.func @transform_4(%arg0: i32) -> (i32, i32) {
    %c0_i32 = arith.constant 0 : i32
    %c0_i32_0 = arith.constant 0 : i32
    %c0_i32_1 = arith.constant 0 : i32
    return %c0_i32, %c0_i32_0 : i32, i32
  }
  func.func @transform_5(%arg0: i32) -> (i32, i32, i32) {
    %c0_i32 = arith.constant 0 : i32
    %c0_i32_0 = arith.constant 0 : i32
    %c0_i32_1 = arith.constant 0 : i32
    %c0_i32_2 = arith.constant 0 : i32
    return %c0_i32, %c0_i32_0, %c0_i32_1 : i32, i32, i32
  }
  func.func @transform_6(%arg0: i32) -> (i32, i32, i32) {
    %c0_i32 = arith.constant 0 : i32
    %c0_i32_0 = arith.constant 0 : i32
    %c0_i32_1 = arith.constant 0 : i32
    %c0_i32_2 = arith.constant 0 : i32
    return %c0_i32, %c0_i32_0, %c0_i32_1 : i32, i32, i32
  }
  func.func @transform_7(%arg0: i32) -> (i32, i32, i32) {
    %c0_i32 = arith.constant 0 : i32
    %c0_i32_0 = arith.constant 0 : i32
    %c0_i32_1 = arith.constant 0 : i32
    %c0_i32_2 = arith.constant 0 : i32
    return %c0_i32, %c0_i32_0, %c0_i32_1 : i32, i32, i32
  }
  func.func @transform_8(%arg0: i32) -> (i32, i32, i32) {
    %c0_i32 = arith.constant 0 : i32
    %c0_i32_0 = arith.constant 0 : i32
    %c0_i32_1 = arith.constant 0 : i32
    %c0_i32_2 = arith.constant 0 : i32
    return %c0_i32, %c0_i32_0, %c0_i32_1 : i32, i32, i32
  }
  func.func @transform_9(%arg0: i32) -> (i32, i32, i32) {
    %c0_i32 = arith.constant 0 : i32
    %c0_i32_0 = arith.constant 0 : i32
    %c0_i32_1 = arith.constant 0 : i32
    %c0_i32_2 = arith.constant 0 : i32
    return %c0_i32, %c0_i32_0, %c0_i32_1 : i32, i32, i32
  }
  func.func @transform_10(%arg0: i32) -> (i32, i32, i32) {
    %c0_i32 = arith.constant 0 : i32
    %c0_i32_0 = arith.constant 0 : i32
    %c0_i32_1 = arith.constant 0 : i32
    %c0_i32_2 = arith.constant 0 : i32
    return %c0_i32, %c0_i32_0, %c0_i32_1 : i32, i32, i32
  }
  func.func @transform_11(%arg0: i32) -> (i32, i32, i32) {
    %c0_i32 = arith.constant 0 : i32
    %c0_i32_0 = arith.constant 0 : i32
    %c0_i32_1 = arith.constant 0 : i32
    %c0_i32_2 = arith.constant 0 : i32
    return %c0_i32, %c0_i32_0, %c0_i32_1 : i32, i32, i32
  }
  func.func @transform_12(%arg0: i32) -> (i32, i32, i32) {
    %c0_i32 = arith.constant 0 : i32
    %c0_i32_0 = arith.constant 0 : i32
    %c0_i32_1 = arith.constant 0 : i32
    %c0_i32_2 = arith.constant 0 : i32
    return %c0_i32, %c0_i32_0, %c0_i32_1 : i32, i32, i32
  }
  func.func @transform_13(%arg0: i32) -> (i32, i32, i32) {
    %c0_i32 = arith.constant 0 : i32
    %c0_i32_0 = arith.constant 0 : i32
    %c0_i32_1 = arith.constant 0 : i32
    %c0_i32_2 = arith.constant 0 : i32
    return %c0_i32, %c0_i32_0, %c0_i32_1 : i32, i32, i32
  }
  func.func @transform_14(%arg0: i32) -> (i32, i32, i32) {
    %c0_i32 = arith.constant 0 : i32
    %c0_i32_0 = arith.constant 0 : i32
    %c0_i32_1 = arith.constant 0 : i32
    %c0_i32_2 = arith.constant 0 : i32
    return %c0_i32, %c0_i32_0, %c0_i32_1 : i32, i32, i32
  }
  func.func @transform_15(%arg0: i32) -> (i32, i32, i32) {
    %c0_i32 = arith.constant 0 : i32
    %c0_i32_0 = arith.constant 0 : i32
    %c0_i32_1 = arith.constant 0 : i32
    %c0_i32_2 = arith.constant 0 : i32
    return %c0_i32, %c0_i32_0, %c0_i32_1 : i32, i32, i32
  }
  func.func @transform_16(%arg0: i32) -> (i32, i32, i32) {
    %c0_i32 = arith.constant 0 : i32
    %c0_i32_0 = arith.constant 0 : i32
    %c0_i32_1 = arith.constant 0 : i32
    %c0_i32_2 = arith.constant 0 : i32
    return %c0_i32, %c0_i32_0, %c0_i32_1 : i32, i32, i32
  }
  func.func @transform_17(%arg0: i32) -> (i32, i32) {
    %c0_i32 = arith.constant 0 : i32
    %c0_i32_0 = arith.constant 0 : i32
    %c0_i32_1 = arith.constant 0 : i32
    return %c0_i32, %c0_i32_0 : i32, i32
  }
  func.func @transform_18(%arg0: i32) -> (i32, i32) {
    %c0_i32 = arith.constant 0 : i32
    %c0_i32_0 = arith.constant 0 : i32
    %c0_i32_1 = arith.constant 0 : i32
    return %c0_i32, %c0_i32_0 : i32, i32
  }
  func.func @transform_19(%arg0: i32) -> (i32, i32) {
    %c0_i32 = arith.constant 0 : i32
    %c0_i32_0 = arith.constant 0 : i32
    %c0_i32_1 = arith.constant 0 : i32
    return %c0_i32, %c0_i32_0 : i32, i32
  }
  func.func @transform_20(%arg0: i32) -> (i32, i32) {
    %c0_i32 = arith.constant 0 : i32
    %c0_i32_0 = arith.constant 0 : i32
    %c0_i32_1 = arith.constant 0 : i32
    return %c0_i32, %c0_i32_0 : i32, i32
  }
  func.func @transform_21(%arg0: i32) -> (i32, i32, i32) {
    %c0_i32 = arith.constant 0 : i32
    %c0_i32_0 = arith.constant 0 : i32
    %c0_i32_1 = arith.constant 0 : i32
    return %arg0, %c0_i32, %c0_i32_0 : i32, i32, i32
  }
}

</mosaic_0001>

<bundles_post_ra>
// kernel: _lambda_.1
= control target key start
LH: loop header
LB: loop body
LE: loop exit
PB: predicated region body
PF: predicated region fallthrough
CT: control target
= control target key end

     0   :  { %s7504_s0 = inlined_call_operand.vmem [shape: f32[2,16,48], index: 0, kind: input, shape index: {}]   ;;  %s7505_s1 = inlined_call_operand.vmem [shape: f32[48,64], index: 1, kind: input, shape index: {}]   ;;  %s7506_s2 = inlined_call_operand.vmem [shape: f32[1,64], index: 2, kind: input, shape index: {}, may-alias: {2,18}]   ;;  %s7507_s3 = inlined_call_operand.vmem [shape: f32[1,64], index: 3, kind: input, shape index: {}]   ;;  %s7508_s4 = inlined_call_operand.vmem [shape: f32[16,64], index: 4, kind: input, shape index: {}]   ;;  %s7509_s5 = inlined_call_operand.vmem [shape: f32[2,1,64], index: 5, kind: input, shape index: {}, may-alias: {5,11}]   ;;  %s7510_s6 = inlined_call_operand.vmem [shape: f32[2,1,64], index: 6, kind: input, shape index: {}, may-alias: {6,10,12,16}]   ;;  %s7511_s7 = inlined_call_operand.vmem [shape: f32[2,64,192], index: 7, kind: input, shape index: {}]   ;;  %s7512_s8 = inlined_call_operand.vmem [shape: f32[2,1,192], index: 8, kind: input, shape index: {}]   ;;  %s7513_s9 = inlined_call_operand.vmem [shape: f32[2,64,64], index: 9, kind: input, shape index: {}]   ;;  %s7514_s10 = inlined_call_operand.vmem [shape: f32[2,1,64], index: 10, kind: input, shape index: {}, may-alias: {6,10,12,16}]   ;;  %s7515_s11 = inlined_call_operand.vmem [shape: f32[2,1,64], index: 11, kind: input, shape index: {}, may-alias: {5,11}]   ;;  %s7516_s12 = inlined_call_operand.vmem [shape: f32[2,1,64], index: 12, kind: input, shape index: {}, may-alias: {6,10,12,16}]   ;;  %s7517_s13 = inlined_call_operand.vmem [shape: f32[2,64,256], index: 13, kind: input, shape index: {}]   ;;  %s7518_s14 = inlined_call_operand.vmem [shape: f32[2,1,256], index: 14, kind: input, shape index: {}]   ;;  %s7519_s15 = inlined_call_operand.vmem [shape: f32[2,256,64], index: 15, kind: input, shape index: {}]   ;;  %s7520_s16 = inlined_call_operand.vmem [shape: f32[2,1,64], index: 16, kind: input, shape index: {}, may-alias: {6,10,12,16}]   ;;  %s7521_s17 = inlined_call_operand.vmem [shape: f32[1,64], index: 17, kind: input, shape index: {}]   ;;  %s7522_s18 = inlined_call_operand.vmem [shape: f32[1,64], index: 18, kind: input, shape index: {}, may-alias: {2,18}]   ;;  %s7523_s19 = inlined_call_operand.vmem [shape: f32[64,32], index: 19, kind: input, shape index: {}]   ;;  %s7524_s20 = inlined_call_operand.vmem [shape: f32[1,32], index: 20, kind: input, shape index: {}]   ;;  %s7525_s21 = inlined_call_operand.hbm [shape: f32[2,1,32], index: 21, kind: output, shape index: {}]  }
   0x1   :  { %7550 = sst [smem:[#allocation11_spill]] %s7504_s0 }
   0x2   :  { %7551 = sst [smem:[#allocation12_spill]] %s7505_s1 }
   0x3   :  { %7552 = sst [smem:[#allocation13_spill]] %s7506_s2 }
   0x4   :  { %7553 = sst [smem:[#allocation14_spill]] %s7507_s3 }
   0x5   :  { %7554 = sst [smem:[#allocation15_spill]] %s7508_s4 }
   0x6   :  { %7555 = sst [smem:[#allocation16_spill]] %s7509_s5 }
   0x7   :  { %7556 = sst [smem:[#allocation17_spill]] %s7510_s6 }
   0x8   :  { %7557 = sst [smem:[#allocation18_spill]] %s7511_s7 }
   0x9   :  { %7558 = sst [smem:[#allocation19_spill]] %s7512_s8 }
   0xa   :  { %7559 = sst [smem:[#allocation20_spill]] %s7525_s21 }
   0xb   :  { %26 = vsyncpa [#allocation3], 0 }
   0xc   :  { %28 = vsyncpa [#allocation3 + $0x1], 0  ;;  %s5858_s2 = smov 0   ;;  %s5860_s25 = smov 0  }
   0xd   :  { %s5862_s26 = smov 0   ;;  %s5864_s27 = smov 0  }
   0xe LB: > { %7560 = sst [smem:[#allocation5_spill]] %s5724_s2  ;;  %s5879_s3 = sadd.s32 4294967295, %s5736_s27   ;;  %s5736_s27 = sphi %s5864_s27, %s7588_s27   ;;  %s5732_s26 = sphi %s5862_s26, %s7590_s26   ;;  %s5728_s25 = sphi %s5860_s25, %s7592_s25   ;;  %s5724_s2 = sphi %s5858_s2, %s7591_s2  }
   0xf   : > { %7561 = sst [smem:[#allocation6_spill]] %s5732_s26  ;;  %s4649_s28 = sadd.s32 4294967294, %s5736_s27  }
  0x10   : > { %7562 = sst [smem:[#allocation7_spill]] %s5736_s27  ;;  %s5883_s29 = sadd.s32 1, %s5736_s27  }
  0x11   : > { %7563 = sst [smem:[#allocation8_spill]] %s5883_s29  ;;  %s487_s0 = sadd.s32 1, %s5732_s26 }
  0x12   : > { %s484_s4 = ssub.s32 %s5736_s27, %s5883_s29  ;;  %p497_p0 = scmp.ne.s32.totalorder %s5732_s26, %s5728_s25 }
  0x13   : > { %p485_p1 = scmp.eq.s32.totalorder %s484_s4, 0  ;;  %p498_p2 = scmp.eq.s32.totalorder %s5879_s3, 1 }
  0x14   : > { %p503_p3 = scmp.ne.s32.totalorder %s5728_s25, %s5724_s2  ;;  %p504_p4 = scmp.eq.s32.totalorder %s4649_s28, 1 }
  0x15   : > { %s5894_s30 = scalar_select %p485_p1, %s5732_s26, %s487_s0  }
  0x16   : > { %p5896_p5 = por %p498_p2, %p497_p0  ;;  %p5900_p6 = por %p504_p4, %p503_p3 }
  0x17   : > { %7564 = sst [smem:[#allocation9_spill]] %s5894_s30  ;;  %p4652_p7 = scmp.ge.s32.totalorder %s5736_s27, 1 }
  0x18   : > { %s7566_s22 = scalar_select %p5900_p6, 1, 0 }
  0x19   : > { %p590_p8 = scmp.lt.s32.totalorder %s5736_s27, 3 }
  0x1a   : > { %7567 = sst [smem:[#allocation10_spill]] %s7566_s22 }
  0x1b   : > { %p591_p9 = pnand %p4652_p7, %p590_p8 }
  0x1c   : > { %s7568_s24 = sld [smem:[#allocation12_spill]] (!%p591_p9)  ;;  %p649_p10 = scmp.lt.s32.totalorder (!%p591_p9), %s5879_s3, 1 }
  0x1d   : > { %594 = sbr.rel (%p591_p9) target bundleno = 6818 (0x1aa2), region = 104  ;;  %s7569_s0 = sld [smem:[#allocation11_spill]] (!%p591_p9) }
  0x1e   : > { %s7570_s27 = sld [smem:[#allocation13_spill]] (!%p591_p9)  ;;  %s7544_s1 = smov (!%p591_p9), 64  }
  0x1f   : > { %s7572_s30 = sld [smem:[#allocation14_spill]] (!%p591_p9)  ;;  %s7542_s28 = smov (!%p591_p9), 112  }
  0x20   : > { %s7573_s7 = sld [smem:[#allocation18_spill]] (!%p591_p9)  ;;  %s7540_s29 = smov (!%p591_p9), 96  }
  0x21   : > { %s7574_s21 = sld [smem:[#allocation16_spill]] (!%p591_p9)  ;;  %s7582_s22 = smov (!%p591_p9), 16  }
  0x22   : > { %v661_v0 = vld [vmem:[%s7568_s24 + $0x28] sm:$0xff]  ;;  %v660_v1 = vld [vmem:[%s7568_s24 + $0x20] sm:$0xff]  ;;  %v659_v2 = vld [vmem:[%s7568_s24 + $0x18] sm:$0xff]  ;;  %s650_s26 = scalar_select %p649_p10, %s5879_s3, 1  ;;  %vm669_vm0 = vcmask 392192   ;;  %v5738_v8 = vmov 0.0  }
  0x23   : > { %5132 = vmatprep.subr.mxu0 %v661_v0  ;;  %v658_v3 = vld [vmem:[%s7568_s24 + $0x10] sm:$0xff]  ;;  %v657_v4 = vld [vmem:[%s7568_s24 + $0x8] sm:$0xff]  ;;  %v656_v6 = vld [vmem:[%s7568_s24] sm:$0xff]  ;;  %vm758_vm1 = vcmask 1040384   ;;  %vm772_vm2 = vcmask 523264   ;;  %s7575_s6 = sld [smem:[#allocation17_spill]] }
  0x24   : > { %5133 = vmatpush3.msra.mxu0 %v661_v0  ;;  %s4874_s23 = sshll.u32 %s650_s26, 4  ;;  %v4655_v9 = vld [vmem:[%s7570_s27] ss:$0 sm:$0xff]  ;;  %s7576_s8 = sld [smem:[#allocation19_spill]]  ;;  %vm986_vm3 = vcmask 130048   ;;  %vm1096_vm5 = vcmask 261120  }
  0x25   : > { %5134 = vmatprep.subr.mxu0 %v660_v1  ;;  %s653_s2 = scalar_lea.vmem %s7569_s0, %s4874_s23  ;;  %s7571_s23 = sld [smem:[#allocation15_spill]]  ;;  %v755_v19 = vld [vmem:[%s7572_s30] sm:$0x1]  ;;  %vm4481_vm6 = vcmask 516096   ;;  %vm5746_vm7 = vmmov 0   ;;  %vm4579_vm8 = vcmask 253952  }
  0x26   : > { %5135 = vmatpush3.msra.mxu0 %v660_v1  ;;  %v654_v5 = vld [vmem:[%s653_s2] sm:$0xff]  ;;  %v655_v7 = vld [vmem:[%s653_s2 + $0x8] sm:$0xff]  ;;  %v860_v47 = vld [vmem:[%s7573_s7 + $0x78] sm:$0xff]  ;;  %s7548_s2 = smov 48   ;;  %s7546_s0 = smov 32  }
  0x27   : > { %5136 = vmatprep.subr.mxu0 %v659_v2  ;;  %5144 = vmatprep.mubr.msk.f32.mxu0 %vm669_vm0, %v654_v5  ;;  %v859_v48 = vld [vmem:[%s7573_s7 + $0x70] sm:$0xff]  ;;  %v858_v49 = vld [vmem:[%s7573_s7 + $0x68] sm:$0xff]  ;;  %v857_v50 = vld [vmem:[%s7573_s7 + $0x60] sm:$0xff]  ;;  %s7538_s30 = smov 16   ;;  %s7536_s26 = smov 80  }
  0x28   : > { %5137 = vmatpush3.msra.mxu0 %v659_v2  ;;  %v856_v51 = vld [vmem:[%s7573_s7 + $0x58] sm:$0xff]  ;;  %v855_v52 = vld [vmem:[%s7573_s7 + $0x50] sm:$0xff]  ;;  %v854_v53 = vld [vmem:[%s7573_s7 + $0x48] sm:$0xff]  ;;  %s7581_s27 = smov 96  }
  0x29   : > { %5138 = vmatprep.subr.mxu0 %v658_v3  ;;  %v853_v54 = vld [vmem:[%s7573_s7 + $0x40] sm:$0xff]  ;;  %v852_v55 = vld [vmem:[%s7573_s7 + $0x38] sm:$0xff]  ;;  %v851_v56 = vld [vmem:[%s7573_s7 + $0x30] sm:$0xff] }
  0x2a   : > { %5139 = vmatpush3.msra.mxu0 %v658_v3  ;;  %v850_v57 = vld [vmem:[%s7573_s7 + $0x28] sm:$0xff]  ;;  %v849_v58 = vld [vmem:[%s7573_s7 + $0x20] sm:$0xff]  ;;  %v848_v59 = vld [vmem:[%s7573_s7 + $0x18] sm:$0xff] }
  0x2b   : > { %5140 = vmatprep.subr.mxu0 %v657_v4  ;;  %v752_v11 = vld [vmem:[%s7571_s23 + $0x8] sm:$0xff]  ;;  %v751_v14 = vld [vmem:[%s7571_s23] sm:$0xff]  ;;  %v847_v60 = vld [vmem:[%s7573_s7 + $0x10] sm:$0xff] }
  0x2c   : > { %5141 = vmatpush3.msra.mxu0 %v657_v4  ;;  %v846_v61 = vld [vmem:[%s7573_s7 + $0x8] sm:$0xff]  ;;  %v845_v62 = vld [vmem:[%s7573_s7] sm:$0xff] }
  0x2d   : > { %5142 = vmatprep.subr.mxu0 %v656_v6 }
  0x2e   : > { %5143 = vmatpush3.msra.mxu0 %v656_v6 }
  0x2f   : > { %5145 = vmatmul.mubr.msk.f32.vlgmr.msra.gmra.mxu0 %vm669_vm0, %v655_v7  ;;  %901 = vmatprep.subr.mxu0 %v860_v47 }
  0x30   : > { %949 = vmatprep.mubr.f32.mxu0 %v5738_v8  ;;  %902 = vmatpush1.msra.mxu0 %v859_v48 }
  0x31   : > { %903 = vmatprep.subr.mxu0 %v858_v49 }
  0x32   : > { %904 = vmatpush1.msra.mxu0 %v857_v50 }
  0x33   : > { %905 = vmatprep.subr.mxu0 %v856_v51 }
  0x34   : > { %906 = vmatpush1.msra.mxu0 %v855_v52 }
  0x35   : > { %907 = vmatprep.subr.mxu0 %v854_v53 }
  0x36   : > { %908 = vmatpush1.msra.mxu0 %v853_v54 }
  0x37   : > { %909 = vmatprep.subr.mxu0 %v852_v55 }
  0x38   : > { %910 = vmatpush1.msra.mxu0 %v851_v56 }
  0x39   : > { %911 = vmatprep.subr.mxu0 %v850_v57 }
  0x3a   : > { %912 = vmatpush1.msra.mxu0 %v849_v58 }
  0x3b   : > { %913 = vmatprep.subr.mxu0 %v848_v59 }
  0x3c   : > { %914 = vmatpush1.msra.mxu0 %v847_v60 }
  0x3d   : > { %915 = vmatprep.subr.mxu0 %v846_v61 }
  0x3e   : > { %916 = vmatpush1.msra.mxu0 %v845_v62 }
  0xef   : > { %v5146_v10 = vpop.f32.mrf.mxu0 }
  0xf0   : > { %v748_v12 = vadd.f32 %v5146_v10, %v4655_v9 }
  0xf1   : > { %v742_v13 = vpop.f32.mrf.mxu0 }
  0xf2   : > { %v754_v15 = vadd.f32 %v752_v11, %v748_v12  ;;  %v743_v16 = vadd.f32 %v4655_v9, %v742_v13  ;;  %v4658_v13 = vld [vmem:[%s7574_s21] ss:$0 sm:$0xff] }
  0xf4   : > { %v760_v17 = vrot.slane %v754_v15, 7  ;;  %v753_v18 = vadd.f32 %v751_v14, %v743_v16  ;;  %v4659_v15 = vld [vmem:[%s7575_s6] ss:$0 sm:$0xff] }
  0xf6   : > { %v759_v20 = vrot.slane %v753_v18, 7  ;;  %v5944_v21 = vsel %vm758_vm1, %v760_v17, 0.0 }
  0xf7   : > { %v779_v22 = vsel %vm772_vm2, %v5944_v21, 0.0 }
  0xf8   : > { %780 = vadd.xlane.f32.xlu1 %v779_v22  ;;  %v5948_v23 = vsel %vm758_vm1, %v755_v19, %v759_v20  ;;  %v5952_v25 = vsel %vm758_vm1, %v759_v20, %v760_v17 }
  0xf9   : > { %v773_v24 = vsel %vm772_vm2, %v5948_v23, 0.0  ;;  %v776_v26 = vsel %vm772_vm2, %v5952_v25, 0.0 }
  0xfa   : > { %774 = vadd.xlane.f32.xlu0 %v773_v24 }
  0xfc   : > { %782 = vadd.xlane.f32.xlu1 %v5738_v8 }
  0xfe   : > { %777 = vadd.xlane.f32.xlu0 %v776_v26 }
 0x181   : > { %v781_v27 = vpop.xlane.xlu1 %780 }
 0x182   : > { %v787_v28 = vmul.f32 0.015625, %v781_v27 }
 0x183   : > { %v775_v29 = vpop.xlane.xlu0 %774 }
 0x184   : > { %v785_v30 = vmul.f32 0.015625, %v775_v29  ;;  %v5958_v32 = vsub.f32 %v5944_v21, %v787_v28 }
 0x185   : > { %v783_v31 = vpop.xlane.xlu1 %782 }
 0x186   : > { %v5961_v33 = vsub.f32 %v5948_v23, %v785_v30  ;;  %v788_v34 = vmul.f32 0.015625, %v783_v31  ;;  %v795_v41 = vmul.f32 %v5958_v32, %v5958_v32 }
 0x187   : > { %v778_v35 = vpop.xlane.xlu0 %777 }
 0x188   : > { %v786_v36 = vmul.f32 0.015625, %v778_v35  ;;  %v5963_v37 = vsub.f32 0.0, %v788_v34  ;;  %v793_v38 = vmul.f32 %v5961_v33, %v5961_v33  ;;  %v803_v44 = vsel %vm772_vm2, %v795_v41, 0.0 }
 0x18a   : > { %v5968_v39 = vsub.f32 %v5952_v25, %v786_v36  ;;  %v797_v40 = vsel %vm772_vm2, %v793_v38, 0.0  ;;  %v796_v43 = vmul.f32 %v5963_v37, %v5963_v37  ;;  %v861_v36 = vld [vmem:[%s7576_s8] sm:$0x3] }
 0x18b   : > { %798 = vadd.xlane.f32.xlu0 %v797_v40 }
 0x18c   : > { %v794_v42 = vmul.f32 %v5968_v39, %v5968_v39  ;;  %v806_v46 = vsel %vm772_vm2, %v796_v43, 0.0 }
 0x18e   : > { %v800_v45 = vsel %vm772_vm2, %v794_v42, 0.0 }
 0x18f   : > { %804 = vadd.xlane.f32.xlu0 %v803_v44  ;;  %801 = vadd.xlane.f32.xlu1 %v800_v45 }
 0x193   : > { %807 = vadd.xlane.f32.xlu1 %v806_v46 }
 0x214   : > { %v799_v63 = vpop.xlane.xlu0 %798 }
 0x215   : > { %v809_v0 = vmul.f32 0.015625, %v799_v63 }
 0x217   : > { %v813_v1 = vadd.f32 1e-05, %v809_v0 }
 0x218   : > { %v802_v2 = vpop.xlane.xlu1 %801  ;;  %v805_v3 = vpop.xlane.xlu0 %804 }
 0x219   : > { %5482 = vrsqrt.f32 %v813_v1  ;;  %v810_v4 = vmul.f32 0.015625, %v802_v2  ;;  %v811_v5 = vmul.f32 0.015625, %v805_v3 }
 0x21b   : > { %v814_v6 = vadd.f32 1e-05, %v810_v4  ;;  %v815_v7 = vadd.f32 1e-05, %v811_v5 }
 0x21c   : > { %v808_v9 = vpop.xlane.xlu1 %807 }
 0x21d   : > { %5484 = vrsqrt.f32 %v814_v6  ;;  %v812_v10 = vmul.f32 0.015625, %v808_v9 }
 0x21e   : > { %5486 = vrsqrt.f32 %v815_v7 }
 0x21f   : > { %v816_v11 = vadd.f32 1e-05, %v812_v10 }
 0x221   : > { %5488 = vrsqrt.f32 %v816_v11 }
 0x226   : > { %v5483_v12 = vpop.eup %5482 }
 0x227   : > { %v821_v14 = vmul.f32 %v5483_v12, %v5961_v33  ;;  %v767_v33 = vlaneseq }
 0x229   : > { %v831_v16 = vmul.f32 %v4658_v13, %v821_v14  ;;  %v864_v34 = vshrl.u32 %v767_v33, 7  ;;  %v6149_v6 = vand.u32 127, %v767_v33 }
 0x22a   : > { %v5485_v17 = vpop.eup %5484 }
 0x22b   : > { %v5487_v18 = vpop.eup %5486  ;;  %v841_v19 = vadd.f32 %v4659_v15, %v831_v16  ;;  %v822_v20 = vmul.f32 %v5485_v17, %v5968_v39  ;;  %v6046_v35 = vsub.s32 0, %v864_v34  ;;  %v6056_v44 = vsub.s32 1, %v864_v34 }
 0x22c   : > { %v823_v22 = vmul.f32 %v5487_v18, %v5958_v32  ;;  %vm769_vm4 = vcmp.lt.s32.totalorder %v6149_v6, 17 }
 0x22d   : > { %4660 = vmatmul.mubr.msk.f32.vlgmr.msra.gmra.mxu0 %vm772_vm2, %v841_v19  ;;  %v832_v24 = vmul.f32 %v4658_v13, %v822_v20  ;;  %v870_v48 = vrot.slane %v861_v36, %v6056_v44 }
 0x22e   : > { %v5489_v26 = vpop.eup %5488  ;;  %955 = vmatprep.mubr.f32.mxu0 %v5738_v8  ;;  %v833_v28 = vmul.f32 %v4658_v13, %v823_v22 }
 0x22f   : > { %v842_v27 = vadd.f32 %v4659_v15, %v832_v24  ;;  %v824_v29 = vmul.f32 %v5489_v26, %v5963_v37  ;;  %v866_v37 = vrot.slane %v861_v36, %v6046_v35 }
 0x230   : > { %v843_v30 = vadd.f32 %v4659_v15, %v833_v28 }
 0x231   : > { %4661 = vmatmul.mubr.msk.f32.gmra.mxu0 %vm772_vm2, %v842_v27  ;;  %v834_v31 = vmul.f32 %v4658_v13, %v824_v29 }
 0x232   : > { %961 = vmatprep.mubr.f32.mxu0 %v5738_v8 }
 0x233   : > { %v844_v32 = vadd.f32 %v4659_v15, %v834_v31 }
 0x235   : > { %4662 = vmatmul.mubr.msk.f32.gmra.mxu0 %vm772_vm2, %v843_v30 }
 0x236   : > { %967 = vmatprep.mubr.f32.mxu0 %v5738_v8 }
 0x239   : > { %4663 = vmatmul.mubr.msk.f32.gmra.mxu0 %vm772_vm2, %v844_v32 }
 0x2ed   : > { %v951_v38 = vpop.f32.mrf.mxu0 }
 0x2ee   : > { %v6052_v39 = vadd.f32 %v951_v38, %v866_v37 }
 0x2ef   : > { %v953_v40 = vpop.f32.mrf.mxu0 }
 0x2f0   : > { %5155 = vmatprep.mubr.msk.f32.mxu0 %vm986_vm3, %v6052_v39  ;;  %v6085_v55 = vadd.f32 %v953_v40, %v870_v48 }
 0x2f1   : > { %v957_v41 = vpop.f32.mrf.mxu0 }
 0x2f2   : > { %v6063_v49 = vadd.f32 %v957_v41, %v866_v37 }
 0x2f3   : > { %v959_v42 = vpop.f32.mrf.mxu0 }
 0x2f4   : > { %v6077_v54 = vadd.f32 %v959_v42, %v870_v48 }
 0x2f5   : > { %v963_v43 = vpop.f32.mrf.mxu0 }
 0x2f6   : > { %v6058_v45 = vadd.f32 %v963_v43, %v866_v37 }
 0x2f7   : > { %v965_v46 = vpop.f32.mrf.mxu0 }
 0x2f8   : > { %982 = vrot.lane.b32.xlu1 %v6058_v45, %s7544_s1  ;;  %v6073_v53 = vadd.f32 %v965_v46, %v870_v48 }
 0x2f9   : > { %v969_v47 = vpop.f32.mrf.mxu0 }
 0x2fa   : > { %v6065_v50 = vadd.f32 %v969_v47, %v866_v37 }
 0x2fb   : > { %v971_v51 = vpop.f32.mrf.mxu0 }
 0x2fc   : > { %v6067_v52 = vadd.f32 %v971_v51, %v870_v48  ;;  %984 = vrot.lane.b32.xlu0 %v6065_v50, %s7544_s1  ;;  %980 = vrot.lane.b32.xlu1 %v6063_v49, %s7544_s1 }
 0x2fe   : > { %5161 = vmatprep.subr.mxu1 %v6067_v52 }
 0x2ff   : > { %5162 = vmatpush3.msra.mxu1 %v6067_v52 }
 0x300   : > { %1252 = vrot.lane.b32.xlu0 %v6065_v50, %s7548_s2  ;;  %5163 = vmatprep.subr.mxu1 %v6073_v53 }
 0x301   : > { %978 = vrot.lane.b32.xlu1 %v6052_v39, %s7544_s1  ;;  %5164 = vmatpush3.msra.mxu1 %v6073_v53  ;;  %s7579_s1 = smov 112  }
 0x302   : > { %5165 = vmatprep.subr.mxu1 %v6077_v54 }
 0x303   : > { %5166 = vmatpush3.msra.mxu1 %v6077_v54 }
 0x304   : > { %1248 = vrot.lane.b32.xlu0 %v6063_v49, %s7548_s2  ;;  %5167 = vmatprep.subr.mxu1 %v6085_v55 }
 0x305   : > { %1250 = vrot.lane.b32.xlu1 %v6058_v45, %s7548_s2  ;;  %5168 = vmatpush3.msra.mxu1 %v6085_v55 }
 0x308   : > { %1238 = vrot.lane.b32.xlu0 %v6052_v39, %s7542_s28 }
 0x309   : > { %1246 = vrot.lane.b32.xlu1 %v6052_v39, %s7548_s2 }
 0x30c   : > { %1242 = vrot.lane.b32.xlu0 %v6058_v45, %s7542_s28 }
 0x30d   : > { %1240 = vrot.lane.b32.xlu1 %v6063_v49, %s7542_s28 }
 0x310   : > { %1534 = vrot.lane.b32.xlu0 %v6065_v50, %s7546_s0 }
 0x311   : > { %1244 = vrot.lane.b32.xlu1 %v6065_v50, %s7542_s28 }
 0x314   : > { %1417 = vrot.lane.b32.xlu0 %v6067_v52, %s7542_s28 }
 0x315   : > { %1415 = vrot.lane.b32.xlu1 %v6073_v53, %s7542_s28 }
 0x319   : > { %1413 = vrot.lane.b32.xlu1 %v6077_v54, %s7542_s28 }
 0x31d   : > { %1411 = vrot.lane.b32.xlu1 %v6085_v55, %s7542_s28  ;;  %s7580_s28 = smov 32  }
 0x321   : > { %1532 = vrot.lane.b32.xlu1 %v6058_v45, %s7546_s0 }
 0x36a   : > { %v983_v56 = vpop.permute.xlu1 %982 }
 0x36e   : > { %v985_v57 = vpop.permute.xlu0 %984  ;;  %v981_v58 = vpop.permute.xlu1 %980 }
 0x36f   : > { %5147 = vmatprep.subr.msk.mxu0 %vm986_vm3, %v985_v57 }
 0x370   : > { %5148 = vmatpush3.xpose.msk.msra.mxu0 %vm986_vm3, %v985_v57 }
 0x371   : > { %5149 = vmatprep.subr.msk.mxu0 %vm986_vm3, %v983_v56 }
 0x372   : > { %v1253_v59 = vpop.permute.xlu0 %1252 }
 0x373   : > { %v979_v61 = vpop.permute.xlu1 %978 }
 0x374   : > { %5150 = vmatpush3.xpose.msk.msra.mxu0 %vm986_vm3, %v983_v56 }
 0x375   : > { %5151 = vmatprep.subr.msk.mxu0 %vm986_vm3, %v981_v58 }
 0x376   : > { %v1249_v60 = vpop.permute.xlu0 %1248 }
 0x377   : > { %v1251_v0 = vpop.permute.xlu1 %1250 }
 0x378   : > { %5152 = vmatpush3.xpose.msk.msra.mxu0 %vm986_vm3, %v981_v58 }
 0x379   : > { %5153 = vmatprep.subr.msk.mxu0 %vm986_vm3, %v979_v61 }
 0x37a   : > { %v1239_v62 = vpop.permute.xlu0 %1238 }
 0x37b   : > { %v1247_v2 = vpop.permute.xlu1 %1246 }
 0x37c   : > { %5154 = vmatpush3.xpose.msk.msra.mxu0 %vm986_vm3, %v979_v61 }
 0x37d   : > { %5175 = vmatprep.subr.msk.mxu0 %vm986_vm3, %v1253_v59 }
 0x37e   : > { %v1243_v63 = vpop.permute.xlu0 %1242 }
 0x37f   : > { %5156 = vmatmul.mubr.msk.f32.vlgmr.msra.gmra.mxu0 %vm986_vm3, %v6063_v49  ;;  %v1241_v4 = vpop.permute.xlu1 %1240 }
 0x380   : > { %5158 = vmatprep.mubr.msk.f32.mxu0 %vm986_vm3, %v6058_v45  ;;  %5176 = vmatpush3.xpose.msk.msra.mxu0 %vm986_vm3, %v1253_v59 }
 0x381   : > { %5177 = vmatprep.subr.msk.mxu0 %vm986_vm3, %v1251_v0 }
 0x382   : > { %v6132_v1 = vpop.permute.xlu0 %1534 }
 0x383   : > { %5159 = vmatmul.mubr.msk.f32.gmra.mxu0 %vm986_vm3, %v6065_v50  ;;  %v1245_v5 = vpop.permute.xlu1 %1244 }
 0x384   : > { %5178 = vmatpush3.xpose.msk.msra.mxu0 %vm986_vm3, %v1251_v0  ;;  %5183 = vmatprep.mubr.msk.f32.mxu0 %vm986_vm3, %v1239_v62 }
 0x385   : > { %5179 = vmatprep.subr.msk.mxu0 %vm986_vm3, %v1249_v60 }
 0x386   : > { %v6139_v3 = vpop.permute.xlu0 %1417 }
 0x387   : > { %5189 = vmatprep.subr.mxu1 %v6139_v3  ;;  %v6183_v47 = vpop.permute.xlu1 %1415 }
 0x388   : > { %5180 = vmatpush3.xpose.msk.msra.mxu0 %vm986_vm3, %v1249_v60 }
 0x389   : > { %5181 = vmatprep.subr.msk.mxu0 %vm986_vm3, %v1247_v2 }
 0x38b   : > { %v6185_v48 = vpop.permute.xlu1 %1413 }
 0x38c   : > { %5182 = vmatpush3.xpose.msk.msra.mxu0 %vm986_vm3, %v1247_v2 }
 0x38f   : > { %5184 = vmatmul.mubr.msk.f32.vlgmr.msra.gmra.mxu0 %vm986_vm3, %v1241_v4  ;;  %v6187_v51 = vpop.permute.xlu1 %1411 }
 0x390   : > { %5186 = vmatprep.mubr.msk.f32.mxu0 %vm986_vm3, %v1243_v63 }
 0x393   : > { %5187 = vmatmul.mubr.msk.f32.gmra.mxu0 %vm986_vm3, %v1245_v5  ;;  %v6189_v56 = vpop.permute.xlu1 %1532 }
 0x43f   : > { %v5157_v7 = vpop.f32.mrf.mxu0 }
 0x440   : > { %v1089_v9 = vmul.f32 0.25, %v5157_v7 }
 0x441   : > { %v1069_v10 = vpop.f32.mrf.mxu0 }
 0x442   : > { %v1088_v11 = vmul.f32 0.25, %v1069_v10  ;;  %v1093_v12 = vsel %vm769_vm4, %v1089_v9, -1e+30 }
 0x443   : > { %v5160_v13 = vpop.f32.mrf.mxu0  ;;  %v1100_v14 = vsel %vm1096_vm5, %v1093_v12, -inf }
 0x444   : > { %v1091_v15 = vmul.f32 0.25, %v5160_v13  ;;  %1101 = vmax.xlane.f32.xlu1 %v1100_v14  ;;  %v1092_v16 = vsel %vm769_vm4, %v1088_v11, -1e+30 }
 0x445   : > { %v1079_v17 = vpop.f32.mrf.mxu0  ;;  %v1097_v18 = vsel %vm1096_vm5, %v1092_v16, -inf }
 0x446   : > { %v1090_v19 = vmul.f32 0.25, %v1079_v17  ;;  %1098 = vmax.xlane.f32.xlu0 %v1097_v18  ;;  %v1095_v20 = vsel %vm769_vm4, %v1091_v15, -1e+30 }
 0x447   : > { %v1106_v22 = vsel %vm1096_vm5, %v1095_v20, -inf }
 0x448   : > { %v1094_v24 = vsel %vm769_vm4, %v1090_v19, -1e+30 }
 0x449   : > { %v1103_v26 = vsel %vm1096_vm5, %v1094_v24, -inf }
 0x44a   : > { %1107 = vmax.xlane.f32.xlu0 %v1106_v22 }
 0x44e   : > { %1104 = vmax.xlane.f32.xlu0 %v1103_v26 }
 0x44f   : > { %v5185_v27 = vpop.f32.mrf.mxu0 }
 0x450   : > { %v1356_v28 = vmul.f32 0.25, %v5185_v27 }
 0x451   : > { %v1336_v29 = vpop.f32.mrf.mxu0 }
 0x452   : > { %v1355_v30 = vmul.f32 0.25, %v1336_v29  ;;  %v1360_v31 = vsel %vm769_vm4, %v1356_v28, -1e+30 }
 0x453   : > { %v5188_v32 = vpop.f32.mrf.mxu0  ;;  %v1366_v33 = vsel %vm1096_vm5, %v1360_v31, -inf }
 0x454   : > { %v1358_v34 = vmul.f32 0.25, %v5188_v32  ;;  %1367 = vmax.xlane.f32.xlu1 %v1366_v33  ;;  %v1359_v36 = vsel %vm769_vm4, %v1355_v30, -1e+30 }
 0x455   : > { %v1346_v37 = vpop.f32.mrf.mxu0  ;;  %v1363_v38 = vsel %vm1096_vm5, %v1359_v36, -inf }
 0x456   : > { %v1357_v40 = vmul.f32 0.25, %v1346_v37  ;;  %1364 = vmax.xlane.f32.xlu0 %v1363_v38  ;;  %v6172_v41 = vsel %vm769_vm4, %v1358_v34, -1e+30 }
 0x457   : > { %v1372_v42 = vsel %vm1096_vm5, %v6172_v41, -inf }
 0x458   : > { %1373 = vmax.xlane.f32.xlu1 %v1372_v42  ;;  %v1361_v43 = vsel %vm769_vm4, %v1357_v40, -1e+30 }
 0x459   : > { %v1369_v46 = vsel %vm1096_vm5, %v1361_v43, -inf }
 0x45a   : > { %1370 = vmax.xlane.f32.xlu0 %v1369_v46 }
 0x469   : > { %1812 = vrot.lane.b32.xlu1 %v6065_v50, %s7538_s30 }
 0x470   : > { %1530 = vrot.lane.b32.xlu0 %v6063_v49, %s7546_s0 }
 0x4cd   : > { %v1102_v57 = vpop.xlane.xlu1 %1101 }
 0x4ce   : > { %v1110_v58 = vsub.f32 %v1093_v12, %v1102_v57 }
 0x4cf   : > { %v1099_v59 = vpop.xlane.xlu0 %1098 }
 0x4d0   : > { %v1115_v60 = vmul.f32 1.442695, %v1110_v58  ;;  %v1109_v61 = vsub.f32 %v1092_v16, %v1099_v59 }
 0x4d2   : > { %5490 = vpow2.f32 %v1115_v60  ;;  %v1113_v62 = vmul.f32 1.442695, %v1109_v61 }
 0x4d3   : > { %v1108_v63 = vpop.xlane.xlu0 %1107 }
 0x4d4   : > { %5492 = vpow2.f32 %v1113_v62  ;;  %v1112_v0 = vsub.f32 %v1095_v20, %v1108_v63 }
 0x4d6   : > { %v1119_v2 = vmul.f32 1.442695, %v1112_v0 }
 0x4d7   : > { %v1105_v4 = vpop.xlane.xlu0 %1104 }
 0x4d8   : > { %5494 = vpow2.f32 %v1119_v2  ;;  %v1111_v5 = vsub.f32 %v1094_v24, %v1105_v4 }
 0x4da   : > { %v1117_v7 = vmul.f32 1.442695, %v1111_v5 }
 0x4dc   : > { %5496 = vpow2.f32 %v1117_v7 }
 0x4dd   : > { %v1368_v9 = vpop.xlane.xlu1 %1367 }
 0x4de   : > { %v1376_v10 = vsub.f32 %v1360_v31, %v1368_v9 }
 0x4df   : > { %v6191_v11 = vpop.eup %5490  ;;  %v1365_v13 = vpop.xlane.xlu0 %1364 }
 0x4e0   : > { %v1381_v12 = vmul.f32 1.442695, %v1376_v10  ;;  %v1375_v14 = vsub.f32 %v1359_v36, %v1365_v13  ;;  %v1124_v15 = vsel %vm1096_vm5, %v6191_v11, 0.0 }
 0x4e1   : > { %v5493_v16 = vpop.eup %5492  ;;  %1125 = vadd.xlane.f32.xlu1 %v1124_v15  ;;  %v1374_v17 = vpop.xlane.xlu1 %1373 }
 0x4e2   : > { %5498 = vpow2.f32 %v1381_v12  ;;  %v1379_v18 = vmul.f32 1.442695, %v1375_v14  ;;  %v1121_v19 = vsel %vm1096_vm5, %v5493_v16, 0.0  ;;  %v1378_v33 = vsub.f32 %v6172_v41, %v1374_v17 }
 0x4e3   : > { %1122 = vadd.xlane.f32.xlu0 %v1121_v19  ;;  %v1371_v32 = vpop.xlane.xlu0 %1370 }
 0x4e4   : > { %5500 = vpow2.f32 %v1379_v18  ;;  %v1377_v34 = vsub.f32 %v1361_v43, %v1371_v32  ;;  %v1385_v36 = vmul.f32 1.442695, %v1378_v33 }
 0x4e5   : > { %v6196_v20 = vpop.eup %5494  ;;  %v1813_v22 = vpop.permute.xlu1 %1812 }
 0x4e6   : > { %5231 = vmatprep.subr.msk.mxu0 %vm986_vm3, %v1813_v22  ;;  %v1130_v24 = vsel %vm1096_vm5, %v6196_v20, 0.0  ;;  %v1383_v37 = vmul.f32 1.442695, %v1377_v34  ;;  %5502 = vpow2.f32 %v1385_v36 }
 0x4e7   : > { %1131 = vadd.xlane.f32.xlu1 %v1130_v24  ;;  %5232 = vmatpush3.xpose.msk.msra.mxu0 %vm986_vm3, %v1813_v22  ;;  %v1531_v41 = vpop.permute.xlu0 %1530 }
 0x4e8   : > { %5504 = vpow2.f32 %v1383_v37 }
 0x4e9   : > { %v6202_v26 = vpop.eup %5496 }
 0x4ea   : > { %v1127_v27 = vsel %vm1096_vm5, %v6202_v26, 0.0 }
 0x4eb   : > { %1128 = vadd.xlane.f32.xlu0 %v1127_v27 }
 0x4ef   : > { %v6206_v28 = vpop.eup %5498 }
 0x4f0   : > { %v1390_v29 = vsel %vm1096_vm5, %v6206_v28, 0.0 }
 0x4f1   : > { %v6210_v30 = vpop.eup %5500  ;;  %1391 = vadd.xlane.f32.xlu1 %v1390_v29 }
 0x4f2   : > { %v1387_v31 = vsel %vm1096_vm5, %v6210_v30, 0.0 }
 0x4f3   : > { %1388 = vadd.xlane.f32.xlu0 %v1387_v31  ;;  %v6219_v38 = vpop.eup %5502 }
 0x4f4   : > { %v1396_v42 = vsel %vm1096_vm5, %v6219_v38, 0.0 }
 0x4f5   : > { %v6221_v40 = vpop.eup %5504 }
 0x4f6   : > { %v1393_v46 = vsel %vm1096_vm5, %v6221_v40, 0.0 }
 0x502   : > { %1810 = vrot.lane.b32.xlu1 %v6058_v45, %s7538_s30 }
 0x509   : > { %1528 = vrot.lane.b32.xlu0 %v6052_v39, %s7546_s0 }
 0x526   : > { %1397 = vadd.xlane.f32.xlu1 %v1396_v42 }
 0x528   : > { %1394 = vadd.xlane.f32.xlu0 %v1393_v46 }
 0x537   : > { %1522 = vrot.lane.b32.xlu1 %v6063_v49, %s7540_s29 }
 0x53b   : > { %1524 = vrot.lane.b32.xlu1 %v6058_v45, %s7540_s29 }
 0x53e   : > { %1520 = vrot.lane.b32.xlu0 %v6052_v39, %s7540_s29 }
 0x53f   : > { %1806 = vrot.lane.b32.xlu1 %v6052_v39, %s7538_s30 }
 0x542   : > { %1808 = vrot.lane.b32.xlu0 %v6063_v49, %s7538_s30 }
 0x543   : > { %1800 = vrot.lane.b32.xlu1 %v6063_v49, %s7536_s26 }
 0x546   : > { %1526 = vrot.lane.b32.xlu0 %v6065_v50, %s7540_s29 }
 0x547   : > { %1804 = vrot.lane.b32.xlu1 %v6065_v50, %s7536_s26 }
 0x54a   : > { %1798 = vrot.lane.b32.xlu0 %v6052_v39, %s7536_s26 }
 0x54e   : > { %1802 = vrot.lane.b32.xlu0 %v6058_v45, %s7536_s26 }
 0x56a   : > { %v1126_v43 = vpop.xlane.xlu1 %1125 }
 0x56b   : > { %5506 = vrcp.f32 %v1126_v43 }
 0x56c   : > { %v1123_v57 = vpop.xlane.xlu0 %1122 }
 0x56d   : > { %5508 = vrcp.f32 %v1123_v57 }
 0x570   : > { %v1132_v58 = vpop.xlane.xlu1 %1131 }
 0x571   : > { %5510 = vrcp.f32 %v1132_v58 }
 0x574   : > { %v1129_v49 = vpop.xlane.xlu0 %1128 }
 0x575   : > { %5512 = vrcp.f32 %v1129_v49 }
 0x578   : > { %v5507_v59 = vpop.eup %5506 }
 0x579   : > { %v1138_v39 = vmul.f32 %v5507_v59, %v6191_v11 }
 0x57a   : > { %v5509_v60 = vpop.eup %5508  ;;  %v1392_v61 = vpop.xlane.xlu1 %1391 }
 0x57b   : > { %v1137_v62 = vmul.f32 %v5509_v60, %v5493_v16  ;;  %5514 = vrcp.f32 %v1392_v61 }
 0x57c   : > { %v1389_v50 = vpop.xlane.xlu0 %1388 }
 0x57d   : > { %5516 = vrcp.f32 %v1389_v50  ;;  %5169 = vmatprep.mubr.msk.f32.mxu1 %vm1096_vm5, %v1137_v62 }
 0x57e   : > { %5170 = vmatmul.mubr.msk.f32.vlgmr.msra.gmra.mxu1 %vm1096_vm5, %v1138_v39  ;;  %v1811_v45 = vpop.permute.xlu1 %1810  ;;  %v5511_v63 = vpop.eup %5510 }
 0x57f   : > { %5190 = vmatpush3.msra.mxu1 %v6139_v3  ;;  %5233 = vmatprep.subr.msk.mxu0 %vm986_vm3, %v1811_v45  ;;  %v1140_v3 = vmul.f32 %v5511_v63, %v6196_v20 }
 0x580   : > { %5191 = vmatprep.subr.mxu1 %v6183_v47  ;;  %5234 = vmatpush3.xpose.msk.msra.mxu0 %vm986_vm3, %v1811_v45 }
 0x581   : > { %5192 = vmatpush3.msra.mxu1 %v6183_v47 }
 0x582   : > { %v5513_v0 = vpop.eup %5512  ;;  %5193 = vmatprep.subr.mxu1 %v6185_v48 }
 0x583   : > { %5194 = vmatpush3.msra.mxu1 %v6185_v48  ;;  %v1139_v2 = vmul.f32 %v5513_v0, %v6202_v26 }
 0x584   : > { %5195 = vmatprep.subr.mxu1 %v6187_v51 }
 0x585   : > { %5196 = vmatpush3.msra.mxu1 %v6187_v51  ;;  %5172 = vmatprep.mubr.msk.f32.mxu1 %vm1096_vm5, %v1139_v2  ;;  %v1529_v51 = vpop.permute.xlu0 %1528 }
 0x586   : > { %5203 = vmatprep.subr.msk.mxu1 %vm986_vm3, %v6132_v1  ;;  %5173 = vmatmul.mubr.msk.f32.gmra.mxu1 %vm1096_vm5, %v1140_v3 }
 0x588   : > { %v5515_v47 = vpop.eup %5514 }
 0x589   : > { %v1404_v48 = vmul.f32 %v5515_v47, %v6206_v28 }
 0x58a   : > { %v5517_v4 = vpop.eup %5516 }
 0x58b   : > { %v1403_v5 = vmul.f32 %v5517_v4, %v6210_v30 }
 0x58d   : > { %5197 = vmatprep.mubr.msk.f32.mxu1 %vm1096_vm5, %v1403_v5 }
 0x58e   : > { %5198 = vmatmul.mubr.msk.f32.vlgmr.msra.gmra.mxu1 %vm1096_vm5, %v1404_v48 }
 0x58f   : > { %5204 = vmatpush3.xpose.msk.msra.mxu1 %vm986_vm3, %v6132_v1 }
 0x590   : > { %5205 = vmatprep.subr.msk.mxu1 %vm986_vm3, %v6189_v56 }
 0x593   : > { %5206 = vmatpush3.xpose.msk.msra.mxu1 %vm986_vm3, %v6189_v56 }
 0x594   : > { %5207 = vmatprep.subr.msk.mxu1 %vm986_vm3, %v1531_v41 }
 0x597   : > { %5208 = vmatpush3.xpose.msk.msra.mxu1 %vm986_vm3, %v1531_v41 }
 0x598   : > { %5209 = vmatprep.subr.msk.mxu1 %vm986_vm3, %v1529_v51 }
 0x59b   : > { %5210 = vmatpush3.xpose.msk.msra.mxu1 %vm986_vm3, %v1529_v51 }
 0x5af   : > { %v1398_v7 = vpop.xlane.xlu1 %1397 }
 0x5b0   : > { %5518 = vrcp.f32 %v1398_v7 }
 0x5b1   : > { %v1395_v9 = vpop.xlane.xlu0 %1394 }
 0x5b2   : > { %5520 = vrcp.f32 %v1395_v9 }
 0x5b3   : > { %v1523_v1 = vpop.permute.xlu1 %1522 }
 0x5b5   : > { %v1521_v10 = vpop.permute.xlu0 %1520 }
 0x5b7   : > { %v1525_v11 = vpop.permute.xlu1 %1524 }
 0x5b9   : > { %v1809_v13 = vpop.permute.xlu0 %1808 }
 0x5ba   : > { %5235 = vmatprep.subr.msk.mxu0 %vm986_vm3, %v1809_v13 }
 0x5bb   : > { %5236 = vmatpush3.xpose.msk.msra.mxu0 %vm986_vm3, %v1809_v13  ;;  %v1807_v56 = vpop.permute.xlu1 %1806 }
 0x5bc   : > { %5237 = vmatprep.subr.msk.mxu0 %vm986_vm3, %v1807_v56 }
 0x5bd   : > { %v1527_v12 = vpop.permute.xlu0 %1526  ;;  %v5519_v14 = vpop.eup %5518 }
 0x5be   : > { %v1406_v19 = vmul.f32 %v5519_v14, %v6219_v38 }
 0x5bf   : > { %v5521_v15 = vpop.eup %5520  ;;  %5238 = vmatpush3.xpose.msk.msra.mxu0 %vm986_vm3, %v1807_v56  ;;  %v1801_v16 = vpop.permute.xlu1 %1800 }
 0x5c0   : > { %v1405_v17 = vmul.f32 %v5521_v15, %v6221_v40 }
 0x5c1   : > { %v1799_v18 = vpop.permute.xlu0 %1798 }
 0x5c2   : > { %5200 = vmatprep.mubr.msk.f32.mxu1 %vm1096_vm5, %v1405_v17  ;;  %5239 = vmatprep.mubr.msk.f32.mxu0 %vm986_vm3, %v1799_v18 }
 0x5c3   : > { %5201 = vmatmul.mubr.msk.f32.gmra.mxu1 %vm1096_vm5, %v1406_v19  ;;  %5240 = vmatmul.mubr.msk.f32.vlgmr.msra.gmra.mxu0 %vm986_vm3, %v1801_v16  ;;  %v1805_v22 = vpop.permute.xlu1 %1804 }
 0x5c4   : > { %5211 = vmatprep.mubr.msk.f32.mxu1 %vm986_vm3, %v1521_v10 }
 0x5c5   : > { %v1803_v20 = vpop.permute.xlu0 %1802 }
 0x5c6   : > { %5242 = vmatprep.mubr.msk.f32.mxu0 %vm986_vm3, %v1803_v20 }
 0x5c7   : > { %5212 = vmatmul.mubr.msk.f32.vlgmr.msra.gmra.mxu1 %vm986_vm3, %v1523_v1  ;;  %5243 = vmatmul.mubr.msk.f32.gmra.mxu0 %vm986_vm3, %v1805_v22 }
 0x5c8   : > { %5214 = vmatprep.mubr.msk.f32.mxu1 %vm986_vm3, %v1525_v11  ;;  %2430 = vmatprep.mubr.f32.mxu0 %v5738_v8 }
 0x5cb   : > { %5215 = vmatmul.mubr.msk.f32.gmra.mxu1 %vm986_vm3, %v1527_v12 }
 0x63e   : > { %v6296_v24 = vpop.f32.mrf.mxu1 }
 0x640   : > { %v6298_v26 = vpop.f32.mrf.mxu1 }
 0x646   : > { %v6300_v27 = vpop.f32.mrf.mxu1 }
 0x648   : > { %v6302_v28 = vpop.f32.mrf.mxu1 }
 0x64e   : > { %v6304_v29 = vpop.f32.mrf.mxu1 }
 0x650   : > { %v6306_v30 = vpop.f32.mrf.mxu1 }
 0x683   : > { %v6308_v31 = vpop.f32.mrf.mxu1  ;;  %v5241_v32 = vpop.f32.mrf.mxu0 }
 0x684   : > { %v1916_v37 = vmul.f32 0.25, %v5241_v32 }
 0x685   : > { %v6310_v33 = vpop.f32.mrf.mxu1  ;;  %v1896_v34 = vpop.f32.mrf.mxu0 }
 0x686   : > { %v1920_v60 = vsel %vm769_vm4, %v1916_v37, -1e+30  ;;  %v1915_v2 = vmul.f32 0.25, %v1896_v34 }
 0x687   : > { %v5213_v36 = vpop.f32.mrf.mxu1  ;;  %v5244_v40 = vpop.f32.mrf.mxu0  ;;  %v1926_v45 = vsel %vm1096_vm5, %v1920_v60, -inf }
 0x688   : > { %v1638_v38 = vmul.f32 0.25, %v5213_v36  ;;  %v1918_v58 = vmul.f32 0.25, %v5244_v40  ;;  %v1919_v51 = vsel %vm769_vm4, %v1915_v2, -1e+30 }
 0x689   : > { %v1618_v42 = vpop.f32.mrf.mxu1  ;;  %v1906_v47 = vpop.f32.mrf.mxu0  ;;  %v1923_v7 = vsel %vm1096_vm5, %v1919_v51, -inf }
 0x68a   : > { %v1637_v46 = vmul.f32 0.25, %v1618_v42  ;;  %v6314_v41 = vsel %vm769_vm4, %v1638_v38, -1e+30  ;;  %v1922_v63 = vsel %vm769_vm4, %v1918_v58, -1e+30  ;;  %v1917_v48 = vmul.f32 0.25, %v1906_v47 }
 0x68b   : > { %v5216_v43 = vpop.f32.mrf.mxu1  ;;  %v1648_v57 = vsel %vm1096_vm5, %v6314_v41, -inf  ;;  %v1932_v4 = vsel %vm1096_vm5, %v1922_v63, -inf }
 0x68c   : > { %v1640_v49 = vmul.f32 0.25, %v5216_v43  ;;  %1649 = vmax.xlane.f32.xlu1 %v1648_v57  ;;  %v6320_v59 = vsel %vm769_vm4, %v1637_v46, -1e+30  ;;  %v1921_v9 = vsel %vm769_vm4, %v1917_v48, -1e+30 }
 0x68d   : > { %v1628_v61 = vpop.f32.mrf.mxu1  ;;  %v1645_v62 = vsel %vm1096_vm5, %v6320_v59, -inf  ;;  %v1929_v1 = vsel %vm1096_vm5, %v1921_v9, -inf }
 0x68e   : > { %v1639_v50 = vmul.f32 0.25, %v1628_v61  ;;  %1646 = vmax.xlane.f32.xlu0 %v1645_v62  ;;  %v6328_v39 = vsel %vm769_vm4, %v1640_v49, -1e+30 }
 0x68f   : > { %v1654_v0 = vsel %vm1096_vm5, %v6328_v39, -inf }
 0x690   : > { %1927 = vmax.xlane.f32.xlu1 %v1926_v45  ;;  %v1643_v3 = vsel %vm769_vm4, %v1639_v50, -1e+30 }
 0x691   : > { %v1651_v5 = vsel %vm1096_vm5, %v1643_v3, -inf }
 0x692   : > { %1655 = vmax.xlane.f32.xlu0 %v1654_v0 }
 0x694   : > { %1933 = vmax.xlane.f32.xlu1 %v1932_v4 }
 0x696   : > { %1652 = vmax.xlane.f32.xlu0 %v1651_v5 }
 0x69a   : > { %1924 = vmax.xlane.f32.xlu0 %v1923_v7 }
 0x69e   : > { %1930 = vmax.xlane.f32.xlu0 %v1929_v1 }
 0x715   : > { %v1650_v10 = vpop.xlane.xlu1 %1649 }
 0x716   : > { %v1658_v49 = vsub.f32 %v6314_v41, %v1650_v10 }
 0x717   : > { %v1647_v11 = vpop.xlane.xlu0 %1646 }
 0x718   : > { %v1663_v61 = vmul.f32 1.442695, %v1658_v49  ;;  %v2138_v49 = vld [vmem:[%s7513_s9 + $0x10] sm:$0xff] }
 0x719   : > { %v1928_v13 = vpop.xlane.xlu1 %1927 }
 0x71a   : > { %v1936_v56 = vsub.f32 %v1920_v60, %v1928_v13  ;;  %v1657_v60 = vsub.f32 %v6320_v59, %v1647_v11 }
 0x71b   : > { %v1656_v12 = vpop.xlane.xlu0 %1655 }
 0x71c   : > { %v1941_v14 = vmul.f32 1.442695, %v1936_v56  ;;  %v1660_v62 = vsub.f32 %v6328_v39, %v1656_v12  ;;  %v1661_v50 = vmul.f32 1.442695, %v1657_v60  ;;  %v2137_v60 = vld [vmem:[%s7513_s9 + $0x8] sm:$0xff] }
 0x71d   : > { %v1934_v15 = vpop.xlane.xlu1 %1933 }
 0x71e   : > { %5522 = vpow2.f32 %v1941_v14  ;;  %v1938_v16 = vsub.f32 %v1922_v63, %v1934_v15  ;;  %v1667_v63 = vmul.f32 1.442695, %v1660_v62 }
 0x71f   : > { %v1653_v17 = vpop.xlane.xlu0 %1652 }
 0x720   : > { %v1945_v18 = vmul.f32 1.442695, %v1938_v16  ;;  %v1659_v45 = vsub.f32 %v1643_v3, %v1653_v17 }
 0x722   : > { %5524 = vpow2.f32 %v1945_v18  ;;  %v1665_v0 = vmul.f32 1.442695, %v1659_v45 }
 0x723   : > { %v1925_v19 = vpop.xlane.xlu0 %1924 }
 0x724   : > { %v1935_v20 = vsub.f32 %v1919_v51, %v1925_v19 }
 0x726   : > { %v1939_v22 = vmul.f32 1.442695, %v1935_v20 }
 0x727   : > { %v1931_v32 = vpop.xlane.xlu0 %1930 }
 0x728   : > { %5526 = vpow2.f32 %v1939_v22  ;;  %v1937_v34 = vsub.f32 %v1921_v9, %v1931_v32 }
 0x72a   : > { %v1943_v36 = vmul.f32 1.442695, %v1937_v34 }
 0x72b   : > { %v6345_v37 = vpop.eup %5522 }
 0x72c   : > { %5528 = vpow2.f32 %v1943_v36  ;;  %v1950_v38 = vsel %vm1096_vm5, %v6345_v37, 0.0 }
 0x72d   : > { %1951 = vadd.xlane.f32.xlu1 %v1950_v38  ;;  %5530 = vpow2.f32 %v1663_v61  ;;  %v2136_v61 = vld [vmem:[%s7513_s9] sm:$0xff] }
 0x72e   : > { %5532 = vpow2.f32 %v1661_v50 }
 0x72f   : > { %v6349_v40 = vpop.eup %5524  ;;  %5534 = vpow2.f32 %v1667_v63 }
 0x730   : > { %v1956_v42 = vsel %vm1096_vm5, %v6349_v40, 0.0  ;;  %5536 = vpow2.f32 %v1665_v0 }
 0x731   : > { %1957 = vadd.xlane.f32.xlu1 %v1956_v42 }
 0x735   : > { %v6353_v46 = vpop.eup %5526 }
 0x736   : > { %v1947_v43 = vsel %vm1096_vm5, %v6353_v46, 0.0 }
 0x737   : > { %1948 = vadd.xlane.f32.xlu0 %v1947_v43  ;;  %v2143_v43 = vld [vmem:[%s7513_s9 + $0x38] sm:$0xff] }
 0x739   : > { %v6357_v57 = vpop.eup %5528 }
 0x73a   : > { %v1953_v58 = vsel %vm1096_vm5, %v6357_v57, 0.0 }
 0x73b   : > { %1954 = vadd.xlane.f32.xlu0 %v1953_v58  ;;  %v2139_v58 = vld [vmem:[%s7513_s9 + $0x18] sm:$0xff] }
 0x742   : > { %1693 = vrot.lane.b32.xlu1 %v6073_v53, %s7540_s29 }
 0x746   : > { %1691 = vrot.lane.b32.xlu1 %v6077_v54, %s7540_s29 }
 0x74a   : > { %1689 = vrot.lane.b32.xlu1 %v6085_v55, %s7540_s29 }
 0x74e   : > { %1971 = vrot.lane.b32.xlu1 %v6073_v53, %s7536_s26  ;;  %v5531_v53 = vpop.eup %5530 }
 0x74f   : > { %v5533_v2 = vpop.eup %5532  ;;  %v1672_v47 = vsel %vm1096_vm5, %v5531_v53, 0.0 }
 0x750   : > { %v1669_v41 = vsel %vm1096_vm5, %v5533_v2, 0.0 }
 0x751   : > { %1695 = vrot.lane.b32.xlu0 %v6067_v52, %s7540_s29  ;;  %s7578_s29 = smov 48  }
 0x755   : > { %1973 = vrot.lane.b32.xlu0 %v6067_v52, %s7536_s26  ;;  %v5535_v52 = vpop.eup %5534 }
 0x756   : > { %v5537_v59 = vpop.eup %5536  ;;  %v1678_v39 = vsel %vm1096_vm5, %v5535_v52, 0.0 }
 0x757   : > { %v1675_v3 = vsel %vm1096_vm5, %v5537_v59, 0.0 }
 0x772   : > { %1673 = vadd.xlane.f32.xlu1 %v1672_v47 }
 0x774   : > { %1670 = vadd.xlane.f32.xlu0 %v1669_v41 }
 0x776   : > { %1679 = vadd.xlane.f32.xlu1 %v1678_v39 }
 0x778   : > { %1676 = vadd.xlane.f32.xlu0 %v1675_v3 }
 0x787   : > { %1967 = vrot.lane.b32.xlu1 %v6085_v55, %s7536_s26 }
 0x78b   : > { %2082 = vrot.lane.b32.xlu1 %v6304_v29, %s7538_s30 }
 0x78e   : > { %1969 = vrot.lane.b32.xlu0 %v6077_v54, %s7536_s26 }
 0x78f   : > { %2086 = vrot.lane.b32.xlu1 %v6308_v31, %s7538_s30 }
 0x792   : > { %2080 = vrot.lane.b32.xlu0 %v6306_v30, %s7538_s30 }
 0x796   : > { %2084 = vrot.lane.b32.xlu0 %v6310_v33, %s7538_s30  ;;  %s7577_s30 = smov 64  }
 0x7b6   : > { %v1952_v4 = vpop.xlane.xlu1 %1951 }
 0x7ba   : > { %v1958_v5 = vpop.xlane.xlu1 %1957 }
 0x7be   : > { %v1694_v51 = vpop.permute.xlu1 %1693 }
 0x7c0   : > { %v1949_v48 = vpop.xlane.xlu0 %1948 }
 0x7c2   : > { %v1692_v7 = vpop.permute.xlu1 %1691 }
 0x7c4   : > { %v1955_v55 = vpop.xlane.xlu0 %1954 }
 0x7c6   : > { %v1690_v54 = vpop.permute.xlu1 %1689 }
 0x7c8   : > { %v1696_v9 = vpop.permute.xlu0 %1695 }
 0x7c9   : > { %5217 = vmatprep.subr.mxu1 %v1696_v9 }
 0x7ca   : > { %5218 = vmatpush3.msra.mxu1 %v1696_v9  ;;  %v1972_v30 = vpop.permute.xlu1 %1971 }
 0x7cb   : > { %5219 = vmatprep.subr.mxu1 %v1694_v51 }
 0x7cc   : > { %5220 = vmatpush3.msra.mxu1 %v1694_v51  ;;  %v1974_v29 = vpop.permute.xlu0 %1973 }
 0x7cd   : > { %5221 = vmatprep.subr.mxu1 %v1692_v7 }
 0x7ce   : > { %5222 = vmatpush3.msra.mxu1 %v1692_v7 }
 0x7cf   : > { %5223 = vmatprep.subr.mxu1 %v1690_v54 }
 0x7d0   : > { %5224 = vmatpush3.msra.mxu1 %v1690_v54 }
 0x7d1   : > { %5245 = vmatprep.subr.mxu1 %v1974_v29 }
 0x7fb   : > { %v1674_v31 = vpop.xlane.xlu1 %1673 }
 0x7fc   : > { %5538 = vrcp.f32 %v1674_v31 }
 0x7fd   : > { %v1671_v33 = vpop.xlane.xlu0 %1670 }
 0x7fe   : > { %5540 = vrcp.f32 %v1671_v33 }
 0x7ff   : > { %v1680_v1 = vpop.xlane.xlu1 %1679  ;;  %5542 = vrcp.f32 %v1949_v48 }
 0x800   : > { %5544 = vrcp.f32 %v1680_v1 }
 0x801   : > { %v1677_v10 = vpop.xlane.xlu0 %1676 }
 0x802   : > { %5546 = vrcp.f32 %v1677_v10 }
 0x803   : > { %5548 = vrcp.f32 %v1952_v4  ;;  %v1968_v34 = vpop.permute.xlu1 %1967 }
 0x804   : > { %5550 = vrcp.f32 %v1955_v55 }
 0x805   : > { %5552 = vrcp.f32 %v1958_v5  ;;  %v1970_v20 = vpop.permute.xlu0 %1969 }
 0x809   : > { %v5539_v11 = vpop.eup %5538  ;;  %v2081_v41 = vpop.permute.xlu0 %2080 }
 0x80a   : > { %v1686_v14 = vmul.f32 %v5539_v11, %v5531_v53  ;;  %v2124_v48 = vsel %vm986_vm3, %v6298_v26, %v2081_v41  ;;  %v2340_v41 = vld [vmem:[%s7517_s13 + $0x70] sm:$0xff] }
 0x80b   : > { %v5541_v13 = vpop.eup %5540 }
 0x80c   : > { %v1685_v56 = vmul.f32 %v5541_v13, %v5533_v2  ;;  %v5543_v12 = vpop.eup %5542 }
 0x80d   : > { %v5545_v15 = vpop.eup %5544  ;;  %v1963_v22 = vmul.f32 %v5543_v12, %v6353_v46  ;;  %v2085_v39 = vpop.permute.xlu0 %2084 }
 0x80e   : > { %5225 = vmatprep.mubr.msk.f32.mxu1 %vm1096_vm5, %v1685_v56  ;;  %v1688_v18 = vmul.f32 %v5545_v15, %v5535_v52  ;;  %v2083_v52 = vpop.permute.xlu1 %2082  ;;  %v2126_v26 = vsel %vm986_vm3, %v6302_v28, %v2085_v39  ;;  %v4712_v28 = vld [vmem:[%s7514_s10] ss:$0 sm:$0xff] }
 0x80f   : > { %v5547_v16 = vpop.eup %5546  ;;  %5226 = vmatmul.mubr.msk.f32.vlgmr.msra.gmra.mxu1 %vm1096_vm5, %v1686_v14  ;;  %v2125_v51 = vsel %vm986_vm3, %v6296_v24, %v2083_v52  ;;  %v2341_v52 = vld [vmem:[%s7517_s13 + $0x78] sm:$0xff]  ;;  %v2338_v39 = vld [vmem:[%s7517_s13 + $0x60] sm:$0xff] }
 0x810   : > { %5246 = vmatpush3.msra.mxu1 %v1974_v29  ;;  %v1687_v17 = vmul.f32 %v5547_v16, %v5537_v59  ;;  %v5549_v19 = vpop.eup %5548  ;;  %2382 = vmatprep.subr.mxu0 %v2341_v52  ;;  %v2521_v52 = vld [vmem:[%s7519_s15 + $0xd0] sm:$0xff] }
 0x811   : > { %5247 = vmatprep.subr.mxu1 %v1972_v30  ;;  %v5551_v32 = vpop.eup %5550  ;;  %v1964_v36 = vmul.f32 %v5549_v19, %v6345_v37  ;;  %v2142_v37 = vld [vmem:[%s7513_s9 + $0x30] sm:$0xff]  ;;  %2383 = vmatpush1.msra.mxu0 %v2340_v41 }
 0x812   : > { %5248 = vmatpush3.msra.mxu1 %v1972_v30  ;;  %5228 = vmatprep.mubr.msk.f32.mxu1 %vm1096_vm5, %v1687_v17  ;;  %v5553_v38 = vpop.eup %5552  ;;  %v1965_v42 = vmul.f32 %v5551_v32, %v6357_v57  ;;  %v2141_v57 = vld [vmem:[%s7513_s9 + $0x28] sm:$0xff]  ;;  %v2087_v59 = vpop.permute.xlu1 %2086  ;;  %v2505_v41 = vld [vmem:[%s7519_s15 + $0x50] sm:$0xff] }
 0x813   : > { %5249 = vmatprep.subr.mxu1 %v1970_v20  ;;  %5229 = vmatmul.mubr.msk.f32.gmra.mxu1 %vm1096_vm5, %v1688_v18  ;;  %v1966_v46 = vmul.f32 %v5553_v38, %v6349_v40  ;;  %v2140_v40 = vld [vmem:[%s7513_s9 + $0x20] sm:$0xff]  ;;  %v2127_v24 = vsel %vm986_vm3, %v6300_v27, %v2087_v59  ;;  %v2339_v59 = vld [vmem:[%s7517_s13 + $0x68] sm:$0xff] }
 0x814   : > { %5250 = vmatpush3.msra.mxu1 %v1970_v20  ;;  %5253 = vmatprep.mubr.msk.f32.mxu1 %vm1096_vm5, %v1963_v22 }
 0x815   : > { %5251 = vmatprep.subr.mxu1 %v1968_v34  ;;  %2384 = vmatprep.subr.mxu0 %v2339_v59  ;;  %v2520_v59 = vld [vmem:[%s7519_s15 + $0xc8] sm:$0xff] }
 0x816   : > { %5252 = vmatpush3.msra.mxu1 %v1968_v34  ;;  %2385 = vmatpush1.msra.mxu0 %v2338_v39  ;;  %v2504_v39 = vld [vmem:[%s7519_s15 + $0x48] sm:$0xff] }
 0x817   : > { %5254 = vmatmul.mubr.msk.f32.vlgmr.msra.gmra.mxu1 %vm1096_vm5, %v1964_v36  ;;  %5259 = vmatprep.subr.mxu1 %v2143_v43 }
 0x818   : > { %5256 = vmatprep.mubr.msk.f32.mxu1 %vm1096_vm5, %v1965_v42  ;;  %5260 = vmatpush3.msra.mxu1 %v2143_v43 }
 0x819   : > { %5261 = vmatprep.subr.mxu1 %v2142_v37 }
 0x81a   : > { %5262 = vmatpush3.msra.mxu1 %v2142_v37 }
 0x81b   : > { %5257 = vmatmul.mubr.msk.f32.gmra.mxu1 %vm1096_vm5, %v1966_v46  ;;  %5263 = vmatprep.subr.mxu1 %v2141_v57 }
 0x81c   : > { %5264 = vmatpush3.msra.mxu1 %v2141_v57 }
 0x81d   : > { %5265 = vmatprep.subr.mxu1 %v2140_v40 }
 0x81e   : > { %5266 = vmatpush3.msra.mxu1 %v2140_v40 }
 0x81f   : > { %5267 = vmatprep.subr.mxu1 %v2139_v58 }
 0x820   : > { %5268 = vmatpush3.msra.mxu1 %v2139_v58 }
 0x821   : > { %5269 = vmatprep.subr.mxu1 %v2138_v49 }
 0x822   : > { %5270 = vmatpush3.msra.mxu1 %v2138_v49 }
 0x823   : > { %5271 = vmatprep.subr.mxu1 %v2137_v60 }
 0x824   : > { %5272 = vmatpush3.msra.mxu1 %v2137_v60 }
 0x825   : > { %5273 = vmatprep.subr.mxu1 %v2136_v61 }
 0x826   : > { %5274 = vmatpush3.msra.mxu1 %v2136_v61 }
 0x8cf   : > { %v5227_v62 = vpop.f32.mrf.mxu1 }
 0x8d0   : > { %2098 = vrot.lane.b32.xlu1 %v5227_v62, %s7546_s0 }
 0x8d1   : > { %v1779_v50 = vpop.f32.mrf.mxu1 }
 0x8d2   : > { %2096 = vrot.lane.b32.xlu0 %v1779_v50, %s7546_s0 }
 0x8d3   : > { %v5230_v45 = vpop.f32.mrf.mxu1 }
 0x8d5   : > { %v1789_v63 = vpop.f32.mrf.mxu1 }
 0x8d7   : > { %v5255_v0 = vpop.f32.mrf.mxu1 }
 0x8d8   : > { %2114 = vrot.lane.b32.xlu1 %v5255_v0, %s7548_s2 }
 0x8d9   : > { %v2057_v53 = vpop.f32.mrf.mxu1 }
 0x8da   : > { %2112 = vrot.lane.b32.xlu0 %v2057_v53, %s7548_s2 }
 0x8db   : > { %v5258_v2 = vpop.f32.mrf.mxu1 }
 0x8dc   : > { %2102 = vrot.lane.b32.xlu1 %v5230_v45, %s7546_s0 }
 0x8dd   : > { %v2067_v47 = vpop.f32.mrf.mxu1 }
 0x8de   : > { %2100 = vrot.lane.b32.xlu0 %v1789_v63, %s7546_s0 }
 0x8e0   : > { %2118 = vrot.lane.b32.xlu1 %v5258_v2, %s7548_s2 }
 0x8e2   : > { %2116 = vrot.lane.b32.xlu0 %v2067_v47, %s7548_s2  ;;  %s7583_s2 = smov 80  }
 0x942   : > { %v2099_v3 = vpop.permute.xlu1 %2098 }
 0x943   : > { %v2129_v9 = vsel %vm1096_vm5, %v2125_v51, %v2099_v3  ;;  %v2337_v3 = vld [vmem:[%s7517_s13 + $0x58] sm:$0xff] }
 0x944   : > { %v2097_v4 = vpop.permute.xlu0 %2096  ;;  %2386 = vmatprep.subr.mxu0 %v2337_v3  ;;  %v2333_v51 = vld [vmem:[%s7517_s13 + $0x38] sm:$0xff]  ;;  %v2519_v3 = vld [vmem:[%s7519_s15 + $0xc0] sm:$0xff] }
 0x945   : > { %v2128_v55 = vsel %vm1096_vm5, %v2124_v48, %v2097_v4  ;;  %v2336_v4 = vld [vmem:[%s7517_s13 + $0x50] sm:$0xff]  ;;  %v2334_v48 = vld [vmem:[%s7517_s13 + $0x40] sm:$0xff] }
 0x946   : > { %2387 = vmatpush1.msra.mxu0 %v2336_v4  ;;  %v2503_v4 = vld [vmem:[%s7519_s15 + $0x40] sm:$0xff] }
 0x94a   : > { %v2115_v5 = vpop.permute.xlu1 %2114 }
 0x94b   : > { %v2133_v29 = vsel %vm669_vm0, %v2129_v9, %v2115_v5  ;;  %v2335_v5 = vld [vmem:[%s7517_s13 + $0x48] sm:$0xff]  ;;  %v2330_v9 = vld [vmem:[%s7517_s13 + $0x20] sm:$0xff] }
 0x94c   : > { %v2113_v7 = vpop.permute.xlu0 %2112  ;;  %2388 = vmatprep.subr.mxu0 %v2335_v5  ;;  %v2518_v5 = vld [vmem:[%s7519_s15 + $0xb8] sm:$0xff] }
 0x94d   : > { %v2132_v54 = vsel %vm669_vm0, %v2128_v55, %v2113_v7  ;;  %2389 = vmatpush1.msra.mxu0 %v2334_v48  ;;  %v2332_v55 = vld [vmem:[%s7517_s13 + $0x30] sm:$0xff]  ;;  %v2331_v7 = vld [vmem:[%s7517_s13 + $0x28] sm:$0xff]  ;;  %v2502_v48 = vld [vmem:[%s7519_s15 + $0x38] sm:$0xff] }
 0x94e   : > { %5275 = vmatprep.mubr.msk.f32.mxu1 %vm772_vm2, %v2132_v54  ;;  %v2103_v30 = vpop.permute.xlu1 %2102  ;;  %2390 = vmatprep.subr.mxu0 %v2333_v51  ;;  %v2329_v54 = vld [vmem:[%s7517_s13 + $0x18] sm:$0xff]  ;;  %v2517_v51 = vld [vmem:[%s7519_s15 + $0xb0] sm:$0xff] }
 0x94f   : > { %5276 = vmatmul.mubr.msk.f32.vlgmr.msra.gmra.mxu1 %vm772_vm2, %v2133_v29  ;;  %v2131_v11 = vsel %vm1096_vm5, %v2127_v24, %v2103_v30  ;;  %2391 = vmatpush1.msra.mxu0 %v2332_v55  ;;  %v2328_v29 = vld [vmem:[%s7517_s13 + $0x10] sm:$0xff]  ;;  %v2327_v30 = vld [vmem:[%s7517_s13 + $0x8] sm:$0xff] }
 0x950   : > { %v2101_v31 = vpop.permute.xlu0 %2100  ;;  %2392 = vmatprep.subr.mxu0 %v2331_v7  ;;  %v2525_v24 = vld [vmem:[%s7519_s15 + $0xf0] sm:$0xff]  ;;  %v2516_v7 = vld [vmem:[%s7519_s15 + $0xa8] sm:$0xff] }
 0x951   : > { %v2130_v1 = vsel %vm1096_vm5, %v2126_v26, %v2101_v31  ;;  %2393 = vmatpush1.msra.mxu0 %v2330_v9  ;;  %v2326_v31 = vld [vmem:[%s7517_s13] sm:$0xff]  ;;  %v2526_v26 = vld [vmem:[%s7519_s15 + $0xf8] sm:$0xff]  ;;  %v2501_v55 = vld [vmem:[%s7519_s15 + $0x30] sm:$0xff] }
 0x952   : > { %v2119_v33 = vpop.permute.xlu1 %2118  ;;  %2394 = vmatprep.subr.mxu0 %v2329_v54  ;;  %4959 = vmatprep.subr.mxu1 %v2526_v26  ;;  %v2500_v9 = vld [vmem:[%s7519_s15 + $0x28] sm:$0xff]  ;;  %v2515_v54 = vld [vmem:[%s7519_s15 + $0xa0] sm:$0xff]  ;;  %v2513_v26 = vld [vmem:[%s7519_s15 + $0x90] sm:$0xff] }
 0x953   : > { %v2135_v56 = vsel %vm669_vm0, %v2131_v11, %v2119_v33  ;;  %2395 = vmatpush1.msra.mxu0 %v2328_v29  ;;  %v2510_v33 = vld [vmem:[%s7519_s15 + $0x78] sm:$0xff]  ;;  %v2508_v11 = vld [vmem:[%s7519_s15 + $0x68] sm:$0xff]  ;;  %v2499_v29 = vld [vmem:[%s7519_s15 + $0x20] sm:$0xff] }
 0x954   : > { %v2117_v10 = vpop.permute.xlu0 %2116  ;;  %2396 = vmatprep.subr.mxu0 %v2327_v30  ;;  %4960 = vmatpush3.msra.mxu1 %v2510_v33  ;;  %v2514_v30 = vld [vmem:[%s7519_s15 + $0x98] sm:$0xff]  ;;  %v2497_v33 = vld [vmem:[%s7519_s15 + $0x10] sm:$0xff] }
 0x955   : > { %v2134_v13 = vsel %vm669_vm0, %v2130_v1, %v2117_v10  ;;  %2397 = vmatpush1.msra.mxu0 %v2326_v31  ;;  %v2509_v1 = vld [vmem:[%s7519_s15 + $0x70] sm:$0xff]  ;;  %v2524_v10 = vld [vmem:[%s7519_s15 + $0xe8] sm:$0xff]  ;;  %4961 = vmatprep.subr.mxu1 %v2525_v24  ;;  %v2498_v31 = vld [vmem:[%s7519_s15 + $0x18] sm:$0xff] }
 0x956   : > { %5278 = vmatprep.mubr.msk.f32.mxu1 %vm772_vm2, %v2134_v13  ;;  %4962 = vmatpush3.msra.mxu1 %v2509_v1  ;;  %v2512_v24 = vld [vmem:[%s7519_s15 + $0x88] sm:$0xff] }
 0x957   : > { %5279 = vmatmul.mubr.msk.f32.gmra.mxu1 %vm772_vm2, %v2135_v56  ;;  %4963 = vmatprep.subr.mxu1 %v2524_v10  ;;  %v2496_v1 = vld [vmem:[%s7519_s15 + $0x8] sm:$0xff]  ;;  %v2511_v10 = vld [vmem:[%s7519_s15 + $0x80] sm:$0xff] }
 0x958   : > { %4964 = vmatpush3.msra.mxu1 %v2508_v11  ;;  %v2495_v11 = vld [vmem:[%s7519_s15] sm:$0xff] }
 0xa0f   : > { %v5277_v12 = vpop.f32.mrf.mxu1 }
 0xa10   : > { %v2235_v14 = vadd.f32 %v5277_v12, %v4712_v28 }
 0xa11   : > { %v2229_v27 = vpop.f32.mrf.mxu1 }
 0xa12   : > { %v6460_v15 = vadd.f32 %v2235_v14, %v5952_v25  ;;  %v2230_v16 = vadd.f32 %v4712_v28, %v2229_v27 }
 0xa14   : > { %v6463_v17 = vadd.f32 %v2230_v16, %v5948_v23  ;;  %v2257_v18 = vsel %vm772_vm2, %v6460_v15, 0.0 }
 0xa15   : > { %2258 = vadd.xlane.f32.xlu1 %v2257_v18 }
 0xa16   : > { %v2254_v19 = vsel %vm772_vm2, %v6463_v17, 0.0 }
 0xa17   : > { %2255 = vadd.xlane.f32.xlu0 %v2254_v19  ;;  %v5280_v20 = vpop.f32.mrf.mxu1 }
 0xa18   : > { %v6472_v25 = vadd.f32 %v5280_v20, %v4712_v28 }
 0xa19   : > { %v2239_v22 = vpop.f32.mrf.mxu1 }
 0xa1a   : > { %v2240_v32 = vadd.f32 %v4712_v28, %v2239_v22  ;;  %v2263_v36 = vsel %vm772_vm2, %v6472_v25, 0.0 }
 0xa1c   : > { %v6470_v34 = vadd.f32 %v2240_v32, %v5944_v21 }
 0xa1e   : > { %v2260_v23 = vsel %vm772_vm2, %v6470_v34, 0.0 }
 0xa1f   : > { %2261 = vadd.xlane.f32.xlu0 %v2260_v23 }
 0xa23   : > { %2264 = vadd.xlane.f32.xlu0 %v2263_v36 }
 0xa9e   : > { %v2259_v38 = vpop.xlane.xlu1 %2258 }
 0xa9f   : > { %v2267_v42 = vmul.f32 0.015625, %v2259_v38 }
 0xaa0   : > { %v2256_v46 = vpop.xlane.xlu0 %2255 }
 0xaa1   : > { %v6479_v43 = vsub.f32 %v6460_v15, %v2267_v42  ;;  %v2266_v37 = vmul.f32 0.015625, %v2256_v46  ;;  %v4717_v46 = vld [vmem:[%s7515_s11] ss:$0 sm:$0xff] }
 0xaa3   : > { %v6482_v21 = vsub.f32 %v6463_v17, %v2266_v37  ;;  %v2275_v57 = vmul.f32 %v6479_v43, %v6479_v43 }
 0xaa5   : > { %v2281_v40 = vsel %vm772_vm2, %v2275_v57, 0.0  ;;  %v2274_v58 = vmul.f32 %v6482_v21, %v6482_v21  ;;  %v4718_v57 = vld [vmem:[%s7516_s12] ss:$0 sm:$0xff] }
 0xaa6   : > { %2282 = vadd.xlane.f32.xlu1 %v2281_v40 }
 0xaa7   : > { %v2278_v49 = vsel %vm772_vm2, %v2274_v58, 0.0 }
 0xaa8   : > { %2279 = vadd.xlane.f32.xlu0 %v2278_v49  ;;  %v2262_v60 = vpop.xlane.xlu0 %2261 }
 0xaa9   : > { %v2268_v61 = vmul.f32 0.015625, %v2262_v60 }
 0xaab   : > { %v6491_v62 = vsub.f32 %v6470_v34, %v2268_v61 }
 0xaac   : > { %v2265_v50 = vpop.xlane.xlu0 %2264 }
 0xaad   : > { %v2269_v45 = vmul.f32 0.015625, %v2265_v50  ;;  %v2276_v63 = vmul.f32 %v6491_v62, %v6491_v62 }
 0xaaf   : > { %v6496_v0 = vsub.f32 %v6472_v25, %v2269_v45  ;;  %v2284_v53 = vsel %vm772_vm2, %v2276_v63, 0.0 }
 0xab0   : > { %2285 = vadd.xlane.f32.xlu0 %v2284_v53 }
 0xab1   : > { %v2277_v2 = vmul.f32 %v6496_v0, %v6496_v0 }
 0xab3   : > { %v2287_v47 = vsel %vm772_vm2, %v2277_v2, 0.0  ;;  %v2507_v2 = vld [vmem:[%s7519_s15 + $0x60] sm:$0xff] }
 0xab4   : > { %2288 = vadd.xlane.f32.xlu1 %v2287_v47  ;;  %v2506_v47 = vld [vmem:[%s7519_s15 + $0x58] sm:$0xff] }
 0xb2f   : > { %v2283_v13 = vpop.xlane.xlu1 %2282 }
 0xb30   : > { %v2291_v56 = vmul.f32 0.015625, %v2283_v13  ;;  %v2342_v13 = vld [vmem:[%s7518_s14] sm:$0x3] }
 0xb31   : > { %v2280_v28 = vpop.xlane.xlu0 %2279 }
 0xb32   : > { %v2295_v12 = vadd.f32 1e-05, %v2291_v56  ;;  %v2290_v14 = vmul.f32 0.015625, %v2280_v28  ;;  %v2347_v56 = vrot.slane %v2342_v13, %v6046_v35  ;;  %v2351_v28 = vrot.slane %v2342_v13, %v6056_v44 }
 0xb34   : > { %5554 = vrsqrt.f32 %v2295_v12  ;;  %v2294_v27 = vadd.f32 1e-05, %v2290_v14 }
 0xb36   : > { %5556 = vrsqrt.f32 %v2294_v27 }
 0xb39   : > { %v2286_v16 = vpop.xlane.xlu0 %2285 }
 0xb3a   : > { %v2292_v18 = vmul.f32 0.015625, %v2286_v16 }
 0xb3c   : > { %v2296_v19 = vadd.f32 1e-05, %v2292_v18 }
 0xb3d   : > { %v2289_v20 = vpop.xlane.xlu1 %2288 }
 0xb3e   : > { %5558 = vrsqrt.f32 %v2296_v19  ;;  %v2293_v22 = vmul.f32 0.015625, %v2289_v20 }
 0xb40   : > { %v2297_v32 = vadd.f32 1e-05, %v2293_v22 }
 0xb41   : > { %v5555_v23 = vpop.eup %5554 }
 0xb42   : > { %5560 = vrsqrt.f32 %v2297_v32  ;;  %v2303_v42 = vmul.f32 %v5555_v23, %v6479_v43 }
 0xb43   : > { %v5557_v36 = vpop.eup %5556 }
 0xb44   : > { %v2302_v38 = vmul.f32 %v5557_v36, %v6482_v21  ;;  %v2313_v58 = vmul.f32 %v4717_v46, %v2303_v42 }
 0xb46   : > { %v2312_v37 = vmul.f32 %v4717_v46, %v2302_v38  ;;  %v2323_v60 = vadd.f32 %v4718_v57, %v2313_v58 }
 0xb48   : > { %v2322_v40 = vadd.f32 %v4718_v57, %v2312_v37 }
 0xb4a   : > { %4719 = vmatmul.mubr.msk.f32.vlgmr.msra.gmra.mxu0 %vm772_vm2, %v2322_v40 }
 0xb4b   : > { %v5559_v49 = vpop.eup %5558  ;;  %2436 = vmatprep.mubr.f32.mxu0 %v5738_v8 }
 0xb4c   : > { %v2304_v21 = vmul.f32 %v5559_v49, %v6491_v62  ;;  %v2523_v62 = vld [vmem:[%s7519_s15 + $0xe0] sm:$0xff] }
 0xb4d   : > { %4965 = vmatprep.subr.mxu1 %v2523_v62 }
 0xb4e   : > { %4720 = vmatmul.mubr.msk.f32.gmra.mxu0 %vm772_vm2, %v2323_v60  ;;  %v2314_v43 = vmul.f32 %v4717_v46, %v2304_v21  ;;  %4966 = vmatpush3.msra.mxu1 %v2507_v2 }
 0xb4f   : > { %v5561_v61 = vpop.eup %5560  ;;  %2442 = vmatprep.mubr.f32.mxu0 %v5738_v8 }
 0xb50   : > { %v2324_v50 = vadd.f32 %v4718_v57, %v2314_v43  ;;  %v2305_v45 = vmul.f32 %v5561_v61, %v6496_v0  ;;  %v2522_v0 = vld [vmem:[%s7519_s15 + $0xd8] sm:$0xff] }
 0xb51   : > { %4967 = vmatprep.subr.mxu1 %v2522_v0 }
 0xb52   : > { %4721 = vmatmul.mubr.msk.f32.gmra.mxu0 %vm772_vm2, %v2324_v50  ;;  %v2315_v63 = vmul.f32 %v4717_v46, %v2305_v45  ;;  %4968 = vmatpush3.msra.mxu1 %v2506_v47 }
 0xb53   : > { %2448 = vmatprep.mubr.f32.mxu0 %v5738_v8  ;;  %4969 = vmatprep.subr.mxu1 %v2521_v52 }
 0xb54   : > { %v2325_v53 = vadd.f32 %v4718_v57, %v2315_v63  ;;  %4970 = vmatpush3.msra.mxu1 %v2505_v41 }
 0xb55   : > { %4971 = vmatprep.subr.mxu1 %v2520_v59 }
 0xb56   : > { %4722 = vmatmul.mubr.msk.f32.gmra.mxu0 %vm772_vm2, %v2325_v53  ;;  %4972 = vmatpush3.msra.mxu1 %v2504_v39 }
 0xb57   : > { %2805 = vmatprep.mubr.f32.mxu0 %v5738_v8  ;;  %4973 = vmatprep.subr.mxu1 %v2519_v3 }
 0xb58   : > { %4974 = vmatpush3.msra.mxu1 %v2503_v4 }
 0xb59   : > { %4975 = vmatprep.subr.mxu1 %v2518_v5 }
 0xb5a   : > { %4976 = vmatpush3.msra.mxu1 %v2502_v48 }
 0xb5b   : > { %4977 = vmatprep.subr.mxu1 %v2517_v51 }
 0xb5c   : > { %4978 = vmatpush3.msra.mxu1 %v2501_v55 }
 0xb5d   : > { %4979 = vmatprep.subr.mxu1 %v2516_v7 }
 0xb5e   : > { %4980 = vmatpush3.msra.mxu1 %v2500_v9 }
 0xb5f   : > { %4981 = vmatprep.subr.mxu1 %v2515_v54 }
 0xb60   : > { %4982 = vmatpush3.msra.mxu1 %v2499_v29 }
 0xb61   : > { %4983 = vmatprep.subr.mxu1 %v2514_v30 }
 0xb62   : > { %4984 = vmatpush3.msra.mxu1 %v2498_v31 }
 0xb63   : > { %4985 = vmatprep.subr.mxu1 %v2513_v26 }
 0xb64   : > { %4986 = vmatpush3.msra.mxu1 %v2497_v33 }
 0xb65   : > { %4987 = vmatprep.subr.mxu1 %v2512_v24 }
 0xb66   : > { %4988 = vmatpush3.msra.mxu1 %v2496_v1 }
 0xb67   : > { %4989 = vmatprep.subr.mxu1 %v2511_v10 }
 0xb68   : > { %4990 = vmatpush3.msra.mxu1 %v2495_v11 }
 0xc0a   : > { %v2432_v12 = vpop.f32.mrf.mxu0 }
 0xc0b   : > { %v2433_v14 = vadd.f32 %v2432_v12, %v2347_v56 }
 0xc0c   : > { %v2434_v27 = vpop.f32.mrf.mxu0 }
 0xc0d   : > { %v2463_v16 = vmul.f32 0.70710677, %v2433_v14  ;;  %v2435_v18 = vadd.f32 %v2434_v27, %v2351_v28  ;;  %v2455_v47 = vmul.f32 0.5, %v2433_v14  ;;  %v4723_v14 = vld [vmem:[%s7520_s16] ss:$0 sm:$0xff] }
 0xc0e   : > { %v2438_v19 = vpop.f32.mrf.mxu0 }
 0xc0f   : > { %5562 = verf.f32 %v2463_v16  ;;  %v2464_v20 = vmul.f32 0.70710677, %v2435_v18  ;;  %v2439_v22 = vadd.f32 %v2438_v19, %v2347_v56  ;;  %v2456_v62 = vmul.f32 0.5, %v2435_v18 }
 0xc10   : > { %v2440_v32 = vpop.f32.mrf.mxu0 }
 0xc11   : > { %5564 = verf.f32 %v2464_v20  ;;  %v2465_v23 = vmul.f32 0.70710677, %v2439_v22  ;;  %v2441_v36 = vadd.f32 %v2440_v32, %v2351_v28  ;;  %v2457_v48 = vmul.f32 0.5, %v2439_v22 }
 0xc12   : > { %v2444_v38 = vpop.f32.mrf.mxu0 }
 0xc13   : > { %5566 = verf.f32 %v2465_v23  ;;  %v2466_v42 = vmul.f32 0.70710677, %v2441_v36  ;;  %v2445_v46 = vadd.f32 %v2444_v38, %v2347_v56  ;;  %v2458_v3 = vmul.f32 0.5, %v2441_v36 }
 0xc14   : > { %v2446_v37 = vpop.f32.mrf.mxu0 }
 0xc15   : > { %5568 = verf.f32 %v2466_v42  ;;  %v2467_v57 = vmul.f32 0.70710677, %v2445_v46  ;;  %v2447_v40 = vadd.f32 %v2446_v37, %v2351_v28  ;;  %v2459_v31 = vmul.f32 0.5, %v2445_v46 }
 0xc16   : > { %v2450_v58 = vpop.f32.mrf.mxu0 }
 0xc17   : > { %5570 = verf.f32 %v2467_v57  ;;  %v2468_v49 = vmul.f32 0.70710677, %v2447_v40  ;;  %v2451_v60 = vadd.f32 %v2450_v58, %v2347_v56  ;;  %v2460_v54 = vmul.f32 0.5, %v2447_v40 }
 0xc18   : > { %v2452_v21 = vpop.f32.mrf.mxu0 }
 0xc19   : > { %5572 = verf.f32 %v2468_v49  ;;  %v2469_v43 = vmul.f32 0.70710677, %v2451_v60  ;;  %v2453_v61 = vadd.f32 %v2452_v21, %v2351_v28  ;;  %v2461_v13 = vmul.f32 0.5, %v2451_v60 }
 0xc1b   : > { %5574 = verf.f32 %v2469_v43  ;;  %v2470_v50 = vmul.f32 0.70710677, %v2453_v61  ;;  %v2462_v10 = vmul.f32 0.5, %v2453_v61 }
 0xc1c   : > { %v5563_v45 = vpop.eup %5562 }
 0xc1d   : > { %5576 = verf.f32 %v2470_v50  ;;  %v2479_v53 = vadd.f32 1.0, %v5563_v45 }
 0xc1e   : > { %v5565_v63 = vpop.eup %5564 }
 0xc1f   : > { %v2480_v2 = vadd.f32 1.0, %v5565_v63  ;;  %v2487_v59 = vmul.f32 %v2479_v53, %v2455_v47 }
 0xc20   : > { %v5567_v0 = vpop.eup %5566 }
 0xc21   : > { %v2488_v52 = vmul.f32 %v2480_v2, %v2456_v62  ;;  %v2481_v39 = vadd.f32 1.0, %v5567_v0 }
 0xc22   : > { %v5569_v41 = vpop.eup %5568 }
 0xc23   : > { %2598 = vmatprep.mubr.f32.mxu1 %v2488_v52  ;;  %v2482_v4 = vadd.f32 1.0, %v5569_v41  ;;  %v2489_v7 = vmul.f32 %v2481_v39, %v2457_v48 }
 0xc24   : > { %v5571_v5 = vpop.eup %5570  ;;  %2599 = vmatmul.mubr.f32.vlgmr.msra.gmra.mxu1 %v2487_v59 }
 0xc25   : > { %v2490_v51 = vmul.f32 %v2482_v4, %v2458_v3  ;;  %v2483_v9 = vadd.f32 1.0, %v5571_v5 }
 0xc26   : > { %v5573_v55 = vpop.eup %5572 }
 0xc27   : > { %2603 = vmatprep.mubr.f32.mxu1 %v2490_v51  ;;  %v2484_v29 = vadd.f32 1.0, %v5573_v55  ;;  %v2491_v24 = vmul.f32 %v2483_v9, %v2459_v31  ;;  %v4742_v9 = vld [vmem:[%s7573_s7 + $0xf0] sm:$0xff] }
 0xc28   : > { %v5575_v30 = vpop.eup %5574  ;;  %2604 = vmatmul.mubr.f32.gmra.mxu1 %v2489_v7  ;;  %v4743_v7 = vld [vmem:[%s7573_s7 + $0xf8] sm:$0xff]  ;;  %v4738_v31 = vld [vmem:[%s7573_s7 + $0xd0] sm:$0xff] }
 0xc29   : > { %v2492_v26 = vmul.f32 %v2484_v29, %v2460_v54  ;;  %v2485_v1 = vadd.f32 1.0, %v5575_v30  ;;  %2757 = vmatprep.subr.mxu0 %v4743_v7  ;;  %v4741_v54 = vld [vmem:[%s7573_s7 + $0xe8] sm:$0xff]  ;;  %v4740_v29 = vld [vmem:[%s7573_s7 + $0xe0] sm:$0xff]  ;;  %v4739_v30 = vld [vmem:[%s7573_s7 + $0xd8] sm:$0xff] }
 0xc2a   : > { %v5577_v33 = vpop.eup %5576  ;;  %2758 = vmatpush1.msra.mxu0 %v4742_v9 }
 0xc2b   : > { %2608 = vmatprep.mubr.f32.mxu1 %v2492_v26  ;;  %v2486_v11 = vadd.f32 1.0, %v5577_v33  ;;  %v2493_v28 = vmul.f32 %v2485_v1, %v2461_v13  ;;  %2759 = vmatprep.subr.mxu0 %v4741_v54  ;;  %v4737_v26 = vld [vmem:[%s7573_s7 + $0xc8] sm:$0xff]  ;;  %v4736_v33 = vld [vmem:[%s7573_s7 + $0xc0] sm:$0xff]  ;;  %v4734_v1 = vld [vmem:[%s7573_s7 + $0xb0] sm:$0xff] }
 0xc2c   : > { %2609 = vmatmul.mubr.f32.gmra.mxu1 %v2491_v24  ;;  %2760 = vmatpush1.msra.mxu0 %v4740_v29  ;;  %v4735_v24 = vld [vmem:[%s7573_s7 + $0xb8] sm:$0xff] }
 0xc2d   : > { %v2494_v56 = vmul.f32 %v2486_v11, %v2462_v10  ;;  %2761 = vmatprep.subr.mxu0 %v4739_v30  ;;  %v4733_v10 = vld [vmem:[%s7573_s7 + $0xa8] sm:$0xff]  ;;  %v4732_v11 = vld [vmem:[%s7573_s7 + $0xa0] sm:$0xff]  ;;  %v4731_v13 = vld [vmem:[%s7573_s7 + $0x98] sm:$0xff] }
 0xc2e   : > { %2762 = vmatpush1.msra.mxu0 %v4738_v31 }
 0xc2f   : > { %2613 = vmatprep.mubr.f32.mxu1 %v2494_v56  ;;  %2763 = vmatprep.subr.mxu0 %v4737_v26  ;;  %v4730_v56 = vld [vmem:[%s7573_s7 + $0x90] sm:$0xff] }
 0xc30   : > { %2614 = vmatmul.mubr.f32.gmra.mxu1 %v2493_v28  ;;  %2764 = vmatpush1.msra.mxu0 %v4736_v33  ;;  %v4729_v28 = vld [vmem:[%s7573_s7 + $0x88] sm:$0xff] }
 0xc31   : > { %2765 = vmatprep.subr.mxu0 %v4735_v24 }
 0xc32   : > { %2766 = vmatpush1.msra.mxu0 %v4734_v1 }
 0xc33   : > { %2767 = vmatprep.subr.mxu0 %v4733_v10 }
 0xc34   : > { %2768 = vmatpush1.msra.mxu0 %v4732_v11 }
 0xc35   : > { %2769 = vmatprep.subr.mxu0 %v4731_v13 }
 0xc36   : > { %2770 = vmatpush1.msra.mxu0 %v4730_v56 }
 0xc37   : > { %2771 = vmatprep.subr.mxu0 %v4729_v28 }
 0xce4   : > { %v4991_v12 = vpop.f32.mrf.mxu1 }
 0xce6   : > { %v4992_v27 = vpop.f32.mrf.mxu1 }
 0xce7   : > { %v4993_v16 = vadd.f32 %v4992_v27, %v4991_v12  ;;  %v4728_v12 = vld [vmem:[%s7573_s7 + $0x80] sm:$0xff] }
 0xce8   : > { %v4994_v18 = vpop.f32.mrf.mxu1  ;;  %2772 = vmatpush1.msra.mxu0 %v4728_v12 }
 0xce9   : > { %v2601_v19 = vadd.f32 %v4993_v16, %v4723_v14 }
 0xcea   : > { %v4995_v20 = vpop.f32.mrf.mxu1 }
 0xceb   : > { %v6673_v22 = vadd.f32 %v2601_v19, %v6463_v17  ;;  %v4996_v32 = vadd.f32 %v4995_v20, %v4994_v18 }
 0xcec   : > { %v4997_v23 = vpop.f32.mrf.mxu1 }
 0xced   : > { %v2606_v36 = vadd.f32 %v4996_v32, %v4723_v14  ;;  %v2627_v38 = vsel %vm772_vm2, %v6673_v22, 0.0 }
 0xcee   : > { %2628 = vadd.xlane.f32.xlu0 %v2627_v38  ;;  %v4998_v42 = vpop.f32.mrf.mxu1 }
 0xcef   : > { %v6678_v46 = vadd.f32 %v2606_v36, %v6460_v15  ;;  %v4999_v37 = vadd.f32 %v4998_v42, %v4997_v23 }
 0xcf0   : > { %v5000_v57 = vpop.f32.mrf.mxu1 }
 0xcf1   : > { %v2611_v40 = vadd.f32 %v4999_v37, %v4723_v14  ;;  %v2630_v58 = vsel %vm772_vm2, %v6678_v46, 0.0 }
 0xcf2   : > { %2631 = vadd.xlane.f32.xlu1 %v2630_v58  ;;  %v5001_v17 = vpop.f32.mrf.mxu1 }
 0xcf3   : > { %v6683_v49 = vadd.f32 %v2611_v40, %v6470_v34  ;;  %v5002_v60 = vadd.f32 %v5001_v17, %v5000_v57  ;;  %v4726_v40 = vld [vmem:[%s7574_s21 + $0x1] ss:$0 sm:$0xff] }
 0xcf4   : > { %v4727_v17 = vld [vmem:[%s7575_s6 + $0x1] ss:$0 sm:$0xff]  ;;  %s4871_s6 = sshll.u32 %s5879_s3, 4  ;;  %s5747_s3 = smov [#allocation2]  }
 0xcf5   : > { %v2616_v21 = vadd.f32 %v5002_v60, %v4723_v14  ;;  %v2633_v43 = vsel %vm772_vm2, %v6683_v49, 0.0 }
 0xcf6   : > { %2634 = vadd.xlane.f32.xlu0 %v2633_v43 }
 0xcf7   : > { %v6688_v15 = vadd.f32 %v2616_v21, %v6472_v25 }
 0xcf9   : > { %v2636_v61 = vsel %vm772_vm2, %v6688_v15, 0.0 }
 0xcfa   : > { %2637 = vadd.xlane.f32.xlu1 %v2636_v61 }
 0xd77   : > { %v2629_v50 = vpop.xlane.xlu0 %2628 }
 0xd78   : > { %v2639_v45 = vmul.f32 0.015625, %v2629_v50 }
 0xd7a   : > { %v6693_v63 = vsub.f32 %v6673_v22, %v2639_v45 }
 0xd7b   : > { %v2632_v34 = vpop.xlane.xlu1 %2631 }
 0xd7c   : > { %v2640_v53 = vmul.f32 0.015625, %v2632_v34  ;;  %v2647_v62 = vmul.f32 %v6693_v63, %v6693_v63 }
 0xd7e   : > { %v6698_v2 = vsub.f32 %v6678_v46, %v2640_v53  ;;  %v2651_v25 = vsel %vm772_vm2, %v2647_v62, 0.0 }
 0xd7f   : > { %2652 = vadd.xlane.f32.xlu0 %v2651_v25  ;;  %v2635_v0 = vpop.xlane.xlu0 %2634 }
 0xd80   : > { %v2641_v47 = vmul.f32 0.015625, %v2635_v0  ;;  %v2648_v52 = vmul.f32 %v6698_v2, %v6698_v2 }
 0xd82   : > { %v6704_v41 = vsub.f32 %v6683_v49, %v2641_v47  ;;  %v2654_v59 = vsel %vm772_vm2, %v2648_v52, 0.0  ;;  %v4744_v52 = vld [vmem:[%s7576_s8 + $0x2] sm:$0x3] }
 0xd83   : > { %2655 = vadd.xlane.f32.xlu1 %v2654_v59  ;;  %v2638_v39 = vpop.xlane.xlu1 %2637  ;;  %v2726_v29 = vrot.slane %v4744_v52, %v6056_v44 }
 0xd84   : > { %v2642_v3 = vmul.f32 0.015625, %v2638_v39  ;;  %v2649_v4 = vmul.f32 %v6704_v41, %v6704_v41 }
 0xd86   : > { %v6710_v5 = vsub.f32 %v6688_v15, %v2642_v3  ;;  %v2657_v48 = vsel %vm772_vm2, %v2649_v4, 0.0 }
 0xd87   : > { %2658 = vadd.xlane.f32.xlu0 %v2657_v48 }
 0xd88   : > { %v2650_v51 = vmul.f32 %v6710_v5, %v6710_v5 }
 0xd8a   : > { %v2660_v55 = vsel %vm772_vm2, %v2650_v51, 0.0 }
 0xd8b   : > { %2661 = vadd.xlane.f32.xlu1 %v2660_v55 }
 0xe08   : > { %v2653_v14 = vpop.xlane.xlu0 %2652 }
 0xe09   : > { %v2663_v27 = vmul.f32 0.015625, %v2653_v14 }
 0xe0b   : > { %v2667_v16 = vadd.f32 1e-05, %v2663_v27 }
 0xe0c   : > { %v2656_v18 = vpop.xlane.xlu1 %2655 }
 0xe0d   : > { %5578 = vrsqrt.f32 %v2667_v16  ;;  %v2664_v19 = vmul.f32 0.015625, %v2656_v18 }
 0xe0f   : > { %v2668_v20 = vadd.f32 1e-05, %v2664_v19 }
 0xe10   : > { %v2659_v32 = vpop.xlane.xlu0 %2658 }
 0xe11   : > { %5580 = vrsqrt.f32 %v2668_v20  ;;  %v2665_v23 = vmul.f32 0.015625, %v2659_v32 }
 0xe13   : > { %v2669_v36 = vadd.f32 1e-05, %v2665_v23 }
 0xe14   : > { %v2662_v38 = vpop.xlane.xlu1 %2661 }
 0xe15   : > { %5582 = vrsqrt.f32 %v2669_v36  ;;  %v2666_v42 = vmul.f32 0.015625, %v2662_v38 }
 0xe17   : > { %v2670_v37 = vadd.f32 1e-05, %v2666_v42 }
 0xe19   : > { %5584 = vrsqrt.f32 %v2670_v37 }
 0xe1a   : > { %v5579_v57 = vpop.eup %5578 }
 0xe1b   : > { %v2675_v58 = vmul.f32 %v5579_v57, %v6693_v63 }
 0xe1d   : > { %v2685_v60 = vmul.f32 %v4726_v40, %v2675_v58 }
 0xe1e   : > { %v5581_v21 = vpop.eup %5580 }
 0xe1f   : > { %v2695_v43 = vadd.f32 %v4727_v17, %v2685_v60  ;;  %v2676_v61 = vmul.f32 %v5581_v21, %v6698_v2 }
 0xe21   : > { %4745 = vmatmul.mubr.msk.f32.vlgmr.msra.gmra.mxu0 %vm772_vm2, %v2695_v43  ;;  %v2686_v50 = vmul.f32 %v4726_v40, %v2676_v61 }
 0xe22   : > { %v5583_v45 = vpop.eup %5582  ;;  %2811 = vmatprep.mubr.f32.mxu0 %v5738_v8 }
 0xe23   : > { %v2696_v34 = vadd.f32 %v4727_v17, %v2686_v50  ;;  %v2677_v53 = vmul.f32 %v5583_v45, %v6704_v41  ;;  %v2722_v41 = vrot.slane %v4744_v52, %v6046_v35 }
 0xe25   : > { %4746 = vmatmul.mubr.msk.f32.gmra.mxu0 %vm772_vm2, %v2696_v34  ;;  %v2687_v63 = vmul.f32 %v4726_v40, %v2677_v53 }
 0xe26   : > { %v5585_v62 = vpop.eup %5584  ;;  %2817 = vmatprep.mubr.f32.mxu0 %v5738_v8 }
 0xe27   : > { %v2697_v25 = vadd.f32 %v4727_v17, %v2687_v63  ;;  %v2678_v0 = vmul.f32 %v5585_v62, %v6710_v5 }
 0xe29   : > { %4747 = vmatmul.mubr.msk.f32.gmra.mxu0 %vm772_vm2, %v2697_v25  ;;  %v2688_v2 = vmul.f32 %v4726_v40, %v2678_v0 }
 0xe2a   : > { %2823 = vmatprep.mubr.f32.mxu0 %v5738_v8 }
 0xe2b   : > { %v2698_v47 = vadd.f32 %v4727_v17, %v2688_v2 }
 0xe2d   : > { %4748 = vmatmul.mubr.msk.f32.gmra.mxu0 %vm772_vm2, %v2698_v47 }
 0xee1   : > { %v2807_v59 = vpop.f32.mrf.mxu0 }
 0xee2   : > { %v6785_v39 = vadd.f32 %v2807_v59, %v2722_v41 }
 0xee3   : > { %v2809_v3 = vpop.f32.mrf.mxu0 }
 0xee4   : > { %5289 = vmatprep.mubr.msk.f32.mxu0 %vm986_vm3, %v6785_v39  ;;  %v6844_v26 = vadd.f32 %v2809_v3, %v2726_v29 }
 0xee5   : > { %v2813_v4 = vpop.f32.mrf.mxu0 }
 0xee6   : > { %v6799_v54 = vadd.f32 %v2813_v4, %v2722_v41 }
 0xee7   : > { %v2815_v5 = vpop.f32.mrf.mxu0 }
 0xee8   : > { %v6840_v31 = vadd.f32 %v2815_v5, %v2726_v29 }
 0xee9   : > { %v2819_v48 = vpop.f32.mrf.mxu0 }
 0xeea   : > { %v6789_v51 = vadd.f32 %v2819_v48, %v2722_v41 }
 0xeeb   : > { %v2821_v55 = vpop.f32.mrf.mxu0 }
 0xeec   : > { %2838 = vrot.lane.b32.xlu1 %v6789_v51, %s7577_s30  ;;  %v6834_v30 = vadd.f32 %v2821_v55, %v2726_v29 }
 0xeed   : > { %v2825_v7 = vpop.f32.mrf.mxu0 }
 0xeee   : > { %v6793_v9 = vadd.f32 %v2825_v7, %v2722_v41 }
 0xeef   : > { %v2827_v33 = vpop.f32.mrf.mxu0 }
 0xef0   : > { %3106 = vrot.lane.b32.xlu1 %v6793_v9, %s7578_s29  ;;  %2840 = vrot.lane.b32.xlu0 %v6793_v9, %s7577_s30  ;;  %v6848_v24 = vadd.f32 %v2827_v33, %v2726_v29 }
 0xef4   : > { %3104 = vrot.lane.b32.xlu1 %v6789_v51, %s7578_s29  ;;  %2836 = vrot.lane.b32.xlu0 %v6799_v54, %s7577_s30 }
 0xef8   : > { %3102 = vrot.lane.b32.xlu1 %v6799_v54, %s7578_s29  ;;  %2834 = vrot.lane.b32.xlu0 %v6785_v39, %s7577_s30  ;;  %s647_s30 = sand.u32 1, %s5728_s25  }
 0xef9   : > { %s4582_s4 = scalar_lea.sflag [#allocation3], %s647_s30 }
 0xefc   : > { %3100 = vrot.lane.b32.xlu1 %v6785_v39, %s7578_s29  ;;  %3092 = vrot.lane.b32.xlu0 %v6785_v39, %s7579_s1 }
 0xf00   : > { %3388 = vrot.lane.b32.xlu1 %v6793_v9, %s7580_s28  ;;  %3094 = vrot.lane.b32.xlu0 %v6799_v54, %s7579_s1 }
 0xf04   : > { %3386 = vrot.lane.b32.xlu1 %v6789_v51, %s7580_s28  ;;  %3384 = vrot.lane.b32.xlu0 %v6799_v54, %s7580_s28 }
 0xf08   : > { %3096 = vrot.lane.b32.xlu1 %v6789_v51, %s7579_s1  ;;  %3098 = vrot.lane.b32.xlu0 %v6793_v9, %s7579_s1 }
 0xf0c   : > { %3382 = vrot.lane.b32.xlu1 %v6785_v39, %s7580_s28  ;;  %3374 = vrot.lane.b32.xlu0 %v6785_v39, %s7581_s27 }
 0xf10   : > { %3376 = vrot.lane.b32.xlu1 %v6799_v54, %s7581_s27  ;;  %3378 = vrot.lane.b32.xlu0 %v6789_v51, %s7581_s27 }
 0xf14   : > { %3380 = vrot.lane.b32.xlu1 %v6793_v9, %s7581_s27  ;;  %3269 = vrot.lane.b32.xlu0 %v6834_v30, %s7579_s1 }
 0xf18   : > { %3267 = vrot.lane.b32.xlu1 %v6840_v31, %s7579_s1 }
 0xf1c   : > { %3265 = vrot.lane.b32.xlu1 %v6844_v26, %s7579_s1 }
 0xf20   : > { %3271 = vrot.lane.b32.xlu1 %v6848_v24, %s7579_s1  ;;  %s5680_s1 = sshll.u32 %s5747_s3, 4  ;;  %s5681_s1 = int_to_ptr.vmem [resolvable:$false] %s5680_s1 }
 0xf5e   : > { %v2839_v1 = vpop.permute.xlu1 %2838 }
 0xf62   : > { %v2841_v10 = vpop.permute.xlu0 %2840  ;;  %v3107_v11 = vpop.permute.xlu1 %3106 }
 0xf63   : > { %5281 = vmatprep.subr.msk.mxu0 %vm986_vm3, %v2841_v10  ;;  %5309 = vmatprep.subr.msk.mxu1 %vm986_vm3, %v3107_v11 }
 0xf64   : > { %5282 = vmatpush3.xpose.msk.msra.mxu0 %vm986_vm3, %v2841_v10  ;;  %5310 = vmatpush3.xpose.msk.msra.mxu1 %vm986_vm3, %v3107_v11 }
 0xf65   : > { %5283 = vmatprep.subr.msk.mxu0 %vm986_vm3, %v2839_v1 }
 0xf66   : > { %v2837_v13 = vpop.permute.xlu0 %2836  ;;  %v3105_v56 = vpop.permute.xlu1 %3104 }
 0xf67   : > { %5311 = vmatprep.subr.msk.mxu1 %vm986_vm3, %v3105_v56 }
 0xf68   : > { %5284 = vmatpush3.xpose.msk.msra.mxu0 %vm986_vm3, %v2839_v1  ;;  %5312 = vmatpush3.xpose.msk.msra.mxu1 %vm986_vm3, %v3105_v56 }
 0xf69   : > { %5285 = vmatprep.subr.msk.mxu0 %vm986_vm3, %v2837_v13 }
 0xf6a   : > { %v2835_v28 = vpop.permute.xlu0 %2834  ;;  %v3103_v12 = vpop.permute.xlu1 %3102 }
 0xf6b   : > { %5313 = vmatprep.subr.msk.mxu1 %vm986_vm3, %v3103_v12 }
 0xf6c   : > { %5286 = vmatpush3.xpose.msk.msra.mxu0 %vm986_vm3, %v2837_v13  ;;  %5314 = vmatpush3.xpose.msk.msra.mxu1 %vm986_vm3, %v3103_v12 }
 0xf6d   : > { %5287 = vmatprep.subr.msk.mxu0 %vm986_vm3, %v2835_v28 }
 0xf6e   : > { %v3093_v14 = vpop.permute.xlu0 %3092  ;;  %v3101_v27 = vpop.permute.xlu1 %3100 }
 0xf6f   : > { %5315 = vmatprep.subr.msk.mxu1 %vm986_vm3, %v3101_v27  ;;  %5317 = vmatprep.mubr.msk.f32.mxu1 %vm986_vm3, %v3093_v14 }
 0xf70   : > { %5288 = vmatpush3.xpose.msk.msra.mxu0 %vm986_vm3, %v2835_v28  ;;  %5316 = vmatpush3.xpose.msk.msra.mxu1 %vm986_vm3, %v3101_v27 }
 0xf71   : > { %5295 = vmatprep.subr.mxu0 %v6848_v24 }
 0xf72   : > { %v3095_v16 = vpop.permute.xlu0 %3094  ;;  %v3389_v18 = vpop.permute.xlu1 %3388 }
 0xf73   : > { %5290 = vmatmul.mubr.msk.f32.vlgmr.msra.gmra.mxu0 %vm986_vm3, %v6799_v54  ;;  %5318 = vmatmul.mubr.msk.f32.vlgmr.msra.gmra.mxu1 %vm986_vm3, %v3095_v16 }
 0xf74   : > { %5337 = vmatprep.subr.msk.mxu1 %vm986_vm3, %v3389_v18  ;;  %5292 = vmatprep.mubr.msk.f32.mxu0 %vm986_vm3, %v6789_v51 }
 0xf75   : > { %5296 = vmatpush3.msra.mxu0 %v6848_v24  ;;  %5338 = vmatpush3.xpose.msk.msra.mxu1 %vm986_vm3, %v3389_v18 }
 0xf76   : > { %5297 = vmatprep.subr.mxu0 %v6834_v30  ;;  %v3385_v19 = vpop.permute.xlu0 %3384  ;;  %v3387_v20 = vpop.permute.xlu1 %3386 }
 0xf77   : > { %5298 = vmatpush3.msra.mxu0 %v6834_v30  ;;  %5339 = vmatprep.subr.msk.mxu1 %vm986_vm3, %v3387_v20 }
 0xf78   : > { %5293 = vmatmul.mubr.msk.f32.gmra.mxu0 %vm986_vm3, %v6793_v9  ;;  %5299 = vmatprep.subr.mxu0 %v6840_v31 }
 0xf79   : > { %5300 = vmatpush3.msra.mxu0 %v6840_v31  ;;  %5340 = vmatpush3.xpose.msk.msra.mxu1 %vm986_vm3, %v3387_v20 }
 0xf7a   : > { %5301 = vmatprep.subr.mxu0 %v6844_v26  ;;  %5341 = vmatprep.subr.msk.mxu1 %vm986_vm3, %v3385_v19  ;;  %v3099_v32 = vpop.permute.xlu0 %3098  ;;  %v3097_v23 = vpop.permute.xlu1 %3096 }
 0xf7b   : > { %5302 = vmatpush3.msra.mxu0 %v6844_v26  ;;  %5320 = vmatprep.mubr.msk.f32.mxu1 %vm986_vm3, %v3097_v23 }
 0xf7c   : > { %5321 = vmatmul.mubr.msk.f32.gmra.mxu1 %vm986_vm3, %v3099_v32 }
 0xf7d   : > { %5342 = vmatpush3.xpose.msk.msra.mxu1 %vm986_vm3, %v3385_v19 }
 0xf7e   : > { %v3375_v36 = vpop.permute.xlu0 %3374  ;;  %v3383_v38 = vpop.permute.xlu1 %3382 }
 0xf7f   : > { %5343 = vmatprep.subr.msk.mxu1 %vm986_vm3, %v3383_v38  ;;  %5345 = vmatprep.mubr.msk.f32.mxu1 %vm986_vm3, %v3375_v36 }
 0xf81   : > { %5344 = vmatpush3.xpose.msk.msra.mxu1 %vm986_vm3, %v3383_v38 }
 0xf82   : > { %v3379_v42 = vpop.permute.xlu0 %3378  ;;  %v3377_v37 = vpop.permute.xlu1 %3376 }
 0xf84   : > { %5346 = vmatmul.mubr.msk.f32.vlgmr.msra.gmra.mxu1 %vm986_vm3, %v3377_v37 }
 0xf85   : > { %5348 = vmatprep.mubr.msk.f32.mxu1 %vm986_vm3, %v3379_v42 }
 0xf86   : > { %v3381_v57 = vpop.permute.xlu1 %3380 }
 0xf88   : > { %5349 = vmatmul.mubr.msk.f32.gmra.mxu1 %vm986_vm3, %v3381_v57 }
 0xf8a   : > { %v6898_v40 = vpop.permute.xlu1 %3267 }
 0xf8e   : > { %v6900_v58 = vpop.permute.xlu1 %3265 }
 0xf92   : > { %v6902_v17 = vpop.permute.xlu1 %3271 }
 0xf93   : > { %5323 = vmatprep.subr.mxu0 %v6902_v17 }
0x1033   : > { %v5291_v60 = vpop.f32.mrf.mxu0  ;;  %v5319_v21 = vpop.f32.mrf.mxu1 }
0x1034   : > { %v2944_v43 = vmul.f32 0.25, %v5291_v60  ;;  %v3210_v61 = vmul.f32 0.25, %v5319_v21 }
0x1035   : > { %v2924_v50 = vpop.f32.mrf.mxu0  ;;  %v3190_v45 = vpop.f32.mrf.mxu1 }
0x1036   : > { %v2948_v34 = vsel %vm769_vm4, %v2944_v43, -1e+30  ;;  %v2943_v53 = vmul.f32 0.25, %v2924_v50  ;;  %v3209_v63 = vmul.f32 0.25, %v3190_v45  ;;  %v6910_v25 = vsel %vm769_vm4, %v3210_v61, -1e+30  ;;  %v6967_v61 = vpop.permute.xlu0 %3269 }
0x1037   : > { %v2954_v62 = vsel %vm1096_vm5, %v2948_v34, -inf  ;;  %v3220_v3 = vsel %vm1096_vm5, %v6910_v25, -inf }
0x1038   : > { %v2947_v0 = vsel %vm769_vm4, %v2943_v53, -1e+30  ;;  %v5294_v2 = vpop.f32.mrf.mxu0  ;;  %2955 = vmax.xlane.f32.xlu1 %v2954_v62  ;;  %v6917_v52 = vsel %vm769_vm4, %v3209_v63, -1e+30 }
0x1039   : > { %v2951_v47 = vsel %vm1096_vm5, %v2947_v0, -inf  ;;  %v2946_v41 = vmul.f32 0.25, %v5294_v2  ;;  %v3217_v48 = vsel %vm1096_vm5, %v6917_v52, -inf }
0x103a   : > { %2952 = vmax.xlane.f32.xlu0 %v2951_v47  ;;  %v2934_v59 = vpop.f32.mrf.mxu0 }
0x103b   : > { %v2950_v55 = vsel %vm769_vm4, %v2946_v41, -1e+30  ;;  %v2945_v7 = vmul.f32 0.25, %v2934_v59 }
0x103c   : > { %3221 = vmax.xlane.f32.xlu1 %v3220_v3  ;;  %v5322_v4 = vpop.f32.mrf.mxu1  ;;  %v2960_v10 = vsel %vm1096_vm5, %v2950_v55, -inf }
0x103d   : > { %v3212_v5 = vmul.f32 0.25, %v5322_v4  ;;  %v2949_v11 = vsel %vm769_vm4, %v2945_v7, -1e+30 }
0x103e   : > { %3218 = vmax.xlane.f32.xlu0 %v3217_v48  ;;  %v3200_v33 = vpop.f32.mrf.mxu1  ;;  %v2957_v12 = vsel %vm1096_vm5, %v2949_v11, -inf }
0x103f   : > { %v3216_v29 = vsel %vm769_vm4, %v3212_v5, -1e+30  ;;  %v3211_v13 = vmul.f32 0.25, %v3200_v33 }
0x1040   : > { %v3226_v1 = vsel %vm1096_vm5, %v3216_v29, -inf }
0x1041   : > { %3227 = vmax.xlane.f32.xlu1 %v3226_v1  ;;  %v6934_v14 = vsel %vm769_vm4, %v3211_v13, -1e+30 }
0x1042   : > { %2961 = vmax.xlane.f32.xlu0 %v2960_v10  ;;  %v3223_v32 = vsel %vm1096_vm5, %v6934_v14, -inf }
0x1044   : > { %v5347_v56 = vpop.f32.mrf.mxu1 }
0x1045   : > { %v3492_v28 = vmul.f32 0.25, %v5347_v56 }
0x1046   : > { %v3472_v27 = vpop.f32.mrf.mxu1  ;;  %2958 = vmax.xlane.f32.xlu0 %v2957_v12 }
0x1047   : > { %v3496_v16 = vsel %vm769_vm4, %v3492_v28, -1e+30  ;;  %v3491_v18 = vmul.f32 0.25, %v3472_v27 }
0x1048   : > { %v5350_v19 = vpop.f32.mrf.mxu1  ;;  %v3502_v20 = vsel %vm1096_vm5, %v3496_v16, -inf }
0x1049   : > { %3503 = vmax.xlane.f32.xlu1 %v3502_v20  ;;  %v6943_v23 = vsel %vm769_vm4, %v3491_v18, -1e+30  ;;  %v3494_v60 = vmul.f32 0.25, %v5350_v19 }
0x104a   : > { %v3482_v36 = vpop.f32.mrf.mxu1  ;;  %3224 = vmax.xlane.f32.xlu0 %v3223_v32  ;;  %v3499_v42 = vsel %vm1096_vm5, %v6943_v23, -inf }
0x104b   : > { %v3493_v38 = vmul.f32 0.25, %v3482_v36  ;;  %v6959_v21 = vsel %vm769_vm4, %v3494_v60, -1e+30 }
0x104c   : > { %v3508_v43 = vsel %vm1096_vm5, %v6959_v21, -inf }
0x104d   : > { %v6949_v37 = vsel %vm769_vm4, %v3493_v38, -1e+30 }
0x104e   : > { %3500 = vmax.xlane.f32.xlu0 %v3499_v42  ;;  %v3505_v57 = vsel %vm1096_vm5, %v6949_v37, -inf }
0x1052   : > { %3506 = vmax.xlane.f32.xlu0 %v3505_v57 }
0x105a   : > { %3549 = vrot.lane.b32.xlu1 %v6848_v24, %s7581_s27 }
0x1068   : > { %3545 = vrot.lane.b32.xlu0 %v6840_v31, %s7581_s27 }
0x107e   : > { %3509 = vmax.xlane.f32.xlu1 %v3508_v43 }
0x108f   : > { %3547 = vrot.lane.b32.xlu1 %v6834_v30, %s7581_s27 }
0x1093   : > { %3543 = vrot.lane.b32.xlu1 %v6844_v26, %s7581_s27  ;;  %s5682_s27 = scalar_lea.vmem %s5681_s1, 32 }
0x10c1   : > { %v2956_v50 = vpop.xlane.xlu1 %2955 }
0x10c2   : > { %v2964_v45 = vsub.f32 %v2948_v34, %v2956_v50 }
0x10c3   : > { %v2953_v53 = vpop.xlane.xlu0 %2952 }
0x10c4   : > { %v2969_v63 = vmul.f32 1.442695, %v2964_v45  ;;  %v2963_v62 = vsub.f32 %v2947_v0, %v2953_v53 }
0x10c5   : > { %v3222_v2 = vpop.xlane.xlu1 %3221 }
0x10c6   : > { %5586 = vpow2.f32 %v2969_v63  ;;  %v2967_v47 = vmul.f32 1.442695, %v2963_v62  ;;  %v3230_v41 = vsub.f32 %v6910_v25, %v3222_v2 }
0x10c7   : > { %v3219_v59 = vpop.xlane.xlu0 %3218 }
0x10c8   : > { %5588 = vpow2.f32 %v2967_v47  ;;  %v3235_v3 = vmul.f32 1.442695, %v3230_v41  ;;  %v3229_v4 = vsub.f32 %v6917_v52, %v3219_v59 }
0x10ca   : > { %5590 = vpow2.f32 %v3235_v3  ;;  %v3233_v5 = vmul.f32 1.442695, %v3229_v4  ;;  %v3228_v48 = vpop.xlane.xlu1 %3227 }
0x10cb   : > { %v3232_v7 = vsub.f32 %v3216_v29, %v3228_v48  ;;  %v2962_v33 = vpop.xlane.xlu0 %2961 }
0x10cc   : > { %5592 = vpow2.f32 %v3233_v5  ;;  %v2966_v34 = vsub.f32 %v2950_v55, %v2962_v33 }
0x10cd   : > { %v3239_v1 = vmul.f32 1.442695, %v3232_v7 }
0x10ce   : > { %v2973_v10 = vmul.f32 1.442695, %v2966_v34 }
0x10cf   : > { %v2959_v0 = vpop.xlane.xlu0 %2958 }
0x10d0   : > { %5594 = vpow2.f32 %v2973_v10  ;;  %v2965_v13 = vsub.f32 %v2949_v11, %v2959_v0 }
0x10d1   : > { %5596 = vpow2.f32 %v3239_v1 }
0x10d2   : > { %v2971_v56 = vmul.f32 1.442695, %v2965_v13  ;;  %v3504_v25 = vpop.xlane.xlu1 %3503 }
0x10d3   : > { %v6971_v28 = vpop.eup %5586  ;;  %v3512_v12 = vsub.f32 %v3496_v16, %v3504_v25  ;;  %v3225_v50 = vpop.xlane.xlu0 %3224 }
0x10d4   : > { %5598 = vpow2.f32 %v2971_v56  ;;  %v2978_v52 = vsel %vm1096_vm5, %v6971_v28, 0.0  ;;  %v3231_v45 = vsub.f32 %v6934_v14, %v3225_v50 }
0x10d5   : > { %v6975_v27 = vpop.eup %5588  ;;  %v3517_v29 = vmul.f32 1.442695, %v3512_v12  ;;  %2979 = vadd.xlane.f32.xlu1 %v2978_v52 }
0x10d6   : > { %v2975_v55 = vsel %vm1096_vm5, %v6975_v27, 0.0  ;;  %v3237_v63 = vmul.f32 1.442695, %v3231_v45  ;;  %v7012_v62 = vpop.permute.xlu1 %3549 }
0x10d7   : > { %v6979_v18 = vpop.eup %5590  ;;  %5600 = vpow2.f32 %v3517_v29  ;;  %2976 = vadd.xlane.f32.xlu0 %v2975_v55  ;;  %v3501_v53 = vpop.xlane.xlu0 %3500 }
0x10d8   : > { %v3244_v11 = vsel %vm1096_vm5, %v6979_v18, 0.0  ;;  %v3511_v2 = vsub.f32 %v6943_v23, %v3501_v53  ;;  %5602 = vpow2.f32 %v3237_v63 }
0x10d9   : > { %v6983_v19 = vpop.eup %5592  ;;  %3245 = vadd.xlane.f32.xlu1 %v3244_v11 }
0x10da   : > { %v3241_v16 = vsel %vm1096_vm5, %v6983_v19, 0.0  ;;  %v3515_v47 = vmul.f32 1.442695, %v3511_v2 }
0x10db   : > { %3242 = vadd.xlane.f32.xlu0 %v3241_v16  ;;  %v3507_v59 = vpop.xlane.xlu0 %3506 }
0x10dc   : > { %5604 = vpow2.f32 %v3515_v47  ;;  %v3513_v14 = vsub.f32 %v6949_v37, %v3507_v59 }
0x10dd   : > { %v6987_v20 = vpop.eup %5594 }
0x10de   : > { %v2984_v32 = vsel %vm1096_vm5, %v6987_v20, 0.0  ;;  %v6991_v36 = vpop.eup %5596  ;;  %v3519_v5 = vmul.f32 1.442695, %v3513_v14 }
0x10df   : > { %2985 = vadd.xlane.f32.xlu1 %v2984_v32  ;;  %v3250_v57 = vsel %vm1096_vm5, %v6991_v36, 0.0  ;;  %v3546_v0 = vpop.permute.xlu0 %3545 }
0x10e1   : > { %v6993_v38 = vpop.eup %5598 }
0x10e2   : > { %v2981_v42 = vsel %vm1096_vm5, %v6993_v38, 0.0 }
0x10e3   : > { %2982 = vadd.xlane.f32.xlu0 %v2981_v42  ;;  %3251 = vadd.xlane.f32.xlu1 %v3250_v57 }
0x10e4   : > { %v6999_v60 = vpop.eup %5600 }
0x10e5   : > { %v3526_v43 = vsel %vm1096_vm5, %v6999_v60, 0.0  ;;  %v7019_v48 = vpop.eup %5602 }
0x10e6   : > { %v3247_v23 = vsel %vm1096_vm5, %v7019_v48, 0.0 }
0x10e7   : > { %3527 = vadd.xlane.f32.xlu1 %v3526_v43 }
0x10e9   : > { %v7023_v7 = vpop.eup %5604 }
0x10f8   : > { %3664 = vrot.lane.b32.xlu1 %v6789_v51, %s7582_s22 }
0x10f9   : > { %3666 = vrot.lane.b32.xlu0 %v6793_v9, %s7582_s22 }
0x10fc   : > { %3660 = vrot.lane.b32.xlu1 %v6785_v39, %s7582_s22 }
0x1100   : > { %3654 = vrot.lane.b32.xlu1 %v6799_v54, %s7583_s2 }
0x1104   : > { %3658 = vrot.lane.b32.xlu1 %v6793_v9, %s7583_s2  ;;  %v3523_v9 = vsel %vm1096_vm5, %v7023_v7, 0.0 }
0x1107   : > { %v3510_v41 = vpop.xlane.xlu1 %3509 }
0x1108   : > { %v3514_v3 = vsub.f32 %v6959_v21, %v3510_v41 }
0x110a   : > { %v3521_v4 = vmul.f32 1.442695, %v3514_v3 }
0x110b   : > { %v3548_v1 = vpop.permute.xlu1 %3547 }
0x110c   : > { %5606 = vpow2.f32 %v3521_v4 }
0x110d   : > { %5608 = vpow2.f32 %v3519_v5 }
0x110f   : > { %v3544_v10 = vpop.permute.xlu1 %3543 }
0x1118   : > { %3248 = vadd.xlane.f32.xlu0 %v3247_v23 }
0x1119   : > { %v7027_v33 = vpop.eup %5606 }
0x111a   : > { %v3532_v37 = vsel %vm1096_vm5, %v7027_v33, 0.0  ;;  %v7031_v21 = vpop.eup %5608 }
0x111b   : > { %v3529_v34 = vsel %vm1096_vm5, %v7031_v21, 0.0 }
0x111c   : > { %3524 = vadd.xlane.f32.xlu0 %v3523_v9 }
0x1120   : > { %3533 = vadd.xlane.f32.xlu0 %v3532_v37 }
0x1124   : > { %3530 = vadd.xlane.f32.xlu0 %v3529_v34 }
0x113a   : > { %3662 = vrot.lane.b32.xlu0 %v6799_v54, %s7582_s22 }
0x113e   : > { %3652 = vrot.lane.b32.xlu0 %v6785_v39, %s7583_s2 }
0x1142   : > { %3656 = vrot.lane.b32.xlu0 %v6789_v51, %s7583_s2 }
0x115e   : > { %v2980_v13 = vpop.xlane.xlu1 %2979 }
0x115f   : > { %5610 = vrcp.f32 %v2980_v13 }
0x1160   : > { %v2977_v56 = vpop.xlane.xlu0 %2976 }
0x1161   : > { %5612 = vrcp.f32 %v2977_v56 }
0x1162   : > { %v3246_v25 = vpop.xlane.xlu1 %3245 }
0x1164   : > { %v3243_v12 = vpop.xlane.xlu0 %3242 }
0x1165   : > { %5614 = vrcp.f32 %v3243_v12 }
0x1168   : > { %v2986_v52 = vpop.xlane.xlu1 %2985 }
0x1169   : > { %5616 = vrcp.f32 %v2986_v52 }
0x116c   : > { %v2983_v29 = vpop.xlane.xlu0 %2982  ;;  %v5611_v54 = vpop.eup %5610 }
0x116d   : > { %5618 = vrcp.f32 %v2983_v29  ;;  %v2992_v51 = vmul.f32 %v5611_v54, %v6971_v28 }
0x116e   : > { %v5613_v55 = vpop.eup %5612  ;;  %5620 = vrcp.f32 %v3246_v25 }
0x116f   : > { %v2991_v39 = vmul.f32 %v5613_v55, %v6975_v27 }
0x1171   : > { %5303 = vmatprep.mubr.msk.f32.mxu0 %vm1096_vm5, %v2991_v39 }
0x1172   : > { %5304 = vmatmul.mubr.msk.f32.vlgmr.msra.gmra.mxu0 %vm1096_vm5, %v2992_v51  ;;  %v5615_v11 = vpop.eup %5614 }
0x1173   : > { %5324 = vmatpush3.msra.mxu0 %v6902_v17 }
0x1174   : > { %5325 = vmatprep.subr.mxu0 %v6967_v61 }
0x1175   : > { %5326 = vmatpush3.msra.mxu0 %v6967_v61  ;;  %v3257_v61 = vmul.f32 %v5615_v11, %v6983_v19  ;;  %v3252_v19 = vpop.xlane.xlu1 %3251 }
0x1176   : > { %5327 = vmatprep.subr.mxu0 %v6898_v40  ;;  %v5617_v27 = vpop.eup %5616  ;;  %5622 = vrcp.f32 %v3252_v19 }
0x1177   : > { %5328 = vmatpush3.msra.mxu0 %v6898_v40  ;;  %v2994_v17 = vmul.f32 %v5617_v27, %v6987_v20 }
0x1178   : > { %5329 = vmatprep.subr.mxu0 %v6900_v58 }
0x1179   : > { %5330 = vmatpush3.msra.mxu0 %v6900_v58  ;;  %v3667_v58 = vpop.permute.xlu0 %3666 }
0x117a   : > { %v5619_v28 = vpop.eup %5618  ;;  %5351 = vmatprep.subr.mxu0 %v7012_v62 }
0x117b   : > { %v2993_v16 = vmul.f32 %v5619_v28, %v6993_v38  ;;  %v5621_v32 = vpop.eup %5620  ;;  %v3528_v38 = vpop.xlane.xlu1 %3527 }
0x117c   : > { %v3258_v40 = vmul.f32 %v5621_v32, %v6979_v18 }
0x117d   : > { %5306 = vmatprep.mubr.msk.f32.mxu0 %vm1096_vm5, %v2993_v16 }
0x117e   : > { %5307 = vmatmul.mubr.msk.f32.gmra.mxu0 %vm1096_vm5, %v2994_v17 }
0x117f   : > { %5331 = vmatprep.mubr.msk.f32.mxu0 %vm1096_vm5, %v3257_v61  ;;  %v3665_v41 = vpop.permute.xlu1 %3664 }
0x1182   : > { %5332 = vmatmul.mubr.msk.f32.vlgmr.msra.gmra.mxu0 %vm1096_vm5, %v3258_v40 }
0x1183   : > { %5352 = vmatpush3.msra.mxu0 %v7012_v62  ;;  %v5623_v43 = vpop.eup %5622  ;;  %v3661_v4 = vpop.permute.xlu1 %3660 }
0x1184   : > { %5353 = vmatprep.subr.mxu0 %v3548_v1  ;;  %v3260_v53 = vmul.f32 %v5623_v43, %v6991_v36 }
0x1185   : > { %5354 = vmatpush3.msra.mxu0 %v3548_v1 }
0x1186   : > { %5355 = vmatprep.subr.mxu0 %v3546_v0 }
0x1187   : > { %5356 = vmatpush3.msra.mxu0 %v3546_v0 }
0x1188   : > { %5357 = vmatprep.subr.mxu0 %v3544_v10 }
0x1189   : > { %5358 = vmatpush3.msra.mxu0 %v3544_v10 }
0x118a   : > { %5365 = vmatprep.subr.msk.mxu0 %vm986_vm3, %v3667_v58 }
0x11a1   : > { %v3249_v20 = vpop.xlane.xlu0 %3248 }
0x11a2   : > { %5624 = vrcp.f32 %v3249_v20 }
0x11a3   : > { %5626 = vrcp.f32 %v3528_v38 }
0x11a5   : > { %v3525_v18 = vpop.xlane.xlu0 %3524 }
0x11a6   : > { %5628 = vrcp.f32 %v3525_v18 }
0x11a9   : > { %v3534_v42 = vpop.xlane.xlu0 %3533 }
0x11aa   : > { %5630 = vrcp.f32 %v3534_v42 }
0x11ad   : > { %v3531_v57 = vpop.xlane.xlu0 %3530 }
0x11ae   : > { %5632 = vrcp.f32 %v3531_v57 }
0x11af   : > { %v5625_v50 = vpop.eup %5624 }
0x11b0   : > { %v3259_v45 = vmul.f32 %v5625_v50, %v7019_v48  ;;  %v5627_v63 = vpop.eup %5626  ;;  %v3655_v48 = vpop.permute.xlu1 %3654 }
0x11b1   : > { %v3540_v47 = vmul.f32 %v5627_v63, %v6999_v60  ;;  %v3663_v59 = vpop.permute.xlu0 %3662 }
0x11b2   : > { %5334 = vmatprep.mubr.msk.f32.mxu0 %vm1096_vm5, %v3259_v45 }
0x11b3   : > { %v5629_v62 = vpop.eup %5628  ;;  %5335 = vmatmul.mubr.msk.f32.gmra.mxu0 %vm1096_vm5, %v3260_v53 }
0x11b4   : > { %v3539_v2 = vmul.f32 %v5629_v62, %v7023_v7  ;;  %v3659_v7 = vpop.permute.xlu1 %3658 }
0x11b5   : > { %v3653_v5 = vpop.permute.xlu0 %3652 }
0x11b6   : > { %5359 = vmatprep.mubr.msk.f32.mxu0 %vm1096_vm5, %v3539_v2 }
0x11b7   : > { %5360 = vmatmul.mubr.msk.f32.vlgmr.msra.gmra.mxu0 %vm1096_vm5, %v3540_v47  ;;  %v5631_v36 = vpop.eup %5630 }
0x11b8   : > { %5366 = vmatpush3.xpose.msk.msra.mxu0 %vm986_vm3, %v3667_v58  ;;  %v3542_v60 = vmul.f32 %v5631_v36, %v7027_v33 }
0x11b9   : > { %5367 = vmatprep.subr.msk.mxu0 %vm986_vm3, %v3665_v41  ;;  %v3657_v23 = vpop.permute.xlu0 %3656 }
0x11bb   : > { %v5633_v3 = vpop.eup %5632 }
0x11bc   : > { %5368 = vmatpush3.xpose.msk.msra.mxu0 %vm986_vm3, %v3665_v41  ;;  %v3541_v14 = vmul.f32 %v5633_v3, %v7031_v21 }
0x11bd   : > { %5369 = vmatprep.subr.msk.mxu0 %vm986_vm3, %v3663_v59 }
0x11be   : > { %5362 = vmatprep.mubr.msk.f32.mxu0 %vm1096_vm5, %v3541_v14 }
0x11bf   : > { %5363 = vmatmul.mubr.msk.f32.gmra.mxu0 %vm1096_vm5, %v3542_v60 }
0x11c0   : > { %5370 = vmatpush3.xpose.msk.msra.mxu0 %vm986_vm3, %v3663_v59  ;;  %5373 = vmatprep.mubr.msk.f32.mxu0 %vm986_vm3, %v3653_v5 }
0x11c1   : > { %5371 = vmatprep.subr.msk.mxu0 %vm986_vm3, %v3661_v4 }
0x11c4   : > { %5372 = vmatpush3.xpose.msk.msra.mxu0 %vm986_vm3, %v3661_v4 }
0x11c7   : > { %5374 = vmatmul.mubr.msk.f32.vlgmr.msra.gmra.mxu0 %vm986_vm3, %v3655_v48 }
0x11c8   : > { %5376 = vmatprep.mubr.msk.f32.mxu0 %vm986_vm3, %v3657_v23 }
0x11cb   : > { %5377 = vmatmul.mubr.msk.f32.gmra.mxu0 %vm986_vm3, %v3659_v7 }
0x11cc   : > { %4290 = vmatprep.mubr.f32.mxu0 %v5738_v8 }
0x1232   : > { %v7087_v9 = vpop.f32.mrf.mxu0 }
0x1234   : > { %v7089_v33 = vpop.f32.mrf.mxu0 }
0x123e   : > { %v7091_v37 = vpop.f32.mrf.mxu0 }
0x1240   : > { %v7093_v21 = vpop.f32.mrf.mxu0 }
0x1242   : > { %v5333_v34 = vpop.f32.mrf.mxu0 }
0x1244   : > { %v3355_v1 = vpop.f32.mrf.mxu0 }
0x1273   : > { %v7095_v10 = vpop.f32.mrf.mxu0 }
0x1275   : > { %v7097_v0 = vpop.f32.mrf.mxu0 }
0x1277   : > { %v5361_v13 = vpop.f32.mrf.mxu0 }
0x1279   : > { %v3633_v56 = vpop.f32.mrf.mxu0 }
0x127f   : > { %v7099_v25 = vpop.f32.mrf.mxu0 }
0x1281   : > { %v7101_v12 = vpop.f32.mrf.mxu0 }
0x1287   : > { %v5375_v52 = vpop.f32.mrf.mxu0 }
0x1288   : > { %v3770_v29 = vmul.f32 0.25, %v5375_v52  ;;  %v4801_v52 = vld [vmem:[%s7513_s9 + $0x60] sm:$0xff] }
0x1289   : > { %v3750_v54 = vpop.f32.mrf.mxu0 }
0x128a   : > { %v3774_v55 = vsel %vm769_vm4, %v3770_v29, -1e+30  ;;  %v3769_v39 = vmul.f32 0.25, %v3750_v54  ;;  %v4800_v29 = vld [vmem:[%s7513_s9 + $0x58] sm:$0xff]  ;;  %v4799_v54 = vld [vmem:[%s7513_s9 + $0x50] sm:$0xff] }
0x128b   : > { %v3780_v51 = vsel %vm1096_vm5, %v3774_v55, -inf  ;;  %v5378_v28 = vpop.f32.mrf.mxu0 }
0x128c   : > { %v3773_v11 = vsel %vm769_vm4, %v3769_v39, -1e+30  ;;  %3781 = vmax.xlane.f32.xlu1 %v3780_v51  ;;  %v3772_v16 = vmul.f32 0.25, %v5378_v28  ;;  %v4797_v39 = vld [vmem:[%s7513_s9 + $0x40] sm:$0xff] }
0x128d   : > { %v3777_v27 = vsel %vm1096_vm5, %v3773_v11, -inf  ;;  %v3760_v42 = vpop.f32.mrf.mxu0 }
0x128e   : > { %3778 = vmax.xlane.f32.xlu0 %v3777_v27  ;;  %v3776_v17 = vsel %vm769_vm4, %v3772_v16, -1e+30  ;;  %v3771_v57 = vmul.f32 0.25, %v3760_v42 }
0x128f   : > { %v3786_v32 = vsel %vm1096_vm5, %v3776_v17, -inf }
0x1290   : > { %v3775_v43 = vsel %vm769_vm4, %v3771_v57, -1e+30 }
0x1291   : > { %v3783_v50 = vsel %vm1096_vm5, %v3775_v43, -inf }
0x129d   : > { %3825 = vrot.lane.b32.xlu1 %v6834_v30, %s7583_s2 }
0x12a1   : > { %3823 = vrot.lane.b32.xlu1 %v6840_v31, %s7583_s2 }
0x12a5   : > { %3821 = vrot.lane.b32.xlu1 %v6844_v26, %s7583_s2 }
0x12c9   : > { %3787 = vmax.xlane.f32.xlu1 %v3786_v32 }
0x12da   : > { %3936 = vrot.lane.b32.xlu1 %v5333_v34, %s7582_s22 }
0x12de   : > { %3950 = vrot.lane.b32.xlu1 %v3633_v56, %s7580_s28  ;;  %v4802_v56 = vld [vmem:[%s7513_s9 + $0x68] sm:$0xff] }
0x12e2   : > { %3952 = vrot.lane.b32.xlu1 %v5361_v13, %s7580_s28  ;;  %v4803_v13 = vld [vmem:[%s7513_s9 + $0x70] sm:$0xff] }
0x1315   : > { %v3782_v30 = vpop.xlane.xlu1 %3781 }
0x1316   : > { %v3790_v61 = vsub.f32 %v3774_v55, %v3782_v30  ;;  %v4798_v55 = vld [vmem:[%s7513_s9 + $0x48] sm:$0xff] }
0x1317   : > { %v3779_v31 = vpop.xlane.xlu0 %3778 }
0x1318   : > { %v3795_v40 = vmul.f32 1.442695, %v3790_v61  ;;  %v3789_v58 = vsub.f32 %v3773_v11, %v3779_v31 }
0x1319   : > { %v3826_v45 = vpop.permute.xlu1 %3825 }
0x131a   : > { %5634 = vpow2.f32 %v3795_v40  ;;  %v3793_v26 = vmul.f32 1.442695, %v3789_v58 }
0x131c   : > { %5636 = vpow2.f32 %v3793_v26 }
0x131d   : > { %v3824_v53 = vpop.permute.xlu1 %3823 }
0x1321   : > { %v3822_v63 = vpop.permute.xlu1 %3821 }
0x1327   : > { %v5635_v19 = vpop.eup %5634 }
0x1328   : > { %v3804_v20 = vsel %vm1096_vm5, %v5635_v19, 0.0 }
0x1329   : > { %v5637_v38 = vpop.eup %5636  ;;  %3805 = vadd.xlane.f32.xlu0 %v3804_v20 }
0x132a   : > { %v3801_v18 = vsel %vm1096_vm5, %v5637_v38, 0.0 }
0x132d   : > { %3802 = vadd.xlane.f32.xlu0 %v3801_v18 }
0x1343   : > { %3827 = vrot.lane.b32.xlu0 %v6848_v24, %s7583_s2  ;;  %s648_s2 = scalar_lea.vmem [#allocation2], %s647_s30 }
0x1352   : > { %v3788_v62 = vpop.xlane.xlu1 %3787 }
0x1353   : > { %v3792_v2 = vsub.f32 %v3776_v17, %v3788_v62 }
0x1355   : > { %v3799_v47 = vmul.f32 1.442695, %v3792_v2 }
0x1356   : > { %v3937_v31 = vpop.permute.xlu1 %3936 }
0x1357   : > { %5638 = vpow2.f32 %v3799_v47 }
0x135a   : > { %v3951_v40 = vpop.permute.xlu1 %3950 }
0x135e   : > { %v3953_v58 = vpop.permute.xlu1 %3952 }
0x1362   : > { %3784 = vmax.xlane.f32.xlu0 %v3783_v50 }
0x1364   : > { %v7129_v41 = vpop.eup %5638 }
0x1365   : > { %v3810_v24 = vsel %vm1096_vm5, %v7129_v41, 0.0 }
0x1378   : > { %3934 = vrot.lane.b32.xlu0 %v3355_v1, %s7582_s22  ;;  %v4804_v1 = vld [vmem:[%s7513_s9 + $0x78] sm:$0xff] }
0x1397   : > { %3811 = vadd.xlane.f32.xlu0 %v3810_v24 }
0x13b2   : > { %v3806_v6 = vpop.xlane.xlu0 %3805 }
0x13b3   : > { %5640 = vrcp.f32 %v3806_v6 }
0x13b6   : > { %v3803_v59 = vpop.xlane.xlu0 %3802 }
0x13b7   : > { %5642 = vrcp.f32 %v3803_v59 }
0x13ba   : > { %v3828_v36 = vpop.permute.xlu0 %3827 }
0x13bb   : > { %5379 = vmatprep.subr.mxu1 %v3828_v36 }
0x13bc   : > { %5380 = vmatpush3.msra.mxu1 %v3828_v36 }
0x13bd   : > { %5381 = vmatprep.subr.mxu1 %v3826_v45 }
0x13be   : > { %5382 = vmatpush3.msra.mxu1 %v3826_v45 }
0x13bf   : > { %5383 = vmatprep.subr.mxu1 %v3824_v53 }
0x13c0   : > { %5384 = vmatpush3.msra.mxu1 %v3824_v53  ;;  %v5641_v3 = vpop.eup %5640 }
0x13c1   : > { %5385 = vmatprep.subr.mxu1 %v3822_v63  ;;  %v3818_v4 = vmul.f32 %v5641_v3, %v5635_v19 }
0x13c2   : > { %5386 = vmatpush3.msra.mxu1 %v3822_v63 }
0x13c3   : > { %5393 = vmatprep.subr.mxu1 %v4804_v1 }
0x13c4   : > { %v5643_v14 = vpop.eup %5642 }
0x13c5   : > { %v3817_v60 = vmul.f32 %v5643_v14, %v5637_v38 }
0x13c7   : > { %5387 = vmatprep.mubr.msk.f32.mxu1 %vm1096_vm5, %v3817_v60  ;;  %v4830_v60 = vld [vmem:[%s7517_s13 + $0xf8] sm:$0xff] }
0x13c8   : > { %5388 = vmatmul.mubr.msk.f32.vlgmr.msra.gmra.mxu1 %vm1096_vm5, %v3818_v4  ;;  %4242 = vmatprep.subr.mxu0 %v4830_v60  ;;  %v4829_v4 = vld [vmem:[%s7517_s13 + $0xf0] sm:$0xff]  ;;  %v4839_v60 = vld [vmem:[%s7519_s15 + $0x118] sm:$0xff] }
0x13c9   : > { %5394 = vmatpush3.msra.mxu1 %v4804_v1  ;;  %4243 = vmatpush1.msra.mxu0 %v4829_v4  ;;  %v4822_v1 = vld [vmem:[%s7517_s13 + $0xb8] sm:$0xff]  ;;  %v4854_v4 = vld [vmem:[%s7519_s15 + $0x190] sm:$0xff] }
0x13ca   : > { %5395 = vmatprep.subr.mxu1 %v4803_v13 }
0x13cb   : > { %5396 = vmatpush3.msra.mxu1 %v4803_v13  ;;  %v4821_v13 = vld [vmem:[%s7517_s13 + $0xb0] sm:$0xff] }
0x13cc   : > { %5397 = vmatprep.subr.mxu1 %v4802_v56 }
0x13cd   : > { %5398 = vmatpush3.msra.mxu1 %v4802_v56  ;;  %v4820_v56 = vld [vmem:[%s7517_s13 + $0xa8] sm:$0xff] }
0x13ce   : > { %5399 = vmatprep.subr.mxu1 %v4801_v52 }
0x13cf   : > { %5400 = vmatpush3.msra.mxu1 %v4801_v52  ;;  %v4819_v52 = vld [vmem:[%s7517_s13 + $0xa0] sm:$0xff] }
0x13d0   : > { %5401 = vmatprep.subr.mxu1 %v4800_v29 }
0x13d1   : > { %5402 = vmatpush3.msra.mxu1 %v4800_v29  ;;  %v4818_v29 = vld [vmem:[%s7517_s13 + $0x98] sm:$0xff] }
0x13d2   : > { %5403 = vmatprep.subr.mxu1 %v4799_v54 }
0x13d3   : > { %5404 = vmatpush3.msra.mxu1 %v4799_v54  ;;  %v4817_v54 = vld [vmem:[%s7517_s13 + $0x90] sm:$0xff] }
0x13d4   : > { %5405 = vmatprep.subr.mxu1 %v4798_v55 }
0x13d5   : > { %5406 = vmatpush3.msra.mxu1 %v4798_v55  ;;  %v4816_v55 = vld [vmem:[%s7517_s13 + $0x88] sm:$0xff] }
0x13d6   : > { %5407 = vmatprep.subr.mxu1 %v4797_v39 }
0x13d7   : > { %5408 = vmatpush3.msra.mxu1 %v4797_v39  ;;  %v4815_v39 = vld [vmem:[%s7517_s13 + $0x80] sm:$0xff] }
0x13eb   : > { %v3785_v5 = vpop.xlane.xlu0 %3784 }
0x13ec   : > { %v3791_v48 = vsub.f32 %v3775_v43, %v3785_v5  ;;  %v4827_v5 = vld [vmem:[%s7517_s13 + $0xe0] sm:$0xff] }
0x13ee   : > { %v3797_v23 = vmul.f32 1.442695, %v3791_v48  ;;  %v4826_v48 = vld [vmem:[%s7517_s13 + $0xd8] sm:$0xff] }
0x13ef   : > { %v3935_v51 = vpop.permute.xlu0 %3934 }
0x13f0   : > { %5644 = vpow2.f32 %v3797_v23  ;;  %v3978_v26 = vsel %vm986_vm3, %v7089_v33, %v3935_v51  ;;  %v4825_v23 = vld [vmem:[%s7517_s13 + $0xd0] sm:$0xff] }
0x13f1   : > { %v3982_v20 = vsel %vm1096_vm5, %v3978_v26, %v3951_v40  ;;  %v7266_v40 = vld [vmem:[%s7515_s11 + $0x1] ss:$0 sm:$0xff] }
0x13fd   : > { %v5645_v7 = vpop.eup %5644 }
0x13fe   : > { %v3807_v34 = vsel %vm1096_vm5, %v5645_v7, 0.0 }
0x13ff   : > { %3808 = vadd.xlane.f32.xlu0 %v3807_v34  ;;  %v4823_v34 = vld [vmem:[%s7517_s13 + $0xc0] sm:$0xff] }
0x1420   : > { %v3812_v11 = vpop.xlane.xlu0 %3811 }
0x1421   : > { %5646 = vrcp.f32 %v3812_v11 }
0x142e   : > { %v5647_v17 = vpop.eup %5646 }
0x142f   : > { %v3820_v61 = vmul.f32 %v5647_v17, %v7129_v41 }
0x1488   : > { %v5389_v27 = vpop.f32.mrf.mxu1  ;;  %v3809_v28 = vpop.xlane.xlu0 %3808 }
0x1489   : > { %5648 = vrcp.f32 %v3809_v28  ;;  %3968 = vrot.lane.b32.xlu1 %v5389_v27, %s7578_s29 }
0x148a   : > { %v3911_v16 = vpop.f32.mrf.mxu1 }
0x148b   : > { %3966 = vrot.lane.b32.xlu0 %v3911_v16, %s7578_s29 }
0x148d   : > { %3940 = vrot.lane.b32.xlu1 %v7095_v10, %s7582_s22  ;;  %v3979_v10 = vsel %vm986_vm3, %v7087_v9, %v3937_v31  ;;  %v7182_v9 = vld [vmem:[%s7514_s10 + $0x1] ss:$0 sm:$0xff] }
0x148e   : > { %v3983_v38 = vsel %vm1096_vm5, %v3979_v10, %v3953_v58  ;;  %v4867_v10 = vld [vmem:[%s7519_s15 + $0x1f8] sm:$0xff] }
0x148f   : > { %5079 = vmatprep.subr.mxu1 %v4867_v10 }
0x1491   : > { %3956 = vrot.lane.b32.xlu1 %v7099_v25, %s7580_s28 }
0x1496   : > { %v5649_v32 = vpop.eup %5648 }
0x1497   : > { %v3819_v30 = vmul.f32 %v5649_v32, %v5645_v7  ;;  %v4824_v7 = vld [vmem:[%s7517_s13 + $0xc8] sm:$0xff] }
0x1499   : > { %5390 = vmatprep.mubr.msk.f32.mxu1 %vm1096_vm5, %v3819_v30 }
0x149a   : > { %5391 = vmatmul.mubr.msk.f32.gmra.mxu1 %vm1096_vm5, %v3820_v61 }
0x14fb   : > { %v3969_v19 = vpop.permute.xlu1 %3968 }
0x14fc   : > { %v3987_v42 = vsel %vm669_vm0, %v3983_v38, %v3969_v19  ;;  %v4850_v38 = vld [vmem:[%s7519_s15 + $0x170] sm:$0xff] }
0x14fd   : > { %v3967_v25 = vpop.permute.xlu0 %3966 }
0x14fe   : > { %v3986_v18 = vsel %vm669_vm0, %v3982_v20, %v3967_v25  ;;  %v4851_v25 = vld [vmem:[%s7519_s15 + $0x178] sm:$0xff]  ;;  %v4866_v20 = vld [vmem:[%s7519_s15 + $0x1f0] sm:$0xff] }
0x14ff   : > { %5409 = vmatprep.mubr.msk.f32.mxu1 %vm772_vm2, %v3986_v18  ;;  %v3941_v51 = vpop.permute.xlu1 %3940  ;;  %v4865_v18 = vld [vmem:[%s7519_s15 + $0x1e8] sm:$0xff] }
0x1500   : > { %5410 = vmatmul.mubr.msk.f32.vlgmr.msra.gmra.mxu1 %vm772_vm2, %v3987_v42  ;;  %v3981_v16 = vsel %vm986_vm3, %v7091_v37, %v3941_v51  ;;  %v7271_v37 = vld [vmem:[%s7516_s12 + $0x1] ss:$0 sm:$0xff]  ;;  %v4849_v42 = vld [vmem:[%s7519_s15 + $0x168] sm:$0xff] }
0x1501   : > { %5080 = vmatpush3.msra.mxu1 %v4851_v25 }
0x1502   : > { %5081 = vmatprep.subr.mxu1 %v4866_v20 }
0x1503   : > { %v3957_v11 = vpop.permute.xlu1 %3956  ;;  %5082 = vmatpush3.msra.mxu1 %v4850_v38 }
0x1504   : > { %v3985_v32 = vsel %vm1096_vm5, %v3981_v16, %v3957_v11  ;;  %5083 = vmatprep.subr.mxu1 %v4865_v18 }
0x1505   : > { %5084 = vmatpush3.msra.mxu1 %v4849_v42 }
0x155a   : > { %v5392_v57 = vpop.f32.mrf.mxu1 }
0x155c   : > { %v3921_v43 = vpop.f32.mrf.mxu1 }
0x15c0   : > { %v5411_v33 = vpop.f32.mrf.mxu1 }
0x15c1   : > { %v4091_v62 = vadd.f32 %v5411_v33, %v7182_v9  ;;  %v4863_v33 = vld [vmem:[%s7519_s15 + $0x1d8] sm:$0xff] }
0x15c2   : > { %v4085_v50 = vpop.f32.mrf.mxu1 }
0x15c3   : > { %v4086_v45 = vadd.f32 %v7182_v9, %v4085_v50  ;;  %v7197_v2 = vadd.f32 %v4091_v62, %v6678_v46  ;;  %v4847_v50 = vld [vmem:[%s7519_s15 + $0x158] sm:$0xff]  ;;  %v4861_v62 = vld [vmem:[%s7519_s15 + $0x1c8] sm:$0xff] }
0x15c5   : > { %v7186_v53 = vadd.f32 %v4086_v45, %v6673_v22  ;;  %v4115_v22 = vsel %vm772_vm2, %v7197_v2, 0.0  ;;  %v4862_v45 = vld [vmem:[%s7519_s15 + $0x1d0] sm:$0xff] }
0x15c7   : > { %v4112_v63 = vsel %vm772_vm2, %v7186_v53, 0.0 }
0x15c8   : > { %4113 = vadd.xlane.f32.xlu0 %v4112_v63  ;;  %v4846_v63 = vld [vmem:[%s7519_s15 + $0x150] sm:$0xff] }
0x15de   : > { %3938 = vrot.lane.b32.xlu0 %v7097_v0, %s7582_s22 }
0x15e2   : > { %3954 = vrot.lane.b32.xlu0 %v7101_v12, %s7580_s28  ;;  %s7584_s28 = sld [smem:[#allocation20_spill]] }
0x15e6   : > { %3970 = vrot.lane.b32.xlu0 %v3921_v43, %s7578_s29  ;;  %v4848_v43 = vld [vmem:[%s7519_s15 + $0x160] sm:$0xff] }
0x15e8   : > { %s7469_s22 = scalar_lea.hbm %s7584_s28, %s4871_s6 }
0x1605   : > { %4116 = vadd.xlane.f32.xlu0 %v4115_v22  ;;  %v4845_v22 = vld [vmem:[%s7519_s15 + $0x148] sm:$0xff] }
0x1651   : > { %v4114_v47 = vpop.xlane.xlu0 %4113 }
0x1652   : > { %v4124_v41 = vmul.f32 0.015625, %v4114_v47  ;;  %v4860_v47 = vld [vmem:[%s7519_s15 + $0x1c0] sm:$0xff] }
0x1654   : > { %v4128_v24 = vsub.f32 %v7186_v53, %v4124_v41  ;;  %v4844_v41 = vld [vmem:[%s7519_s15 + $0x140] sm:$0xff] }
0x1655   : > { %v3939_v6 = vpop.permute.xlu0 %3938 }
0x1656   : > { %v4132_v0 = vmul.f32 %v4128_v24, %v4128_v24  ;;  %v3980_v36 = vsel %vm986_vm3, %v7093_v21, %v3939_v6  ;;  %v4828_v21 = vld [vmem:[%s7517_s13 + $0xe8] sm:$0xff]  ;;  %v4843_v6 = vld [vmem:[%s7519_s15 + $0x138] sm:$0xff] }
0x1657   : > { %4244 = vmatprep.subr.mxu0 %v4828_v21  ;;  %v4838_v21 = vld [vmem:[%s7519_s15 + $0x110] sm:$0xff] }
0x1658   : > { %v4136_v59 = vsel %vm772_vm2, %v4132_v0, 0.0  ;;  %4245 = vmatpush1.msra.mxu0 %v4827_v5  ;;  %v4858_v0 = vld [vmem:[%s7519_s15 + $0x1b0] sm:$0xff]  ;;  %v4853_v5 = vld [vmem:[%s7519_s15 + $0x188] sm:$0xff] }
0x1659   : > { %4137 = vadd.xlane.f32.xlu1 %v4136_v59  ;;  %v3955_v12 = vpop.permute.xlu0 %3954  ;;  %4246 = vmatprep.subr.mxu0 %v4826_v48  ;;  %v4842_v59 = vld [vmem:[%s7519_s15 + $0x130] sm:$0xff]  ;;  %v4837_v48 = vld [vmem:[%s7519_s15 + $0x108] sm:$0xff] }
0x165a   : > { %v3984_v46 = vsel %vm1096_vm5, %v3980_v36, %v3955_v12  ;;  %4247 = vmatpush1.msra.mxu0 %v4825_v23  ;;  %v4857_v12 = vld [vmem:[%s7519_s15 + $0x1a8] sm:$0xff]  ;;  %v4852_v23 = vld [vmem:[%s7519_s15 + $0x180] sm:$0xff] }
0x165b   : > { %4248 = vmatprep.subr.mxu0 %v4824_v7  ;;  %v4841_v36 = vld [vmem:[%s7519_s15 + $0x128] sm:$0xff]  ;;  %v4836_v7 = vld [vmem:[%s7519_s15 + $0x100] sm:$0xff] }
0x165c   : > { %4249 = vmatpush1.msra.mxu0 %v4823_v34 }
0x165d   : > { %v3971_v3 = vpop.permute.xlu0 %3970  ;;  %4250 = vmatprep.subr.mxu0 %v4822_v1 }
0x165e   : > { %v3988_v14 = vsel %vm669_vm0, %v3984_v46, %v3971_v3  ;;  %4251 = vmatpush1.msra.mxu0 %v4821_v13  ;;  %v4856_v46 = vld [vmem:[%s7519_s15 + $0x1a0] sm:$0xff] }
0x165f   : > { %5412 = vmatprep.mubr.msk.f32.mxu1 %vm772_vm2, %v3988_v14  ;;  %4252 = vmatprep.subr.mxu0 %v4820_v56  ;;  %v4840_v3 = vld [vmem:[%s7519_s15 + $0x120] sm:$0xff]  ;;  %v4855_v14 = vld [vmem:[%s7519_s15 + $0x198] sm:$0xff] }
0x1660   : > { %4253 = vmatpush1.msra.mxu0 %v4819_v52 }
0x1661   : > { %4254 = vmatprep.subr.mxu0 %v4818_v29 }
0x1662   : > { %4255 = vmatpush1.msra.mxu0 %v4817_v54 }
0x1663   : > { %4256 = vmatprep.subr.mxu0 %v4816_v55 }
0x1664   : > { %4257 = vmatpush1.msra.mxu0 %v4815_v39 }
0x1665   : > { %5415 = vmatprep.subr.mxu0 %v5738_v8 }
0x166a   : > { %3972 = vrot.lane.b32.xlu1 %v5392_v57, %s7578_s29  ;;  %v4864_v57 = vld [vmem:[%s7519_s15 + $0x1e0] sm:$0xff]  ;;  %s4594_s29 = sshll.u32 %s648_s2, 4  ;;  %s4595_s29 = int_to_ptr.vmem [resolvable:$true] %s4594_s29 }
0x166b   : > { %5085 = vmatprep.subr.mxu1 %v4864_v57  ;;  %s5676_s7 = scalar_lea.vmem %s4595_s29, 16  ;;  %p5683_p0 = scmp.lt.s32.totalorder %s4595_s29, %s5681_s1 }
0x166c   : > { %5086 = vmatpush3.msra.mxu1 %v4848_v43  ;;  %p5677_p11 = scmp.ne.s32.totalorder %s4595_s29, %s5676_s7  ;;  %p5684_p1 = scmp.lt.s32.totalorder %s5682_s27, %s5676_s7 }
0x166d   : > { %5087 = vmatprep.subr.mxu1 %v4863_v33 }
0x166e   : > { %5088 = vmatpush3.msra.mxu1 %v4847_v50  ;;  %p5678_p12 = pnand %p5677_p11, %p5896_p5  ;;  %p5685_p2 = por %p5684_p1, %p5683_p0 }
0x166f   : > { %5089 = vmatprep.subr.mxu1 %v4862_v45 }
0x1670   : > { %5090 = vmatpush3.msra.mxu1 %v4846_v63  ;;  %p5679_p13 = pneg %p5678_p12 }
0x1671   : > { %5091 = vmatprep.subr.mxu1 %v4861_v62 }
0x1672   : > { %5092 = vmatpush3.msra.mxu1 %v4845_v22  ;;  %p5686_p3 = pnand %p5685_p2, %p5679_p13 }
0x1673   : > { %5093 = vmatprep.subr.mxu1 %v4860_v47 }
0x1674   : > { %5094 = vmatpush3.msra.mxu1 %v4844_v41 }
0x168e   : > { %v4117_v34 = vpop.xlane.xlu0 %4116 }
0x168f   : > { %v4125_v1 = vmul.f32 0.015625, %v4117_v34 }
0x1691   : > { %v4129_v56 = vsub.f32 %v7197_v2, %v4125_v1  ;;  %v4831_v2 = vld [vmem:[%s7518_s14 + $0x2] sm:$0x3] }
0x1693   : > { %v4133_v11 = vmul.f32 %v4129_v56, %v4129_v56 }
0x16e2   : > { %v4138_v27 = vpop.xlane.xlu1 %4137 }
0x16e3   : > { %v4148_v28 = vmul.f32 0.015625, %v4138_v27 }
0x16e5   : > { %v4152_v17 = vadd.f32 1e-05, %v4148_v28  ;;  %v4139_v28 = vsel %vm772_vm2, %v4133_v11, 0.0 }
0x16e6   : > { %v3973_v30 = vpop.permute.xlu1 %3972 }
0x16e7   : > { %5650 = vrsqrt.f32 %v4152_v17  ;;  %v3989_v61 = vsel %vm669_vm0, %v3985_v32, %v3973_v30 }
0x16e8   : > { %5413 = vmatmul.mubr.msk.f32.gmra.mxu1 %vm772_vm2, %v3989_v61 }
0x16f4   : > { %v5651_v31 = vpop.eup %5650 }
0x16f5   : > { %v4160_v58 = vmul.f32 %v5651_v31, %v4128_v24  ;;  %v4859_v24 = vld [vmem:[%s7519_s15 + $0x1b8] sm:$0xff] }
0x16f6   : > { %5095 = vmatprep.subr.mxu1 %v4859_v24 }
0x16f7   : > { %v4170_v26 = vmul.f32 %v7266_v40, %v4160_v58  ;;  %5096 = vmatpush3.msra.mxu1 %v4843_v6 }
0x16f8   : > { %5097 = vmatprep.subr.mxu1 %v4858_v0 }
0x16f9   : > { %v4180_v19 = vadd.f32 %v7271_v37, %v4170_v26  ;;  %5098 = vmatpush3.msra.mxu1 %v4842_v59 }
0x16fa   : > { %5099 = vmatprep.subr.mxu1 %v4857_v12  ;;  %v4869_v12 = vld [vmem:[%s7520_s16 + $0x1] ss:$0 sm:$0xff] }
0x16fb   : > { %4832 = vmatmul.mubr.msk.f32.vlgmr.msra.gmra.mxu0 %vm772_vm2, %v4180_v19  ;;  %5100 = vmatpush3.msra.mxu1 %v4841_v36 }
0x16fc   : > { %4296 = vmatprep.mubr.f32.mxu0 %v5738_v8  ;;  %5101 = vmatprep.subr.mxu1 %v4856_v46 }
0x16fd   : > { %5102 = vmatpush3.msra.mxu1 %v4840_v3 }
0x16fe   : > { %5103 = vmatprep.subr.mxu1 %v4855_v14 }
0x16ff   : > { %5104 = vmatpush3.msra.mxu1 %v4839_v60 }
0x1700   : > { %5105 = vmatprep.subr.mxu1 %v4854_v4 }
0x1701   : > { %5106 = vmatpush3.msra.mxu1 %v4838_v21 }
0x1702   : > { %5107 = vmatprep.subr.mxu1 %v4853_v5 }
0x1703   : > { %5108 = vmatpush3.msra.mxu1 %v4837_v48 }
0x1704   : > { %5109 = vmatprep.subr.mxu1 %v4852_v23 }
0x1705   : > { %5110 = vmatpush3.msra.mxu1 %v4836_v7 }
0x17a8   : > { %v5414_v13 = vpop.f32.mrf.mxu1 }
0x17a9   : > { %v4101_v52 = vadd.f32 %v5414_v13, %v7182_v9 }
0x17aa   : > { %v4095_v29 = vpop.f32.mrf.mxu1 }
0x17ab   : > { %v4107_v54 = vadd.f32 %v4101_v52, %v6688_v15  ;;  %v4096_v55 = vadd.f32 %v7182_v9, %v4095_v29  ;;  %v7385_v15 = vrot.slane %v4831_v2, %v6046_v35  ;;  %v7388_v9 = vrot.slane %v4831_v2, %v6056_v44 }
0x17ad   : > { %v4106_v39 = vadd.f32 %v4096_v55, %v6683_v49  ;;  %v4121_v51 = vsel %vm772_vm2, %v4107_v54, 0.0 }
0x17ae   : > { %4122 = vadd.xlane.f32.xlu0 %v4121_v51 }
0x17af   : > { %v4118_v27 = vsel %vm772_vm2, %v4106_v39, 0.0 }
0x17b0   : > { %4119 = vadd.xlane.f32.xlu1 %v4118_v27 }
0x17b2   : > { %4140 = vadd.xlane.f32.xlu0 %v4139_v28 }
0x17bb   : > { %v4292_v49 = vpop.f32.mrf.mxu0 }
0x17bc   : > { %v4293_v16 = vadd.f32 %v4292_v49, %v7385_v15 }
0x17bd   : > { %v4294_v17 = vpop.f32.mrf.mxu0 }
0x17be   : > { %v4323_v32 = vmul.f32 0.70710677, %v4293_v16  ;;  %v4295_v30 = vadd.f32 %v4294_v17, %v7388_v9  ;;  %v4315_v35 = vmul.f32 0.5, %v4293_v16 }
0x17c0   : > { %5652 = verf.f32 %v4323_v32  ;;  %v4324_v61 = vmul.f32 0.70710677, %v4295_v30  ;;  %v4316_v19 = vmul.f32 0.5, %v4295_v30 }
0x17c2   : > { %5654 = verf.f32 %v4324_v61 }
0x17cd   : > { %v5653_v31 = vpop.eup %5652 }
0x17ce   : > { %v4339_v26 = vadd.f32 1.0, %v5653_v31 }
0x17cf   : > { %v5655_v58 = vpop.eup %5654 }
0x17d0   : > { %v4340_v10 = vadd.f32 1.0, %v5655_v58  ;;  %v4347_v20 = vmul.f32 %v4339_v26, %v4315_v35  ;;  %v4503_v35 = vld [vmem:[%s7523_s19 + $0x30] sm:$0xff] }
0x17d2   : > { %v4348_v25 = vmul.f32 %v4340_v10, %v4316_v19  ;;  %v4504_v10 = vld [vmem:[%s7523_s19 + $0x38] sm:$0xff] }
0x17d3   : > { %5416 = vmatpush3.msra.mxu0 %v4504_v10 }
0x17d4   : > { %4460 = vmatprep.mubr.f32.mxu1 %v4348_v25  ;;  %5417 = vmatprep.subr.mxu0 %v5738_v8  ;;  %v4502_v25 = vld [vmem:[%s7523_s19 + $0x28] sm:$0xff] }
0x17d5   : > { %4461 = vmatmul.mubr.f32.vlgmr.msra.gmra.mxu1 %v4347_v20  ;;  %5418 = vmatpush3.msra.mxu0 %v4503_v35  ;;  %v4501_v20 = vld [vmem:[%s7523_s19 + $0x20] sm:$0xff] }
0x17d6   : > { %5419 = vmatprep.subr.mxu0 %v5738_v8 }
0x17d7   : > { %5420 = vmatpush3.msra.mxu0 %v4502_v25 }
0x17d8   : > { %5421 = vmatprep.subr.mxu0 %v5738_v8 }
0x17d9   : > { %5422 = vmatpush3.msra.mxu0 %v4501_v20 }
0x17da   : > { %5423 = vmatprep.subr.mxu0 %v5738_v8 }
0x1837   : > { %v4123_v44 = vpop.xlane.xlu0 %4122 }
0x1838   : > { %v4127_v38 = vmul.f32 0.015625, %v4123_v44  ;;  %v4500_v44 = vld [vmem:[%s7523_s19 + $0x18] sm:$0xff] }
0x1839   : > { %v4120_v18 = vpop.xlane.xlu1 %4119  ;;  %5424 = vmatpush3.msra.mxu0 %v4500_v44 }
0x183a   : > { %v4131_v42 = vsub.f32 %v4107_v54, %v4127_v38  ;;  %v4126_v57 = vmul.f32 0.015625, %v4120_v18  ;;  %5425 = vmatprep.subr.mxu0 %v5738_v8  ;;  %v4499_v38 = vld [vmem:[%s7523_s19 + $0x10] sm:$0xff]  ;;  %v4498_v18 = vld [vmem:[%s7523_s19 + $0x8] sm:$0xff] }
0x183b   : > { %v4141_v43 = vpop.xlane.xlu0 %4140  ;;  %5426 = vmatpush3.msra.mxu0 %v4499_v38 }
0x183c   : > { %v4130_v33 = vsub.f32 %v4106_v39, %v4126_v57  ;;  %v4149_v50 = vmul.f32 0.015625, %v4141_v43  ;;  %v4135_v45 = vmul.f32 %v4131_v42, %v4131_v42  ;;  %5427 = vmatprep.subr.mxu0 %v5738_v8 }
0x183d   : > { %5428 = vmatpush3.msra.mxu0 %v4498_v18 }
0x183e   : > { %v4153_v63 = vadd.f32 1e-05, %v4149_v50  ;;  %v4145_v62 = vsel %vm772_vm2, %v4135_v45, 0.0  ;;  %v4134_v22 = vmul.f32 %v4130_v33, %v4130_v33  ;;  %5429 = vmatprep.subr.mxu0 %v5738_v8 }
0x183f   : > { %4146 = vadd.xlane.f32.xlu1 %v4145_v62 }
0x1840   : > { %5656 = vrsqrt.f32 %v4153_v63  ;;  %v4142_v47 = vsel %vm772_vm2, %v4134_v22, 0.0 }
0x1841   : > { %4143 = vadd.xlane.f32.xlu0 %v4142_v47 }
0x184d   : > { %v5657_v41 = vpop.eup %5656 }
0x184e   : > { %v4161_v24 = vmul.f32 %v5657_v41, %v4129_v56 }
0x1850   : > { %v4171_v6 = vmul.f32 %v7266_v40, %v4161_v24 }
0x1852   : > { %v4181_v0 = vadd.f32 %v7271_v37, %v4171_v6 }
0x1854   : > { %4833 = vmatmul.mubr.msk.f32.gmra.mxu0 %vm772_vm2, %v4181_v0 }
0x1855   : > { %4302 = vmatprep.mubr.f32.mxu0 %v5738_v8 }
0x1895   : > { %v5111_v59 = vpop.f32.mrf.mxu1 }
0x1897   : > { %v5112_v36 = vpop.f32.mrf.mxu1 }
0x1898   : > { %v5113_v46 = vadd.f32 %v5112_v36, %v5111_v59 }
0x189a   : > { %v4463_v3 = vadd.f32 %v5113_v46, %v4869_v12 }
0x189c   : > { %v4478_v14 = vadd.f32 %v4463_v3, %v7186_v53 }
0x189e   : > { %v4482_v60 = vsel %vm4481_vm6, %v4478_v14, 0.0 }
0x189f   : > { %4483 = vadd.xlane.f32.xlu0 %v4482_v60 }
0x18c8   : > { %v4147_v4 = vpop.xlane.xlu1 %4146 }
0x18c9   : > { %v4151_v21 = vmul.f32 0.015625, %v4147_v4 }
0x18ca   : > { %v4144_v5 = vpop.xlane.xlu0 %4143 }
0x18cb   : > { %v4155_v48 = vadd.f32 1e-05, %v4151_v21  ;;  %v4150_v23 = vmul.f32 0.015625, %v4144_v5 }
0x18cd   : > { %5658 = vrsqrt.f32 %v4155_v48  ;;  %v4154_v7 = vadd.f32 1e-05, %v4150_v23 }
0x18cf   : > { %5660 = vrsqrt.f32 %v4154_v7 }
0x18da   : > { %v5659_v34 = vpop.eup %5658 }
0x18db   : > { %v4163_v56 = vmul.f32 %v5659_v34, %v4131_v42  ;;  %v4497_v42 = vld [vmem:[%s7523_s19] sm:$0xff] }
0x18dc   : > { %v5661_v1 = vpop.eup %5660  ;;  %5430 = vmatpush3.msra.mxu0 %v4497_v42 }
0x18dd   : > { %v4162_v13 = vmul.f32 %v5661_v1, %v4130_v33  ;;  %v4173_v53 = vmul.f32 %v7266_v40, %v4163_v56  ;;  %v4479_v56 = vld [vmem:[%s7521_s17] sm:$0x1] }
0x18df   : > { %v4172_v52 = vmul.f32 %v7266_v40, %v4162_v13  ;;  %v4183_v54 = vadd.f32 %v7271_v37, %v4173_v53 }
0x18e1   : > { %v4182_v29 = vadd.f32 %v7271_v37, %v4172_v52 }
0x18e3   : > { %4834 = vmatmul.mubr.msk.f32.gmra.mxu0 %vm772_vm2, %v4182_v29  ;;  %v4480_v29 = vld [vmem:[%s7522_s18] sm:$0x1] }
0x18e4   : > { %4308 = vmatprep.mubr.f32.mxu0 %v5738_v8 }
0x18e7   : > { %4835 = vmatmul.mubr.msk.f32.gmra.mxu0 %vm772_vm2, %v4183_v54 }
0x18e8   : > { %5431 = vmatprep.mubr.msk.f32.mxu0 %vm5746_vm7, %v5738_v8 }
0x1914   : > { %v4298_v55 = vpop.f32.mrf.mxu0 }
0x1915   : > { %v4299_v39 = vadd.f32 %v4298_v55, %v7385_v15 }
0x1916   : > { %v4300_v51 = vpop.f32.mrf.mxu0 }
0x1917   : > { %v4325_v11 = vmul.f32 0.70710677, %v4299_v39  ;;  %v4301_v27 = vadd.f32 %v4300_v51, %v7388_v9  ;;  %v4317_v37 = vmul.f32 0.5, %v4299_v39 }
0x1919   : > { %5662 = verf.f32 %v4325_v11  ;;  %v4326_v28 = vmul.f32 0.70710677, %v4301_v27  ;;  %v4318_v17 = vmul.f32 0.5, %v4301_v27 }
0x191b   : > { %5664 = verf.f32 %v4326_v28 }
0x1926   : > { %v5663_v2 = vpop.eup %5662 }
0x1927   : > { %v4341_v16 = vadd.f32 1.0, %v5663_v2  ;;  %v4505_v2 = vld [vmem:[%s7524_s20] sm:$0x1] }
0x1928   : > { %v5665_v40 = vpop.eup %5664  ;;  %v4484_v49 = vpop.xlane.xlu0 %4483 }
0x1929   : > { %v4485_v32 = vmul.f32 0.015625, %v4484_v49  ;;  %v4342_v30 = vadd.f32 1.0, %v5665_v40  ;;  %v4349_v58 = vmul.f32 %v4341_v16, %v4317_v37 }
0x192b   : > { %v7412_v61 = vsub.f32 %v4478_v14, %v4485_v32  ;;  %v4350_v31 = vmul.f32 %v4342_v30, %v4318_v17 }
0x192d   : > { %4465 = vmatprep.mubr.f32.mxu1 %v4350_v31  ;;  %v4487_v26 = vmul.f32 %v7412_v61, %v7412_v61 }
0x192e   : > { %4466 = vmatmul.mubr.f32.gmra.mxu1 %v4349_v58 }
0x192f   : > { %v4488_v19 = vsel %vm4481_vm6, %v4487_v26, 0.0 }
0x1930   : > { %4489 = vadd.xlane.f32.xlu1 %v4488_v19 }
0x19a3   : > { %v4304_v57 = vpop.f32.mrf.mxu0 }
0x19a4   : > { %v4305_v43 = vadd.f32 %v4304_v57, %v7385_v15 }
0x19a5   : > { %v4306_v33 = vpop.f32.mrf.mxu0 }
0x19a6   : > { %v4327_v50 = vmul.f32 0.70710677, %v4305_v43  ;;  %v4307_v45 = vadd.f32 %v4306_v33, %v7388_v9  ;;  %v4319_v3 = vmul.f32 0.5, %v4305_v43 }
0x19a7   : > { %v4310_v63 = vpop.f32.mrf.mxu0 }
0x19a8   : > { %5666 = verf.f32 %v4327_v50  ;;  %v4328_v62 = vmul.f32 0.70710677, %v4307_v45  ;;  %v4311_v22 = vadd.f32 %v4310_v63, %v7385_v15  ;;  %v4320_v12 = vmul.f32 0.5, %v4307_v45 }
0x19a9   : > { %v4312_v47 = vpop.f32.mrf.mxu0 }
0x19aa   : > { %5668 = verf.f32 %v4328_v62  ;;  %v4329_v41 = vmul.f32 0.70710677, %v4311_v22  ;;  %v4313_v24 = vadd.f32 %v4312_v47, %v7388_v9  ;;  %v4321_v7 = vmul.f32 0.5, %v4311_v22 }
0x19ac   : > { %5670 = verf.f32 %v4329_v41  ;;  %v4330_v8 = vmul.f32 0.70710677, %v4313_v24  ;;  %v4322_v48 = vmul.f32 0.5, %v4313_v24 }
0x19ae   : > { %5672 = verf.f32 %v4330_v8 }
0x19b5   : > { %v5667_v6 = vpop.eup %5666 }
0x19b6   : > { %v4343_v59 = vadd.f32 1.0, %v5667_v6 }
0x19b7   : > { %v5669_v0 = vpop.eup %5668 }
0x19b8   : > { %v4344_v36 = vadd.f32 1.0, %v5669_v0  ;;  %v4351_v15 = vmul.f32 %v4343_v59, %v4319_v3 }
0x19b9   : > { %v5671_v46 = vpop.eup %5670  ;;  %v4490_v14 = vpop.xlane.xlu1 %4489 }
0x19ba   : > { %v4491_v60 = vmul.f32 0.015625, %v4490_v14  ;;  %v4352_v4 = vmul.f32 %v4344_v36, %v4320_v12  ;;  %v4345_v5 = vadd.f32 1.0, %v5671_v46 }
0x19bb   : > { %v5673_v21 = vpop.eup %5672 }
0x19bc   : > { %v4492_v23 = vadd.f32 1e-05, %v4491_v60  ;;  %4469 = vmatprep.mubr.f32.mxu1 %v4352_v4  ;;  %v4346_v9 = vadd.f32 1.0, %v5673_v21  ;;  %v4353_v1 = vmul.f32 %v4345_v5, %v4321_v7 }
0x19bd   : > { %4470 = vmatmul.mubr.f32.gmra.mxu1 %v4351_v15 }
0x19be   : > { %5674 = vrsqrt.f32 %v4492_v23  ;;  %v4354_v34 = vmul.f32 %v4346_v9, %v4322_v48 }
0x19c0   : > { %4473 = vmatprep.mubr.f32.mxu1 %v4354_v34 }
0x19c1   : > { %4474 = vmatmul.mubr.f32.gmra.mxu1 %v4353_v1 }
0x19cb   : > { %v5675_v13 = vpop.eup %5674 }
0x19cc   : > { %v4494_v52 = vmul.f32 %v5675_v13, %v7412_v61 }
0x19ce   : > { %v4495_v53 = vmul.f32 %v4494_v52, %v4479_v56 }
0x19d0   : > { %v4496_v54 = vadd.f32 %v4495_v53, %v4480_v29 }
0x19d2   : > { %5432 = vmatmul.mubr.msk.f32.vlgmr.msra.gmra.mxu0 %vm772_vm2, %v4496_v54 }
0x19ee   : > { %v5114_v55 = vpop.f32.mrf.mxu1 }
0x19f0   : > { %v5115_v39 = vpop.f32.mrf.mxu1 }
0x1a7d   : > { %v5117_v51 = vpop.f32.mrf.mxu1 }
0x1a7f   : > { %v5118_v11 = vpop.f32.mrf.mxu1 }
0x1a81   : > { %v5120_v27 = vpop.f32.mrf.mxu1 }
0x1a83   : > { %v5121_v28 = vpop.f32.mrf.mxu1 }
0x1a92   : > { %v4575_v40 = vpop.f32.mrf.mxu0 }
0x1a93   : > { %v4576_v49 = vadd.f32 %v4575_v40, %v4505_v2 }
0x1a94   : > { %v5433_v16 = vpop.f32.mrf.mxu0 }
0x1a95   : > { %4580 = vst.msk [vmem:[%s648_s2] sm:$0x1] %vm4579_vm8, %v4576_v49 }
0x1a96   : > { %5689 = shalt.err (!%p5686_p3)
}
0x1a97   : > { %s5690_s6 = scalar_lea.hbm %s7469_s22, 16  ;;  %s5694_s0 = scalar_lea.hbm %s7584_s28, 32 }
0x1a98   : > { %p5691_p4 = scmp.ne.s32.totalorder %s7469_s22, %s5690_s6  ;;  %p5695_p9 = scmp.lt.s32.totalorder %s7469_s22, %s7584_s28 }
0x1a99   : > { %p5696_p10 = scmp.lt.s32.totalorder %s5694_s0, %s5690_s6 }
0x1a9a   : > { %p5692_p7 = pnand %p5691_p4, %p5896_p5 }
0x1a9b   : > { %p5697_p11 = por %p5696_p10, %p5695_p9 }
0x1a9c   : > { %p5693_p8 = pneg %p5692_p7 }
0x1a9e   : > { %p5698_p12 = pnand %p5697_p11, %p5693_p8 }
0x1aa0   : > { %5701 = shalt.err (!%p5698_p12)
}
0x1aa1   : > { %5434 = dma.vmem_to_hbm [thread:$0]  (%p5896_p5), %s4595_s29, 16, %s7469_s22, %s4582_s4  }
0x1aa2 PF: > { %s7585_s7 = sld [smem:[#allocation7_spill]] }
0x1aa3   : > { %s7586_s1 = sld [smem:[#allocation5_spill]] }
0x1aa8   : > { %p5440_p13 = scmp.ge.s32.totalorder %s7585_s7, 2 }
0x1aa9   : > { %s4606_s8 = sand.u32 1, %s7586_s1  }
0x1aaa   : > { %p5437_p0 = pnand %p5440_p13, %p5900_p6  ;;  %s4607_s30 = scalar_lea.sflag [#allocation3], %s4606_s8 }
0x1aac   : > { %p5438_p1 = pneg %p5437_p0 }
0x1aae   : > { %5719 = dma.done.wait (%p5438_p1), %s4607_s30, 16  }
0x1aaf   : > { %5721 = vsyncadd (%p5438_p1), %s4607_s30, 4294967280  ;;  %s7588_s27 = sld [smem:[#allocation8_spill]]  ;;  %s7591_s2 = smov %s5728_s25 }
0x1ab0   : > { %s7589_s6 = sld [smem:[#allocation6_spill]] }
0x1ab1   : > { %s7590_s26 = sld [smem:[#allocation9_spill]] }
0x1ab5   : > { %p31_p2 = scmp.ge.s32.totalorder %s7588_s27, 4  }
0x1ab6   : > { %s7592_s25 = smov %s7589_s6 }
0x1ab7   :  { %33 = sbr.rel (!%p31_p2) target bundleno = 14 (0xe), region = 151 }
0x1abc   :  { %4611 = vsyncpa [#allocation3], 1 }
0x1abd   :  { %4613 = vsyncpa [#allocation3 + $0x1], 1 }

</bundles_post_ra>
